<compile_context>
chip_gen: v6e
topology: v6e:2x2x1
jax: 0.10.0
libtpu: 0.0.40
codegen_flags: <defaults>
</compile_context>

<pallas_src>
import math
from functools import partial
from typing import NamedTuple

import jax
import jax.numpy as jnp
from jax.experimental import pallas as pl
from jax.experimental.pallas import tpu as pltpu


# ------------------------------- configs ------------------------------------

class TransformerConfig(NamedTuple):
    n_heads: int
    dim_k: int
    dim_v: int
    ksize: int
    n_blocks: int


class BucketConfig(NamedTuple):
    n_bins: int
    vmin: float
    vmax: float


class FS2Config(NamedTuple):
    encoder: TransformerConfig
    decoder: TransformerConfig
    va_ksize: int
    pitch: BucketConfig
    energy: BucketConfig


def _round_up(x, m):
    return (x + m - 1) // m * m


# rows per grid step for the row-tiled matmul kernels.  (tm*K + K*N + tm*N)*2B
# double-buffered stays well under v7x's 64 MiB physical VMEM at real sizes.
_MAX_TILE_M = 512


# --------------------------- Pallas kernels ---------------------------------

def _linear_kernel(x_ref, w_ref, b_ref, o_ref):
    o_ref[...] = (
        jnp.dot(x_ref[...].astype(jnp.bfloat16), w_ref[...],
                preferred_element_type=jnp.float32)
        + b_ref[...]
    )


def linear_pallas(x, w, b):
    """x:(M,K) f32 @ w:(K,N) bf16 + b:(N,) -> (M,N) f32, tiled over rows."""
    M, K = x.shape
    N = w.shape[1]
    tm = min(_MAX_TILE_M, _round_up(M, 8))
    Mp = _round_up(M, tm)
    if Mp != M:
        x = jnp.pad(x, ((0, Mp - M), (0, 0)))
    out = pl.pallas_call(
        _linear_kernel,
        grid=(Mp // tm,),
        in_specs=[
            pl.BlockSpec((tm, K), lambda i: (i, 0)),
            pl.BlockSpec((K, N), lambda i: (0, 0)),
            pl.BlockSpec((1, N), lambda i: (0, 0)),
        ],
        out_specs=pl.BlockSpec((tm, N), lambda i: (i, 0)),
        out_shape=jax.ShapeDtypeStruct((Mp, N), jnp.float32),
        compiler_params=pltpu.CompilerParams(dimension_semantics=("parallel",)),
    )(x, w, b.reshape(1, N))
    return out[:M] if Mp != M else out


def _proj_res_ln_kernel(x_ref, w_ref, b_ref, res_ref, m_ref, g_ref, be_ref, o_ref, *, eps):
    y = (jnp.dot(x_ref[...].astype(jnp.bfloat16), w_ref[...],
                 preferred_element_type=jnp.float32)
         + b_ref[...] + res_ref[...])
    mu = jnp.mean(y, axis=-1, keepdims=True)
    var = jnp.mean((y - mu) ** 2, axis=-1, keepdims=True)
    o_ref[...] = ((y - mu) * jax.lax.rsqrt(var + eps) * g_ref[...] + be_ref[...]) * m_ref[...]


def proj_residual_ln_pallas(x, w, b, res, maskf, g, beta, eps=1e-5):
    """Fused (x @ w + b + residual) -> layernorm -> * mask, row-tiled."""
    M, K = x.shape
    N = w.shape[1]
    tm = min(_MAX_TILE_M, _round_up(M, 8))
    Mp = _round_up(M, tm)
    if Mp != M:
        pad = ((0, Mp - M), (0, 0))
        x, res, maskf = jnp.pad(x, pad), jnp.pad(res, pad), jnp.pad(maskf, pad)
    out = pl.pallas_call(
        partial(_proj_res_ln_kernel, eps=eps),
        grid=(Mp // tm,),
        in_specs=[
            pl.BlockSpec((tm, K), lambda i: (i, 0)),
            pl.BlockSpec((K, N), lambda i: (0, 0)),
            pl.BlockSpec((1, N), lambda i: (0, 0)),
            pl.BlockSpec((tm, N), lambda i: (i, 0)),
            pl.BlockSpec((tm, 1), lambda i: (i, 0)),
            pl.BlockSpec((1, N), lambda i: (0, 0)),
            pl.BlockSpec((1, N), lambda i: (0, 0)),
        ],
        out_specs=pl.BlockSpec((tm, N), lambda i: (i, 0)),
        out_shape=jax.ShapeDtypeStruct((Mp, N), jnp.float32),
        compiler_params=pltpu.CompilerParams(dimension_semantics=("parallel",)),
    )(x, w, b.reshape(1, N), res, maskf, g.reshape(1, N), beta.reshape(1, N))
    return out[:M] if Mp != M else out


def _attention_kernel(qkv_ref, m_ref, o_ref, a_ref, *, n_heads, dim_k, dim_v, scale):
    bias = m_ref[0]                                    # (1, T) additive key mask
    k_off = n_heads * dim_k
    v_off = 2 * n_heads * dim_k
    for h in range(n_heads):                           # static unroll over heads
        q = qkv_ref[0, :, h * dim_k:(h + 1) * dim_k].astype(jnp.bfloat16)
        k = qkv_ref[0, :, k_off + h * dim_k:k_off + (h + 1) * dim_k].astype(jnp.bfloat16)
        v = qkv_ref[0, :, v_off + h * dim_v:v_off + (h + 1) * dim_v].astype(jnp.bfloat16)
        # q @ k^T without an explicit transpose: contract both on the dk axis.
        s = jax.lax.dot_general(q, k, (((1,), (1,)), ((), ())),
                                preferred_element_type=jnp.float32) * scale
        s = s + bias
        s = s - jnp.max(s, axis=-1, keepdims=True)
        e = jnp.exp(s)
        p = e * pl.reciprocal(jnp.sum(e, axis=-1, keepdims=True), approx=True)
        a_ref[0, h] = p
        o_ref[0, :, h * dim_v:(h + 1) * dim_v] = jnp.dot(
            p.astype(jnp.bfloat16), v, preferred_element_type=jnp.float32)


def attention_pallas(qkv, mask_bias, n_heads, dim_k, dim_v, scale):
    """qkv:(B,T,H*(2dk+dv)) packed projections.  Returns ctx:(B,T,H*dv), attn:(B,H,T,T)."""
    B, T, n_qkv = qkv.shape
    ctx, attn = pl.pallas_call(
        partial(_attention_kernel, n_heads=n_heads, dim_k=dim_k, dim_v=dim_v, scale=scale),
        grid=(B,),
        in_specs=[
            pl.BlockSpec((1, T, n_qkv), lambda i: (i, 0, 0)),
            pl.BlockSpec((1, 1, T), lambda i: (i, 0, 0)),
        ],
        out_specs=[
            pl.BlockSpec((1, T, n_heads * dim_v), lambda i: (i, 0, 0)),
            pl.BlockSpec((1, n_heads, T, T), lambda i: (i, 0, 0, 0)),
        ],
        out_shape=[
            jax.ShapeDtypeStruct((B, T, n_heads * dim_v), jnp.float32),
            jax.ShapeDtypeStruct((B, n_heads, T, T), jnp.float32),
        ],
        compiler_params=pltpu.CompilerParams(dimension_semantics=("parallel",)),
    )(qkv, mask_bias)
    return ctx, attn


def _ffn_kernel(xp_ref, w1_ref, b1_ref, w2_ref, b2_ref, g_ref, be_ref, m_ref,
                o_ref, h_scr, *, ksize, pad, eps):
    T = o_ref.shape[1]
    D = o_ref.shape[2]
    F = h_scr.shape[1]
    x_res = xp_ref[0, pad:pad + T, :]                  # (T, D) residual
    # conv1 (in-VMEM shifted taps) + bias + ReLU
    acc = jnp.zeros((T, F), jnp.float32)
    for j in range(ksize):
        acc = acc + jnp.dot(xp_ref[0, j:j + T, :].astype(jnp.bfloat16), w1_ref[j],
                            preferred_element_type=jnp.float32)
    h = jnp.maximum(acc + b1_ref[...], 0.0)
    # zero-padded scratch so conv2 taps stay in VMEM
    h_scr[...] = jnp.zeros_like(h_scr)
    h_scr[pad:pad + T, :] = h
    acc2 = jnp.zeros((T, D), jnp.float32)
    for j in range(ksize):
        acc2 = acc2 + jnp.dot(h_scr[j:j + T, :].astype(jnp.bfloat16), w2_ref[j],
                              preferred_element_type=jnp.float32)
    y = acc2 + b2_ref[...] + x_res
    mu = jnp.mean(y, axis=-1, keepdims=True)
    var = jnp.mean((y - mu) ** 2, axis=-1, keepdims=True)
    o_ref[0] = ((y - mu) * jax.lax.rsqrt(var + eps) * g_ref[...] + be_ref[...]) * m_ref[0]


def ffn_pallas(x, maskf3, w1, b1, w2, b2, g, beta, ksize, eps=1e-5):
    """Fused conv1d + ReLU + conv1d + residual + layernorm + mask, per batch row."""
    B, T, D = x.shape
    F = w1.shape[-1]
    pad_l = (ksize - 1) // 2
    pad_r = ksize - 1 - pad_l
    xp = jnp.pad(x, ((0, 0), (pad_l, pad_r), (0, 0)))
    Tp = T + ksize - 1
    return pl.pallas_call(
        partial(_ffn_kernel, ksize=ksize, pad=pad_l, eps=eps),
        grid=(B,),
        in_specs=[
            pl.BlockSpec((1, Tp, D), lambda i: (i, 0, 0)),
            pl.BlockSpec((ksize, D, F), lambda i: (0, 0, 0)),
            pl.BlockSpec((1, F), lambda i: (0, 0)),
            pl.BlockSpec((ksize, F, D), lambda i: (0, 0, 0)),
            pl.BlockSpec((1, D), lambda i: (0, 0)),
            pl.BlockSpec((1, D), lambda i: (0, 0)),
            pl.BlockSpec((1, D), lambda i: (0, 0)),
            pl.BlockSpec((1, T, 1), lambda i: (i, 0, 0)),
        ],
        out_specs=pl.BlockSpec((1, T, D), lambda i: (i, 0, 0)),
        out_shape=jax.ShapeDtypeStruct((B, T, D), jnp.float32),
        scratch_shapes=[pltpu.VMEM((Tp, F), jnp.float32)],
        compiler_params=pltpu.CompilerParams(dimension_semantics=("parallel",)),
    )(xp, w1, b1.reshape(1, F), w2, b2.reshape(1, D),
      g.reshape(1, D), beta.reshape(1, D), maskf3)


def _var_predictor_kernel(xp_ref, w1_ref, b1_ref, g1_ref, be1_ref,
                          w2_ref, b2_ref, g2_ref, be2_ref,
                          lw_ref, lb_ref, m_ref, o_ref, h_scr,
                          *, ksize, pad, eps):
    T = o_ref.shape[1]
    D = h_scr.shape[1]
    n_pred = o_ref.shape[2]
    out = jnp.zeros((T, n_pred), jnp.float32)
    for p in range(n_pred):                            # duration / pitch / energy
        acc = jnp.zeros((T, D), jnp.float32)
        for j in range(ksize):
            acc = acc + jnp.dot(xp_ref[0, j:j + T, :].astype(jnp.bfloat16),
                                w1_ref[p, j], preferred_element_type=jnp.float32)
        h = jnp.maximum(acc + b1_ref[p:p + 1, :], 0.0)
        mu = jnp.mean(h, axis=-1, keepdims=True)
        var = jnp.mean((h - mu) ** 2, axis=-1, keepdims=True)
        h = (h - mu) * jax.lax.rsqrt(var + eps) * g1_ref[p:p + 1, :] + be1_ref[p:p + 1, :]
        h_scr[...] = jnp.zeros_like(h_scr)
        h_scr[pad:pad + T, :] = h
        acc2 = jnp.zeros((T, D), jnp.float32)
        for j in range(ksize):
            acc2 = acc2 + jnp.dot(h_scr[j:j + T, :].astype(jnp.bfloat16),
                                  w2_ref[p, j], preferred_element_type=jnp.float32)
        h2 = jnp.maximum(acc2 + b2_ref[p:p + 1, :], 0.0)
        mu2 = jnp.mean(h2, axis=-1, keepdims=True)
        var2 = jnp.mean((h2 - mu2) ** 2, axis=-1, keepdims=True)
        h2 = (h2 - mu2) * jax.lax.rsqrt(var2 + eps) * g2_ref[p:p + 1, :] + be2_ref[p:p + 1, :]
        col = jnp.dot(h2.astype(jnp.bfloat16), lw_ref[:, p:p + 1],
                      preferred_element_type=jnp.float32)          # (T, 1)
        onehot = (jax.lax.broadcasted_iota(jnp.int32, (1, n_pred), 1) == p
                  ).astype(jnp.float32)
        out = out + col * onehot
    o_ref[0] = (out + lb_ref[...]) * m_ref[0]


def variance_predictors_pallas(x, va, maskf3, ksize, eps=1e-5):
    """All three variance predictors (conv->relu->LN x2 -> linear) fused; returns (B,T,3)."""
    B, T, D = x.shape
    pad_l = (ksize - 1) // 2
    pad_r = ksize - 1 - pad_l
    xp = jnp.pad(x, ((0, 0), (pad_l, pad_r), (0, 0)))
    Tp = T + ksize - 1
    n_pred = 3
    return pl.pallas_call(
        partial(_var_predictor_kernel, ksize=ksize, pad=pad_l, eps=eps),
        grid=(B,),
        in_specs=[
            pl.BlockSpec((1, Tp, D), lambda i: (i, 0, 0)),
            pl.BlockSpec((n_pred, ksize, D, D), lambda i: (0, 0, 0, 0)),
            pl.BlockSpec((n_pred, D), lambda i: (0, 0)),
            pl.BlockSpec((n_pred, D), lambda i: (0, 0)),
            pl.BlockSpec((n_pred, D), lambda i: (0, 0)),
            pl.BlockSpec((n_pred, ksize, D, D), lambda i: (0, 0, 0, 0)),
            pl.BlockSpec((n_pred, D), lambda i: (0, 0)),
            pl.BlockSpec((n_pred, D), lambda i: (0, 0)),
            pl.BlockSpec((n_pred, D), lambda i: (0, 0)),
            pl.BlockSpec((D, n_pred), lambda i: (0, 0)),
            pl.BlockSpec((1, n_pred), lambda i: (0, 0)),
            pl.BlockSpec((1, T, 1), lambda i: (i, 0, 0)),
        ],
        out_specs=pl.BlockSpec((1, T, n_pred), lambda i: (i, 0, 0)),
        out_shape=jax.ShapeDtypeStruct((B, T, n_pred), jnp.float32),
        scratch_shapes=[pltpu.VMEM((Tp, D), jnp.float32)],
        compiler_params=pltpu.CompilerParams(dimension_semantics=("parallel",)),
    )(xp, va["conv1_w"], va["conv1_b"], va["ln1_g"], va["ln1_b"],
      va["conv2_w"], va["conv2_b"], va["ln2_g"], va["ln2_b"],
      va["lin_w"], va["lin_b"].reshape(1, n_pred), maskf3)


# ----------------------------- parameter init -------------------------------

def _init(key, shape, scale=0.02):
    return scale * jax.random.normal(key, shape, dtype=jnp.float32)


def make_transformer_block_params(keys, d_model, ffn_ch, ksize, n_heads, dim_k, dim_v):
    n_qkv = n_heads * (2 * dim_k + dim_v)     # packed q|k|v projection
    return dict(
        w_qkv=_init(next(keys), (d_model, n_qkv)).astype(jnp.bfloat16),
        b_qkv=jnp.zeros((n_qkv,), jnp.float32),
        wo=_init(next(keys), (n_heads * dim_v, d_model)).astype(jnp.bfloat16),
        bo=jnp.zeros((d_model,), jnp.float32),
        ln1_g=jnp.ones((d_model,), jnp.float32),
        ln1_b=jnp.zeros((d_model,), jnp.float32),
        conv1_w=_init(next(keys), (ksize, d_model, ffn_ch)).astype(jnp.bfloat16),
        conv1_b=jnp.zeros((ffn_ch,), jnp.float32),
        conv2_w=_init(next(keys), (ksize, ffn_ch, d_model)).astype(jnp.bfloat16),
        conv2_b=jnp.zeros((d_model,), jnp.float32),
        ln2_g=jnp.ones((d_model,), jnp.float32),
        ln2_b=jnp.zeros((d_model,), jnp.float32),
    )


def init_fastspeech2(key, num_inputs, num_out_mels, num_input_channels,
                     encoder_kernel_size, encoder_output_channels,
                     decoder_kernel_size, decoder_output_channels,
                     variance_adaptor_kernel_size, pitch_hparams, energy_hparams):
    keys = iter(jax.random.split(key, 512))
    D = num_input_channels
    ka = variance_adaptor_kernel_size
    enc_cfg = TransformerConfig(n_heads=2, dim_k=64, dim_v=64,
                                ksize=encoder_kernel_size, n_blocks=4)
    dec_cfg = TransformerConfig(n_heads=2, dim_k=64 * 2, dim_v=64,
                                ksize=decoder_kernel_size, n_blocks=4)
    params = {
        "symbol_emb": _init(next(keys), (num_inputs, D), 0.1),
        "enc_blocks": [make_transformer_block_params(keys, D, encoder_output_channels,
                                                     enc_cfg.ksize, enc_cfg.n_heads,
                                                     enc_cfg.dim_k, enc_cfg.dim_v)
                       for _ in range(enc_cfg.n_blocks)],
        "dec_blocks": [make_transformer_block_params(keys, D, decoder_output_channels,
                                                     dec_cfg.ksize, dec_cfg.n_heads,
                                                     dec_cfg.dim_k, dec_cfg.dim_v)
                       for _ in range(dec_cfg.n_blocks)],
        "proj_w": _init(next(keys), (D, num_out_mels)).astype(jnp.bfloat16),
        "proj_b": jnp.zeros((num_out_mels,), jnp.float32),
        "va": dict(
            # predictors stacked along axis 0: [duration, pitch, energy]
            conv1_w=_init(next(keys), (3, ka, D, D)).astype(jnp.bfloat16),
            conv1_b=jnp.zeros((3, D), jnp.float32),
            ln1_g=jnp.ones((3, D), jnp.float32),
            ln1_b=jnp.zeros((3, D), jnp.float32),
            conv2_w=_init(next(keys), (3, ka, D, D)).astype(jnp.bfloat16),
            conv2_b=jnp.zeros((3, D), jnp.float32),
            ln2_g=jnp.ones((3, D), jnp.float32),
            ln2_b=jnp.zeros((3, D), jnp.float32),
            lin_w=_init(next(keys), (D, 3)).astype(jnp.bfloat16),
            lin_b=jnp.zeros((3,), jnp.float32),
            pitch_emb=_init(next(keys), (pitch_hparams["n_bins"], D), 0.1),
            energy_emb=_init(next(keys), (energy_hparams["n_bins"], D), 0.1),
        ),
    }
    config = FS2Config(
        encoder=enc_cfg, decoder=dec_cfg, va_ksize=ka,
        pitch=BucketConfig(int(pitch_hparams["n_bins"]),
                           float(pitch_hparams["min"]), float(pitch_hparams["max"])),
        energy=BucketConfig(int(energy_hparams["n_bins"]),
                            float(energy_hparams["min"]), float(energy_hparams["max"])),
    )
    return params, config


# ----------------------------- model pieces ---------------------------------

def sequence_mask(lengths, max_len):
    return jnp.arange(max_len, dtype=jnp.int32)[None, :] < lengths[:, None]


def sinusoid_pos(T, D):
    pos = jnp.arange(T, dtype=jnp.float32)[:, None]
    i = jnp.arange(D, dtype=jnp.float32)[None, :]
    angle = pos / jnp.power(10000.0, 2.0 * jnp.floor(i / 2.0) / D)
    even = (jnp.arange(D) % 2)[None, :] == 0
    return jnp.where(even, jnp.sin(angle), jnp.cos(angle)).astype(jnp.float32)


def transformer_forward(blocks, cfg, x, mask_bool):
    B, T, D = x.shape
    H, dk, dv, ks = cfg.n_heads, cfg.dim_k, cfg.dim_v, cfg.ksize
    maskf3 = mask_bool.astype(jnp.float32)[..., None]                 # (B, T, 1)
    mask_flat = maskf3.reshape(B * T, 1)
    x = (x + sinusoid_pos(T, D)[None]) * maskf3
    mask_bias = jnp.where(mask_bool, 0.0, -1e9).astype(jnp.float32)[:, None, :]
    scale = 1.0 / math.sqrt(dk)
    aligns = []
    for p in blocks:
        xf = x.reshape(B * T, D)
        qkv = linear_pallas(xf, p["w_qkv"], p["b_qkv"])               # packed Q|K|V
        ctx, attn = attention_pallas(qkv.reshape(B, T, -1), mask_bias, H, dk, dv, scale)
        x = proj_residual_ln_pallas(ctx.reshape(B * T, H * dv), p["wo"], p["bo"],
                                    xf, mask_flat, p["ln1_g"], p["ln1_b"]).reshape(B, T, D)
        x = ffn_pallas(x, maskf3, p["conv1_w"], p["conv1_b"], p["conv2_w"], p["conv2_b"],
                       p["ln2_g"], p["ln2_b"], ks)
        aligns.append(attn)                                           # (B, H, T, T)
    return x, jnp.stack(aligns, axis=1)                               # (B, blocks, H, T, T)


def embed_bucket(vals, bucket_cfg, table):
    idx = jnp.clip(((vals - bucket_cfg.vmin) / (bucket_cfg.vmax - bucket_cfg.vmin)
                    * bucket_cfg.n_bins).astype(jnp.int32), 0, bucket_cfg.n_bins - 1)
    return jnp.take(table, idx, axis=0)


def length_regulate(x, durations, max_len):
    # data-dependent repeat-interleave (left in JAX glue)
    B, T, D = x.shape
    cum = jnp.cumsum(durations, axis=1)                               # (B, T)
    total = cum[:, -1]
    frame = jnp.arange(max_len, dtype=jnp.int32)
    idx = jnp.sum(frame[None, :, None] >= cum[:, None, :], axis=-1)
    idx = jnp.clip(idx, 0, T - 1)
    expanded = jnp.take_along_axis(x, idx[..., None], axis=1)
    dec_mask = frame[None, :] < total[:, None]
    expanded = expanded * dec_mask[..., None].astype(jnp.float32)
    return expanded, dec_mask


def variance_adaptor_forward(va, cfg, x, label_durations, label_pitch, label_energy,
                             input_mask, max_dec_len):
    maskf3 = input_mask.astype(jnp.float32)[..., None]
    preds = variance_predictors_pallas(x, va, maskf3, cfg.va_ksize)   # (B, T, 3)
    dur_p, pitch_p, energy_p = preds[..., 0], preds[..., 1], preds[..., 2]
    # TODO(synk): exact pitch/energy-embedding placement (phoneme vs frame level)
    # in the original VarianceAdaptor is unknown; phoneme-level is used here.
    x = x + embed_bucket(label_pitch, cfg.pitch, va["pitch_emb"])
    x = x + embed_bucket(label_energy, cfg.energy, va["energy_emb"])
    x = x * maskf3
    durations = (label_durations * input_mask).astype(jnp.int32)
    x_exp, dec_mask = length_regulate(x, durations, max_dec_len)
    return x_exp, dur_p, pitch_p, energy_p, dec_mask


@partial(jax.jit, static_argnames=("config", "max_dec_len"))
def fastspeech2_forward(params, batch, input_lengths, label_durations,
                        label_pitch, label_energy, input_mask=None, *,
                        config, max_dec_len):
    B, T_in = batch.shape
    if input_mask is None:
        input_mask = sequence_mask(input_lengths, T_in)
    x = jnp.take(params["symbol_emb"], batch, axis=0)                 # (B, T_in, D)
    x, enc_align = transformer_forward(params["enc_blocks"], config.encoder, x, input_mask)
    x, dur_p, pitch_p, energy_p, dec_mask = variance_adaptor_forward(
        params["va"], config, x, label_durations, label_pitch, label_energy,
        input_mask, max_dec_len)
    x, dec_align = transformer_forward(params["dec_blocks"], config.decoder, x, dec_mask)
    B2, T_dec, D = x.shape
    mels = linear_pallas(x.reshape(B2 * T_dec, D), params["proj_w"],
                         params["proj_b"]).reshape(B2, T_dec, -1)
    # use_postnet=False path
    return mels, mels, dur_p, pitch_p, energy_p, enc_align, dec_align


# --------------------------------- main --------------------------------------

if __name__ == "__main__":
    key = jax.random.PRNGKey(0)
    k_tok, k_dur, k_pitch, k_energy, k_params = jax.random.split(key, 5)

    # small config consistent with the module's constructor
    num_inputs = 40            # vocab size
    num_out_mels = 16
    num_input_channels = 32    # model dim D
    encoder_kernel_size = 3
    encoder_output_channels = 32
    decoder_kernel_size = 3
    decoder_output_channels = 32
    variance_adaptor_kernel_size = 3
    pitch_hparams = {"n_bins": 16, "min": 0.0, "max": 1.0}
    energy_hparams = {"n_bins": 16, "min": 0.0, "max": 1.0}

    B, T_in = 2, 8
    tokens = jax.random.randint(k_tok, (B, T_in), 0, num_inputs, dtype=jnp.int32)
    input_lengths = jnp.array([8, 6], dtype=jnp.int32)
    label_durations = jax.random.randint(k_dur, (B, T_in), 1, 4, dtype=jnp.int32)
    label_pitch = jax.random.uniform(k_pitch, (B, T_in), jnp.float32)
    label_energy = jax.random.uniform(k_energy, (B, T_in), jnp.float32)

    params, config = init_fastspeech2(
        k_params, num_inputs, num_out_mels, num_input_channels,
        encoder_kernel_size, encoder_output_channels,
        decoder_kernel_size, decoder_output_channels,
        variance_adaptor_kernel_size, pitch_hparams, energy_hparams)

    # decoder length computed once, on the host, OUTSIDE the jitted forward
    masked_dur = label_durations * sequence_mask(input_lengths, T_in)
    max_dec_len = int(jnp.max(jnp.sum(masked_dur, axis=1)))

    outs = fastspeech2_forward(params, tokens, input_lengths, label_durations,
                               label_pitch, label_energy,
                               config=config, max_dec_len=max_dec_len)
    mels_post, mels, dur_p, pitch_p, energy_p, enc_align, dec_align = outs
    jax.block_until_ready(mels)
    jax.block_until_ready(dec_align)

    assert mels.shape == (B, max_dec_len, num_out_mels)
    assert dur_p.shape == (B, T_in) and pitch_p.shape == (B, T_in)
    assert enc_align.shape == (B, 4, 2, T_in, T_in)
    assert dec_align.shape == (B, 4, 2, max_dec_len, max_dec_len)
    print("KERNEL_OK")
</pallas_src>

<mosaic_0001>
module attributes {stable_mosaic.version = 11 : i64} {
  func.func @_linear_kernel(%arg0: i32, %arg1: memref<16x32xf32, #tpu.memory_space<vmem>>, %arg2: memref<32x384xbf16, #tpu.memory_space<vmem>>, %arg3: memref<1x384xf32, #tpu.memory_space<vmem>>, %arg4: memref<16x384xf32, #tpu.memory_space<vmem>>) attributes {dimension_semantics = [#tpu.dimension_semantics<parallel>], iteration_bounds = array<i64: 1>, scalar_prefetch = 0 : i64, scratch_operands = 0 : i64, tpu.core_type = #tpu.core_type<tc>, window_params = [{transform_indices = @transform_0, window_bounds = array<i64: 16, 32>}, {pipeline_mode = #tpu.pipeline_mode<synchronous>, transform_indices = @transform_1, window_bounds = array<i64: 32, 384>}, {pipeline_mode = #tpu.pipeline_mode<synchronous>, transform_indices = @transform_2, window_bounds = array<i64: 1, 384>}, {transform_indices = @transform_3, window_bounds = array<i64: 16, 384>}]} {
    %c0 = arith.constant 0 : index
    %c0_0 = arith.constant 0 : index
    %0 = vector.load %arg1[%c0, %c0_0] : memref<16x32xf32, #tpu.memory_space<vmem>>, vector<16x32xf32>
    %1 = arith.truncf %0 : vector<16x32xf32> to vector<16x32xbf16>
    %c0_1 = arith.constant 0 : index
    %c0_2 = arith.constant 0 : index
    %2 = vector.load %arg2[%c0_1, %c0_2] : memref<32x384xbf16, #tpu.memory_space<vmem>>, vector<32x384xbf16>
    %cst = arith.constant dense<0.000000e+00> : vector<16x384xf32>
    %3 = tpu.matmul %1, %2, %cst {dimension_numbers = #tpu.dot_dimension_numbers<[1], [0], [0], [1], [0, 0, 1, 1], [], []>} : vector<16x32xbf16>, vector<32x384xbf16>, vector<16x384xf32> -> vector<16x384xf32>
    %c0_3 = arith.constant 0 : index
    %c0_4 = arith.constant 0 : index
    %4 = vector.load %arg3[%c0_3, %c0_4] : memref<1x384xf32, #tpu.memory_space<vmem>>, vector<1x384xf32>
    %5 = vector.broadcast %4 : vector<1x384xf32> to vector<16x384xf32>
    %6 = arith.addf %3, %5 : vector<16x384xf32>
    %c0_5 = arith.constant 0 : index
    %c0_6 = arith.constant 0 : index
    %7 = vector.load %arg4[%c0_5, %c0_6] : memref<16x384xf32, #tpu.memory_space<vmem>>, vector<16x384xf32>
    tpu.vector_store %arg4[%c0_5, %c0_6], %6 {strides = array<i32>} : memref<16x384xf32, #tpu.memory_space<vmem>>, vector<16x384xf32>,
    return
  }
  func.func @transform_0(%arg0: i32) -> (i32, i32) {
    %c0_i32 = arith.constant 0 : i32
    %c0_i32_0 = arith.constant 0 : i32
    return %arg0, %c0_i32 : i32, i32
  }
  func.func @transform_1(%arg0: i32) -> (i32, i32) {
    %c0_i32 = arith.constant 0 : i32
    %c0_i32_0 = arith.constant 0 : i32
    %c0_i32_1 = arith.constant 0 : i32
    return %c0_i32, %c0_i32_0 : i32, i32
  }
  func.func @transform_2(%arg0: i32) -> (i32, i32) {
    %c0_i32 = arith.constant 0 : i32
    %c0_i32_0 = arith.constant 0 : i32
    %c0_i32_1 = arith.constant 0 : i32
    return %c0_i32, %c0_i32_0 : i32, i32
  }
  func.func @transform_3(%arg0: i32) -> (i32, i32) {
    %c0_i32 = arith.constant 0 : i32
    %c0_i32_0 = arith.constant 0 : i32
    return %arg0, %c0_i32 : i32, i32
  }
}

module attributes {stable_mosaic.version = 11 : i64} {
  func.func @_attention_kernel(%arg0: i32, %arg1: memref<1x8x384xf32, #tpu.memory_space<vmem>>, %arg2: memref<1x1x8xf32, #tpu.memory_space<vmem>>, %arg3: memref<1x8x128xf32, #tpu.memory_space<vmem>>, %arg4: memref<1x2x8x8xf32, #tpu.memory_space<vmem>>) attributes {dimension_semantics = [#tpu.dimension_semantics<parallel>], iteration_bounds = array<i64: 2>, scalar_prefetch = 0 : i64, scratch_operands = 0 : i64, tpu.core_type = #tpu.core_type<tc>, window_params = [{transform_indices = @transform_0, window_bounds = array<i64: 1, 8, 384>}, {transform_indices = @transform_1, window_bounds = array<i64: 1, 1, 8>}, {transform_indices = @transform_2, window_bounds = array<i64: 1, 8, 128>}, {transform_indices = @transform_3, window_bounds = array<i64: 1, 2, 8, 8>}]} {
    %c0 = arith.constant 0 : index
    %c0_0 = arith.constant 0 : index
    %c0_1 = arith.constant 0 : index
    %0 = vector.load %arg2[%c0, %c0_0, %c0_1] : memref<1x1x8xf32, #tpu.memory_space<vmem>>, vector<1x1x8xf32>
    %1 = vector.shape_cast %0 : vector<1x1x8xf32> to vector<1x8xf32>
    %c0_2 = arith.constant 0 : index
    %c0_3 = arith.constant 0 : index
    %c0_4 = arith.constant 0 : index
    %2 = vector.load %arg1[%c0_2, %c0_3, %c0_4] : memref<1x8x384xf32, #tpu.memory_space<vmem>>, vector<1x8x64xf32>
    %3 = vector.shape_cast %2 : vector<1x8x64xf32> to vector<8x64xf32>
    %4 = arith.truncf %3 : vector<8x64xf32> to vector<8x64xbf16>
    %c0_5 = arith.constant 0 : index
    %c0_6 = arith.constant 0 : index
    %c128 = arith.constant 128 : index
    %5 = vector.load %arg1[%c0_5, %c0_6, %c128] : memref<1x8x384xf32, #tpu.memory_space<vmem>>, vector<1x8x64xf32>
    %6 = vector.shape_cast %5 : vector<1x8x64xf32> to vector<8x64xf32>
    %7 = arith.truncf %6 : vector<8x64xf32> to vector<8x64xbf16>
    %c0_7 = arith.constant 0 : index
    %c0_8 = arith.constant 0 : index
    %c256 = arith.constant 256 : index
    %8 = vector.load %arg1[%c0_7, %c0_8, %c256] : memref<1x8x384xf32, #tpu.memory_space<vmem>>, vector<1x8x64xf32>
    %9 = vector.shape_cast %8 : vector<1x8x64xf32> to vector<8x64xf32>
    %10 = arith.truncf %9 : vector<8x64xf32> to vector<8x64xbf16>
    %cst = arith.constant dense<0.000000e+00> : vector<8x8xf32>
    %11 = tpu.matmul %4, %7, %cst {dimension_numbers = #tpu.dot_dimension_numbers<[1], [1], [0], [0], [0, 0, 1, 0], [], []>} : vector<8x64xbf16>, vector<8x64xbf16>, vector<8x8xf32> -> vector<8x8xf32>
    %cst_9 = arith.constant 1.250000e-01 : f32
    %12 = vector.broadcast %cst_9 : f32 to vector<8x8xf32>
    %13 = arith.mulf %11, %12 : vector<8x8xf32>
    %14 = vector.broadcast %1 : vector<1x8xf32> to vector<8x8xf32>
    %15 = arith.addf %13, %14 : vector<8x8xf32>
    %cst_10 = arith.constant dense<0xFF800000> : vector<8xf32>
    %16 = vector.multi_reduction <maximumf>, %15, %cst_10 [1] : vector<8x8xf32> to vector<8xf32>
    %17 = vector.shape_cast %16 : vector<8xf32> to vector<8x1xf32>
    %18 = vector.broadcast %17 : vector<8x1xf32> to vector<8x8xf32>
    %19 = arith.subf %15, %18 : vector<8x8xf32>
    %20 = math.exp %19 : vector<8x8xf32>
    %cst_11 = arith.constant dense<0.000000e+00> : vector<8xf32>
    %21 = vector.multi_reduction <add>, %20, %cst_11 [1] : vector<8x8xf32> to vector<8xf32>
    %22 = vector.shape_cast %21 : vector<8xf32> to vector<8x1xf32>
    %23 = tpu.reciprocal %22 {approx = true} : vector<8x1xf32> -> vector<8x1xf32>
    %24 = vector.broadcast %23 : vector<8x1xf32> to vector<8x8xf32>
    %25 = arith.mulf %20, %24 : vector<8x8xf32>
    %c0_12 = arith.constant 0 : index
    %c0_13 = arith.constant 0 : index
    %c0_14 = arith.constant 0 : index
    %c0_15 = arith.constant 0 : index
    %26 = vector.load %arg4[%c0_12, %c0_13, %c0_14, %c0_15] : memref<1x2x8x8xf32, #tpu.memory_space<vmem>>, vector<1x1x8x8xf32>
    %27 = vector.shape_cast %26 : vector<1x1x8x8xf32> to vector<8x8xf32>
    %28 = vector.shape_cast %25 : vector<8x8xf32> to vector<1x1x8x8xf32>
    tpu.vector_store %arg4[%c0_12, %c0_13, %c0_14, %c0_15], %28 {strides = array<i32>} : memref<1x2x8x8xf32, #tpu.memory_space<vmem>>, vector<1x1x8x8xf32>,
    %29 = arith.truncf %25 : vector<8x8xf32> to vector<8x8xbf16>
    %cst_16 = arith.constant dense<0.000000e+00> : vector<8x64xf32>
    %30 = tpu.matmul %29, %10, %cst_16 {dimension_numbers = #tpu.dot_dimension_numbers<[1], [0], [0], [1], [0, 0, 1, 1], [], []>} : vector<8x8xbf16>, vector<8x64xbf16>, vector<8x64xf32> -> vector<8x64xf32>
    %c0_17 = arith.constant 0 : index
    %c0_18 = arith.constant 0 : index
    %c0_19 = arith.constant 0 : index
    %31 = vector.load %arg3[%c0_17, %c0_18, %c0_19] : memref<1x8x128xf32, #tpu.memory_space<vmem>>, vector<1x8x64xf32>
    %32 = vector.shape_cast %31 : vector<1x8x64xf32> to vector<8x64xf32>
    %33 = vector.shape_cast %30 : vector<8x64xf32> to vector<1x8x64xf32>
    tpu.vector_store %arg3[%c0_17, %c0_18, %c0_19], %33 {strides = array<i32>} : memref<1x8x128xf32, #tpu.memory_space<vmem>>, vector<1x8x64xf32>,
    %c0_20 = arith.constant 0 : index
    %c0_21 = arith.constant 0 : index
    %c64 = arith.constant 64 : index
    %34 = vector.load %arg1[%c0_20, %c0_21, %c64] : memref<1x8x384xf32, #tpu.memory_space<vmem>>, vector<1x8x64xf32>
    %35 = vector.shape_cast %34 : vector<1x8x64xf32> to vector<8x64xf32>
    %36 = arith.truncf %35 : vector<8x64xf32> to vector<8x64xbf16>
    %c0_22 = arith.constant 0 : index
    %c0_23 = arith.constant 0 : index
    %c192 = arith.constant 192 : index
    %37 = vector.load %arg1[%c0_22, %c0_23, %c192] : memref<1x8x384xf32, #tpu.memory_space<vmem>>, vector<1x8x64xf32>
    %38 = vector.shape_cast %37 : vector<1x8x64xf32> to vector<8x64xf32>
    %39 = arith.truncf %38 : vector<8x64xf32> to vector<8x64xbf16>
    %c0_24 = arith.constant 0 : index
    %c0_25 = arith.constant 0 : index
    %c320 = arith.constant 320 : index
    %40 = vector.load %arg1[%c0_24, %c0_25, %c320] : memref<1x8x384xf32, #tpu.memory_space<vmem>>, vector<1x8x64xf32>
    %41 = vector.shape_cast %40 : vector<1x8x64xf32> to vector<8x64xf32>
    %42 = arith.truncf %41 : vector<8x64xf32> to vector<8x64xbf16>
    %cst_26 = arith.constant dense<0.000000e+00> : vector<8x8xf32>
    %43 = tpu.matmul %36, %39, %cst_26 {dimension_numbers = #tpu.dot_dimension_numbers<[1], [1], [0], [0], [0, 0, 1, 0], [], []>} : vector<8x64xbf16>, vector<8x64xbf16>, vector<8x8xf32> -> vector<8x8xf32>
    %cst_27 = arith.constant 1.250000e-01 : f32
    %44 = vector.broadcast %cst_27 : f32 to vector<8x8xf32>
    %45 = arith.mulf %43, %44 : vector<8x8xf32>
    %46 = vector.broadcast %1 : vector<1x8xf32> to vector<8x8xf32>
    %47 = arith.addf %45, %46 : vector<8x8xf32>
    %cst_28 = arith.constant dense<0xFF800000> : vector<8xf32>
    %48 = vector.multi_reduction <maximumf>, %47, %cst_28 [1] : vector<8x8xf32> to vector<8xf32>
    %49 = vector.shape_cast %48 : vector<8xf32> to vector<8x1xf32>
    %50 = vector.broadcast %49 : vector<8x1xf32> to vector<8x8xf32>
    %51 = arith.subf %47, %50 : vector<8x8xf32>
    %52 = math.exp %51 : vector<8x8xf32>
    %cst_29 = arith.constant dense<0.000000e+00> : vector<8xf32>
    %53 = vector.multi_reduction <add>, %52, %cst_29 [1] : vector<8x8xf32> to vector<8xf32>
    %54 = vector.shape_cast %53 : vector<8xf32> to vector<8x1xf32>
    %55 = tpu.reciprocal %54 {approx = true} : vector<8x1xf32> -> vector<8x1xf32>
    %56 = vector.broadcast %55 : vector<8x1xf32> to vector<8x8xf32>
    %57 = arith.mulf %52, %56 : vector<8x8xf32>
    %c0_30 = arith.constant 0 : index
    %c1 = arith.constant 1 : index
    %c0_31 = arith.constant 0 : index
    %c0_32 = arith.constant 0 : index
    %58 = vector.load %arg4[%c0_30, %c1, %c0_31, %c0_32] : memref<1x2x8x8xf32, #tpu.memory_space<vmem>>, vector<1x1x8x8xf32>
    %59 = vector.shape_cast %58 : vector<1x1x8x8xf32> to vector<8x8xf32>
    %60 = vector.shape_cast %57 : vector<8x8xf32> to vector<1x1x8x8xf32>
    tpu.vector_store %arg4[%c0_30, %c1, %c0_31, %c0_32], %60 {strides = array<i32>} : memref<1x2x8x8xf32, #tpu.memory_space<vmem>>, vector<1x1x8x8xf32>,
    %61 = arith.truncf %57 : vector<8x8xf32> to vector<8x8xbf16>
    %cst_33 = arith.constant dense<0.000000e+00> : vector<8x64xf32>
    %62 = tpu.matmul %61, %42, %cst_33 {dimension_numbers = #tpu.dot_dimension_numbers<[1], [0], [0], [1], [0, 0, 1, 1], [], []>} : vector<8x8xbf16>, vector<8x64xbf16>, vector<8x64xf32> -> vector<8x64xf32>
    %c0_34 = arith.constant 0 : index
    %c0_35 = arith.constant 0 : index
    %c64_36 = arith.constant 64 : index
    %63 = vector.load %arg3[%c0_34, %c0_35, %c64_36] : memref<1x8x128xf32, #tpu.memory_space<vmem>>, vector<1x8x64xf32>
    %64 = vector.shape_cast %63 : vector<1x8x64xf32> to vector<8x64xf32>
    %65 = vector.shape_cast %62 : vector<8x64xf32> to vector<1x8x64xf32>
    tpu.vector_store %arg3[%c0_34, %c0_35, %c64_36], %65 {strides = array<i32>} : memref<1x8x128xf32, #tpu.memory_space<vmem>>, vector<1x8x64xf32>,
    return
  }
  func.func @transform_0(%arg0: i32) -> (i32, i32, i32) {
    %c0_i32 = arith.constant 0 : i32
    %c0_i32_0 = arith.constant 0 : i32
    %c0_i32_1 = arith.constant 0 : i32
    return %arg0, %c0_i32, %c0_i32_0 : i32, i32, i32
  }
  func.func @transform_1(%arg0: i32) -> (i32, i32, i32) {
    %c0_i32 = arith.constant 0 : i32
    %c0_i32_0 = arith.constant 0 : i32
    %c0_i32_1 = arith.constant 0 : i32
    return %arg0, %c0_i32, %c0_i32_0 : i32, i32, i32
  }
  func.func @transform_2(%arg0: i32) -> (i32, i32, i32) {
    %c0_i32 = arith.constant 0 : i32
    %c0_i32_0 = arith.constant 0 : i32
    %c0_i32_1 = arith.constant 0 : i32
    return %arg0, %c0_i32, %c0_i32_0 : i32, i32, i32
  }
  func.func @transform_3(%arg0: i32) -> (i32, i32, i32, i32) {
    %c0_i32 = arith.constant 0 : i32
    %c0_i32_0 = arith.constant 0 : i32
    %c0_i32_1 = arith.constant 0 : i32
    %c0_i32_2 = arith.constant 0 : i32
    return %arg0, %c0_i32, %c0_i32_0, %c0_i32_1 : i32, i32, i32, i32
  }
}

module attributes {stable_mosaic.version = 11 : i64} {
  func.func @_proj_res_ln_kernel(%arg0: i32, %arg1: memref<16x128xf32, #tpu.memory_space<vmem>>, %arg2: memref<128x32xbf16, #tpu.memory_space<vmem>>, %arg3: memref<1x32xf32, #tpu.memory_space<vmem>>, %arg4: memref<16x32xf32, #tpu.memory_space<vmem>>, %arg5: memref<16x1xf32, #tpu.memory_space<vmem>>, %arg6: memref<1x32xf32, #tpu.memory_space<vmem>>, %arg7: memref<1x32xf32, #tpu.memory_space<vmem>>, %arg8: memref<16x32xf32, #tpu.memory_space<vmem>>) attributes {dimension_semantics = [#tpu.dimension_semantics<parallel>], iteration_bounds = array<i64: 1>, scalar_prefetch = 0 : i64, scratch_operands = 0 : i64, tpu.core_type = #tpu.core_type<tc>, window_params = [{transform_indices = @transform_0, window_bounds = array<i64: 16, 128>}, {pipeline_mode = #tpu.pipeline_mode<synchronous>, transform_indices = @transform_1, window_bounds = array<i64: 128, 32>}, {pipeline_mode = #tpu.pipeline_mode<synchronous>, transform_indices = @transform_2, window_bounds = array<i64: 1, 32>}, {transform_indices = @transform_3, window_bounds = array<i64: 16, 32>}, {transform_indices = @transform_4, window_bounds = array<i64: 16, 1>}, {pipeline_mode = #tpu.pipeline_mode<synchronous>, transform_indices = @transform_5, window_bounds = array<i64: 1, 32>}, {pipeline_mode = #tpu.pipeline_mode<synchronous>, transform_indices = @transform_6, window_bounds = array<i64: 1, 32>}, {transform_indices = @transform_7, window_bounds = array<i64: 16, 32>}]} {
    %c0 = arith.constant 0 : index
    %c0_0 = arith.constant 0 : index
    %0 = vector.load %arg1[%c0, %c0_0] : memref<16x128xf32, #tpu.memory_space<vmem>>, vector<16x128xf32>
    %1 = arith.truncf %0 : vector<16x128xf32> to vector<16x128xbf16>
    %c0_1 = arith.constant 0 : index
    %c0_2 = arith.constant 0 : index
    %2 = vector.load %arg2[%c0_1, %c0_2] : memref<128x32xbf16, #tpu.memory_space<vmem>>, vector<128x32xbf16>
    %cst = arith.constant dense<0.000000e+00> : vector<16x32xf32>
    %3 = tpu.matmul %1, %2, %cst {dimension_numbers = #tpu.dot_dimension_numbers<[1], [0], [0], [1], [0, 0, 1, 1], [], []>} : vector<16x128xbf16>, vector<128x32xbf16>, vector<16x32xf32> -> vector<16x32xf32>
    %c0_3 = arith.constant 0 : index
    %c0_4 = arith.constant 0 : index
    %4 = vector.load %arg3[%c0_3, %c0_4] : memref<1x32xf32, #tpu.memory_space<vmem>>, vector<1x32xf32>
    %5 = vector.broadcast %4 : vector<1x32xf32> to vector<16x32xf32>
    %6 = arith.addf %3, %5 : vector<16x32xf32>
    %c0_5 = arith.constant 0 : index
    %c0_6 = arith.constant 0 : index
    %7 = vector.load %arg4[%c0_5, %c0_6] : memref<16x32xf32, #tpu.memory_space<vmem>>, vector<16x32xf32>
    %8 = arith.addf %6, %7 : vector<16x32xf32>
    %cst_7 = arith.constant dense<0.000000e+00> : vector<16xf32>
    %9 = vector.multi_reduction <add>, %8, %cst_7 [1] : vector<16x32xf32> to vector<16xf32>
    %10 = vector.shape_cast %9 : vector<16xf32> to vector<16x1xf32>
    %cst_8 = arith.constant 3.200000e+01 : f32
    %11 = vector.broadcast %cst_8 : f32 to vector<16x1xf32>
    %12 = arith.divf %10, %11 : vector<16x1xf32>
    %13 = vector.broadcast %12 : vector<16x1xf32> to vector<16x32xf32>
    %14 = arith.subf %8, %13 : vector<16x32xf32>
    %15 = arith.mulf %14, %14 : vector<16x32xf32>
    %cst_9 = arith.constant dense<0.000000e+00> : vector<16xf32>
    %16 = vector.multi_reduction <add>, %15, %cst_9 [1] : vector<16x32xf32> to vector<16xf32>
    %17 = vector.shape_cast %16 : vector<16xf32> to vector<16x1xf32>
    %cst_10 = arith.constant 3.200000e+01 : f32
    %18 = vector.broadcast %cst_10 : f32 to vector<16x1xf32>
    %19 = arith.divf %17, %18 : vector<16x1xf32>
    %20 = vector.broadcast %12 : vector<16x1xf32> to vector<16x32xf32>
    %21 = arith.subf %8, %20 : vector<16x32xf32>
    %cst_11 = arith.constant 9.99999974E-6 : f32
    %22 = vector.broadcast %cst_11 : f32 to vector<16x1xf32>
    %23 = arith.addf %19, %22 : vector<16x1xf32>
    %24 = math.rsqrt %23 : vector<16x1xf32>
    %25 = vector.broadcast %24 : vector<16x1xf32> to vector<16x32xf32>
    %26 = arith.mulf %21, %25 : vector<16x32xf32>
    %c0_12 = arith.constant 0 : index
    %c0_13 = arith.constant 0 : index
    %27 = vector.load %arg6[%c0_12, %c0_13] : memref<1x32xf32, #tpu.memory_space<vmem>>, vector<1x32xf32>
    %28 = vector.broadcast %27 : vector<1x32xf32> to vector<16x32xf32>
    %29 = arith.mulf %26, %28 : vector<16x32xf32>
    %c0_14 = arith.constant 0 : index
    %c0_15 = arith.constant 0 : index
    %30 = vector.load %arg7[%c0_14, %c0_15] : memref<1x32xf32, #tpu.memory_space<vmem>>, vector<1x32xf32>
    %31 = vector.broadcast %30 : vector<1x32xf32> to vector<16x32xf32>
    %32 = arith.addf %29, %31 : vector<16x32xf32>
    %c0_16 = arith.constant 0 : index
    %c0_17 = arith.constant 0 : index
    %33 = vector.load %arg5[%c0_16, %c0_17] : memref<16x1xf32, #tpu.memory_space<vmem>>, vector<16x1xf32>
    %34 = vector.broadcast %33 : vector<16x1xf32> to vector<16x32xf32>
    %35 = arith.mulf %32, %34 : vector<16x32xf32>
    %c0_18 = arith.constant 0 : index
    %c0_19 = arith.constant 0 : index
    %36 = vector.load %arg8[%c0_18, %c0_19] : memref<16x32xf32, #tpu.memory_space<vmem>>, vector<16x32xf32>
    tpu.vector_store %arg8[%c0_18, %c0_19], %35 {strides = array<i32>} : memref<16x32xf32, #tpu.memory_space<vmem>>, vector<16x32xf32>,
    return
  }
  func.func @transform_0(%arg0: i32) -> (i32, i32) {
    %c0_i32 = arith.constant 0 : i32
    %c0_i32_0 = arith.constant 0 : i32
    return %arg0, %c0_i32 : i32, i32
  }
  func.func @transform_1(%arg0: i32) -> (i32, i32) {
    %c0_i32 = arith.constant 0 : i32
    %c0_i32_0 = arith.constant 0 : i32
    %c0_i32_1 = arith.constant 0 : i32
    return %c0_i32, %c0_i32_0 : i32, i32
  }
  func.func @transform_2(%arg0: i32) -> (i32, i32) {
    %c0_i32 = arith.constant 0 : i32
    %c0_i32_0 = arith.constant 0 : i32
    %c0_i32_1 = arith.constant 0 : i32
    return %c0_i32, %c0_i32_0 : i32, i32
  }
  func.func @transform_3(%arg0: i32) -> (i32, i32) {
    %c0_i32 = arith.constant 0 : i32
    %c0_i32_0 = arith.constant 0 : i32
    return %arg0, %c0_i32 : i32, i32
  }
  func.func @transform_4(%arg0: i32) -> (i32, i32) {
    %c0_i32 = arith.constant 0 : i32
    %c0_i32_0 = arith.constant 0 : i32
    return %arg0, %c0_i32 : i32, i32
  }
  func.func @transform_5(%arg0: i32) -> (i32, i32) {
    %c0_i32 = arith.constant 0 : i32
    %c0_i32_0 = arith.constant 0 : i32
    %c0_i32_1 = arith.constant 0 : i32
    return %c0_i32, %c0_i32_0 : i32, i32
  }
  func.func @transform_6(%arg0: i32) -> (i32, i32) {
    %c0_i32 = arith.constant 0 : i32
    %c0_i32_0 = arith.constant 0 : i32
    %c0_i32_1 = arith.constant 0 : i32
    return %c0_i32, %c0_i32_0 : i32, i32
  }
  func.func @transform_7(%arg0: i32) -> (i32, i32) {
    %c0_i32 = arith.constant 0 : i32
    %c0_i32_0 = arith.constant 0 : i32
    return %arg0, %c0_i32 : i32, i32
  }
}

module attributes {stable_mosaic.version = 11 : i64} {
  func.func @_ffn_kernel(%arg0: i32, %arg1: memref<1x10x32xf32, #tpu.memory_space<vmem>>, %arg2: memref<3x32x32xbf16, #tpu.memory_space<vmem>>, %arg3: memref<1x32xf32, #tpu.memory_space<vmem>>, %arg4: memref<3x32x32xbf16, #tpu.memory_space<vmem>>, %arg5: memref<1x32xf32, #tpu.memory_space<vmem>>, %arg6: memref<1x32xf32, #tpu.memory_space<vmem>>, %arg7: memref<1x32xf32, #tpu.memory_space<vmem>>, %arg8: memref<1x8x1xf32, #tpu.memory_space<vmem>>, %arg9: memref<1x8x32xf32, #tpu.memory_space<vmem>>, %arg10: memref<10x32xf32, #tpu.memory_space<vmem>>) attributes {dimension_semantics = [#tpu.dimension_semantics<parallel>], iteration_bounds = array<i64: 2>, scalar_prefetch = 0 : i64, scratch_operands = 1 : i64, tpu.core_type = #tpu.core_type<tc>, window_params = [{transform_indices = @transform_0, window_bounds = array<i64: 1, 10, 32>}, {pipeline_mode = #tpu.pipeline_mode<synchronous>, transform_indices = @transform_1, window_bounds = array<i64: 3, 32, 32>}, {pipeline_mode = #tpu.pipeline_mode<synchronous>, transform_indices = @transform_2, window_bounds = array<i64: 1, 32>}, {pipeline_mode = #tpu.pipeline_mode<synchronous>, transform_indices = @transform_3, window_bounds = array<i64: 3, 32, 32>}, {pipeline_mode = #tpu.pipeline_mode<synchronous>, transform_indices = @transform_4, window_bounds = array<i64: 1, 32>}, {pipeline_mode = #tpu.pipeline_mode<synchronous>, transform_indices = @transform_5, window_bounds = array<i64: 1, 32>}, {pipeline_mode = #tpu.pipeline_mode<synchronous>, transform_indices = @transform_6, window_bounds = array<i64: 1, 32>}, {transform_indices = @transform_7, window_bounds = array<i64: 1, 8, 1>}, {transform_indices = @transform_8, window_bounds = array<i64: 1, 8, 32>}]} {
    %c0 = arith.constant 0 : index
    %c1 = arith.constant 1 : index
    %c0_0 = arith.constant 0 : index
    %0 = vector.load %arg1[%c0, %c1, %c0_0] : memref<1x10x32xf32, #tpu.memory_space<vmem>>, vector<1x8x32xf32>
    %1 = vector.shape_cast %0 : vector<1x8x32xf32> to vector<8x32xf32>
    %cst = arith.constant 0.000000e+00 : f32
    %2 = vector.broadcast %cst : f32 to vector<8x32xf32>
    %c0_1 = arith.constant 0 : index
    %c0_2 = arith.constant 0 : index
    %c0_3 = arith.constant 0 : index
    %3 = vector.load %arg1[%c0_1, %c0_2, %c0_3] : memref<1x10x32xf32, #tpu.memory_space<vmem>>, vector<1x8x32xf32>
    %4 = vector.shape_cast %3 : vector<1x8x32xf32> to vector<8x32xf32>
    %5 = arith.truncf %4 : vector<8x32xf32> to vector<8x32xbf16>
    %c0_4 = arith.constant 0 : index
    %c0_5 = arith.constant 0 : index
    %c0_6 = arith.constant 0 : index
    %6 = vector.load %arg2[%c0_4, %c0_5, %c0_6] : memref<3x32x32xbf16, #tpu.memory_space<vmem>>, vector<1x32x32xbf16>
    %7 = vector.shape_cast %6 : vector<1x32x32xbf16> to vector<32x32xbf16>
    %cst_7 = arith.constant dense<0.000000e+00> : vector<8x32xf32>
    %8 = tpu.matmul %5, %7, %cst_7 {dimension_numbers = #tpu.dot_dimension_numbers<[1], [0], [0], [1], [0, 0, 1, 1], [], []>} : vector<8x32xbf16>, vector<32x32xbf16>, vector<8x32xf32> -> vector<8x32xf32>
    %9 = arith.addf %2, %8 : vector<8x32xf32>
    %c0_8 = arith.constant 0 : index
    %c1_9 = arith.constant 1 : index
    %c0_10 = arith.constant 0 : index
    %10 = vector.load %arg1[%c0_8, %c1_9, %c0_10] : memref<1x10x32xf32, #tpu.memory_space<vmem>>, vector<1x8x32xf32>
    %11 = vector.shape_cast %10 : vector<1x8x32xf32> to vector<8x32xf32>
    %12 = arith.truncf %11 : vector<8x32xf32> to vector<8x32xbf16>
    %c1_11 = arith.constant 1 : index
    %c0_12 = arith.constant 0 : index
    %c0_13 = arith.constant 0 : index
    %13 = vector.load %arg2[%c1_11, %c0_12, %c0_13] : memref<3x32x32xbf16, #tpu.memory_space<vmem>>, vector<1x32x32xbf16>
    %14 = vector.shape_cast %13 : vector<1x32x32xbf16> to vector<32x32xbf16>
    %cst_14 = arith.constant dense<0.000000e+00> : vector<8x32xf32>
    %15 = tpu.matmul %12, %14, %cst_14 {dimension_numbers = #tpu.dot_dimension_numbers<[1], [0], [0], [1], [0, 0, 1, 1], [], []>} : vector<8x32xbf16>, vector<32x32xbf16>, vector<8x32xf32> -> vector<8x32xf32>
    %16 = arith.addf %9, %15 : vector<8x32xf32>
    %c0_15 = arith.constant 0 : index
    %c2 = arith.constant 2 : index
    %c0_16 = arith.constant 0 : index
    %17 = vector.load %arg1[%c0_15, %c2, %c0_16] : memref<1x10x32xf32, #tpu.memory_space<vmem>>, vector<1x8x32xf32>
    %18 = vector.shape_cast %17 : vector<1x8x32xf32> to vector<8x32xf32>
    %19 = arith.truncf %18 : vector<8x32xf32> to vector<8x32xbf16>
    %c2_17 = arith.constant 2 : index
    %c0_18 = arith.constant 0 : index
    %c0_19 = arith.constant 0 : index
    %20 = vector.load %arg2[%c2_17, %c0_18, %c0_19] : memref<3x32x32xbf16, #tpu.memory_space<vmem>>, vector<1x32x32xbf16>
    %21 = vector.shape_cast %20 : vector<1x32x32xbf16> to vector<32x32xbf16>
    %cst_20 = arith.constant dense<0.000000e+00> : vector<8x32xf32>
    %22 = tpu.matmul %19, %21, %cst_20 {dimension_numbers = #tpu.dot_dimension_numbers<[1], [0], [0], [1], [0, 0, 1, 1], [], []>} : vector<8x32xbf16>, vector<32x32xbf16>, vector<8x32xf32> -> vector<8x32xf32>
    %23 = arith.addf %16, %22 : vector<8x32xf32>
    %c0_21 = arith.constant 0 : index
    %c0_22 = arith.constant 0 : index
    %24 = vector.load %arg3[%c0_21, %c0_22] : memref<1x32xf32, #tpu.memory_space<vmem>>, vector<1x32xf32>
    %25 = vector.broadcast %24 : vector<1x32xf32> to vector<8x32xf32>
    %26 = arith.addf %23, %25 : vector<8x32xf32>
    %cst_23 = arith.constant 0.000000e+00 : f32
    %27 = vector.broadcast %cst_23 : f32 to vector<8x32xf32>
    %28 = arith.maximumf %26, %27 : vector<8x32xf32>
    %cst_24 = arith.constant 0.000000e+00 : f32
    %29 = vector.broadcast %cst_24 : f32 to vector<10x32xf32>
    %c0_25 = arith.constant 0 : index
    %c0_26 = arith.constant 0 : index
    %30 = vector.load %arg10[%c0_25, %c0_26] : memref<10x32xf32, #tpu.memory_space<vmem>>, vector<10x32xf32>
    tpu.vector_store %arg10[%c0_25, %c0_26], %29 {strides = array<i32>} : memref<10x32xf32, #tpu.memory_space<vmem>>, vector<10x32xf32>,
    %c1_27 = arith.constant 1 : index
    %c0_28 = arith.constant 0 : index
    %31 = vector.load %arg10[%c1_27, %c0_28] : memref<10x32xf32, #tpu.memory_space<vmem>>, vector<8x32xf32>
    tpu.vector_store %arg10[%c1_27, %c0_28], %28 {strides = array<i32>} : memref<10x32xf32, #tpu.memory_space<vmem>>, vector<8x32xf32>,
    %cst_29 = arith.constant 0.000000e+00 : f32
    %32 = vector.broadcast %cst_29 : f32 to vector<8x32xf32>
    %c0_30 = arith.constant 0 : index
    %c0_31 = arith.constant 0 : index
    %33 = vector.load %arg10[%c0_30, %c0_31] : memref<10x32xf32, #tpu.memory_space<vmem>>, vector<8x32xf32>
    %34 = arith.truncf %33 : vector<8x32xf32> to vector<8x32xbf16>
    %c0_32 = arith.constant 0 : index
    %c0_33 = arith.constant 0 : index
    %c0_34 = arith.constant 0 : index
    %35 = vector.load %arg4[%c0_32, %c0_33, %c0_34] : memref<3x32x32xbf16, #tpu.memory_space<vmem>>, vector<1x32x32xbf16>
    %36 = vector.shape_cast %35 : vector<1x32x32xbf16> to vector<32x32xbf16>
    %cst_35 = arith.constant dense<0.000000e+00> : vector<8x32xf32>
    %37 = tpu.matmul %34, %36, %cst_35 {dimension_numbers = #tpu.dot_dimension_numbers<[1], [0], [0], [1], [0, 0, 1, 1], [], []>} : vector<8x32xbf16>, vector<32x32xbf16>, vector<8x32xf32> -> vector<8x32xf32>
    %38 = arith.addf %32, %37 : vector<8x32xf32>
    %c1_36 = arith.constant 1 : index
    %c0_37 = arith.constant 0 : index
    %39 = vector.load %arg10[%c1_36, %c0_37] : memref<10x32xf32, #tpu.memory_space<vmem>>, vector<8x32xf32>
    %40 = arith.truncf %39 : vector<8x32xf32> to vector<8x32xbf16>
    %c1_38 = arith.constant 1 : index
    %c0_39 = arith.constant 0 : index
    %c0_40 = arith.constant 0 : index
    %41 = vector.load %arg4[%c1_38, %c0_39, %c0_40] : memref<3x32x32xbf16, #tpu.memory_space<vmem>>, vector<1x32x32xbf16>
    %42 = vector.shape_cast %41 : vector<1x32x32xbf16> to vector<32x32xbf16>
    %cst_41 = arith.constant dense<0.000000e+00> : vector<8x32xf32>
    %43 = tpu.matmul %40, %42, %cst_41 {dimension_numbers = #tpu.dot_dimension_numbers<[1], [0], [0], [1], [0, 0, 1, 1], [], []>} : vector<8x32xbf16>, vector<32x32xbf16>, vector<8x32xf32> -> vector<8x32xf32>
    %44 = arith.addf %38, %43 : vector<8x32xf32>
    %c2_42 = arith.constant 2 : index
    %c0_43 = arith.constant 0 : index
    %45 = vector.load %arg10[%c2_42, %c0_43] : memref<10x32xf32, #tpu.memory_space<vmem>>, vector<8x32xf32>
    %46 = arith.truncf %45 : vector<8x32xf32> to vector<8x32xbf16>
    %c2_44 = arith.constant 2 : index
    %c0_45 = arith.constant 0 : index
    %c0_46 = arith.constant 0 : index
    %47 = vector.load %arg4[%c2_44, %c0_45, %c0_46] : memref<3x32x32xbf16, #tpu.memory_space<vmem>>, vector<1x32x32xbf16>
    %48 = vector.shape_cast %47 : vector<1x32x32xbf16> to vector<32x32xbf16>
    %cst_47 = arith.constant dense<0.000000e+00> : vector<8x32xf32>
    %49 = tpu.matmul %46, %48, %cst_47 {dimension_numbers = #tpu.dot_dimension_numbers<[1], [0], [0], [1], [0, 0, 1, 1], [], []>} : vector<8x32xbf16>, vector<32x32xbf16>, vector<8x32xf32> -> vector<8x32xf32>
    %50 = arith.addf %44, %49 : vector<8x32xf32>
    %c0_48 = arith.constant 0 : index
    %c0_49 = arith.constant 0 : index
    %51 = vector.load %arg5[%c0_48, %c0_49] : memref<1x32xf32, #tpu.memory_space<vmem>>, vector<1x32xf32>
    %52 = vector.broadcast %51 : vector<1x32xf32> to vector<8x32xf32>
    %53 = arith.addf %50, %52 : vector<8x32xf32>
    %54 = arith.addf %53, %1 : vector<8x32xf32>
    %cst_50 = arith.constant dense<0.000000e+00> : vector<8xf32>
    %55 = vector.multi_reduction <add>, %54, %cst_50 [1] : vector<8x32xf32> to vector<8xf32>
    %56 = vector.shape_cast %55 : vector<8xf32> to vector<8x1xf32>
    %cst_51 = arith.constant 3.200000e+01 : f32
    %57 = vector.broadcast %cst_51 : f32 to vector<8x1xf32>
    %58 = arith.divf %56, %57 : vector<8x1xf32>
    %59 = vector.broadcast %58 : vector<8x1xf32> to vector<8x32xf32>
    %60 = arith.subf %54, %59 : vector<8x32xf32>
    %61 = arith.mulf %60, %60 : vector<8x32xf32>
    %cst_52 = arith.constant dense<0.000000e+00> : vector<8xf32>
    %62 = vector.multi_reduction <add>, %61, %cst_52 [1] : vector<8x32xf32> to vector<8xf32>
    %63 = vector.shape_cast %62 : vector<8xf32> to vector<8x1xf32>
    %cst_53 = arith.constant 3.200000e+01 : f32
    %64 = vector.broadcast %cst_53 : f32 to vector<8x1xf32>
    %65 = arith.divf %63, %64 : vector<8x1xf32>
    %66 = vector.broadcast %58 : vector<8x1xf32> to vector<8x32xf32>
    %67 = arith.subf %54, %66 : vector<8x32xf32>
    %cst_54 = arith.constant 9.99999974E-6 : f32
    %68 = vector.broadcast %cst_54 : f32 to vector<8x1xf32>
    %69 = arith.addf %65, %68 : vector<8x1xf32>
    %70 = math.rsqrt %69 : vector<8x1xf32>
    %71 = vector.broadcast %70 : vector<8x1xf32> to vector<8x32xf32>
    %72 = arith.mulf %67, %71 : vector<8x32xf32>
    %c0_55 = arith.constant 0 : index
    %c0_56 = arith.constant 0 : index
    %73 = vector.load %arg6[%c0_55, %c0_56] : memref<1x32xf32, #tpu.memory_space<vmem>>, vector<1x32xf32>
    %74 = vector.broadcast %73 : vector<1x32xf32> to vector<8x32xf32>
    %75 = arith.mulf %72, %74 : vector<8x32xf32>
    %c0_57 = arith.constant 0 : index
    %c0_58 = arith.constant 0 : index
    %76 = vector.load %arg7[%c0_57, %c0_58] : memref<1x32xf32, #tpu.memory_space<vmem>>, vector<1x32xf32>
    %77 = vector.broadcast %76 : vector<1x32xf32> to vector<8x32xf32>
    %78 = arith.addf %75, %77 : vector<8x32xf32>
    %c0_59 = arith.constant 0 : index
    %c0_60 = arith.constant 0 : index
    %c0_61 = arith.constant 0 : index
    %79 = vector.load %arg8[%c0_59, %c0_60, %c0_61] : memref<1x8x1xf32, #tpu.memory_space<vmem>>, vector<1x8x1xf32>
    %80 = vector.shape_cast %79 : vector<1x8x1xf32> to vector<8x1xf32>
    %81 = vector.broadcast %80 : vector<8x1xf32> to vector<8x32xf32>
    %82 = arith.mulf %78, %81 : vector<8x32xf32>
    %c0_62 = arith.constant 0 : index
    %c0_63 = arith.constant 0 : index
    %c0_64 = arith.constant 0 : index
    %83 = vector.load %arg9[%c0_62, %c0_63, %c0_64] : memref<1x8x32xf32, #tpu.memory_space<vmem>>, vector<1x8x32xf32>
    %84 = vector.shape_cast %83 : vector<1x8x32xf32> to vector<8x32xf32>
    %85 = vector.shape_cast %82 : vector<8x32xf32> to vector<1x8x32xf32>
    tpu.vector_store %arg9[%c0_62, %c0_63, %c0_64], %85 {strides = array<i32>} : memref<1x8x32xf32, #tpu.memory_space<vmem>>, vector<1x8x32xf32>,
    return
  }
  func.func @transform_0(%arg0: i32) -> (i32, i32, i32) {
    %c0_i32 = arith.constant 0 : i32
    %c0_i32_0 = arith.constant 0 : i32
    %c0_i32_1 = arith.constant 0 : i32
    return %arg0, %c0_i32, %c0_i32_0 : i32, i32, i32
  }
  func.func @transform_1(%arg0: i32) -> (i32, i32, i32) {
    %c0_i32 = arith.constant 0 : i32
    %c0_i32_0 = arith.constant 0 : i32
    %c0_i32_1 = arith.constant 0 : i32
    %c0_i32_2 = arith.constant 0 : i32
    return %c0_i32, %c0_i32_0, %c0_i32_1 : i32, i32, i32
  }
  func.func @transform_2(%arg0: i32) -> (i32, i32) {
    %c0_i32 = arith.constant 0 : i32
    %c0_i32_0 = arith.constant 0 : i32
    %c0_i32_1 = arith.constant 0 : i32
    return %c0_i32, %c0_i32_0 : i32, i32
  }
  func.func @transform_3(%arg0: i32) -> (i32, i32, i32) {
    %c0_i32 = arith.constant 0 : i32
    %c0_i32_0 = arith.constant 0 : i32
    %c0_i32_1 = arith.constant 0 : i32
    %c0_i32_2 = arith.constant 0 : i32
    return %c0_i32, %c0_i32_0, %c0_i32_1 : i32, i32, i32
  }
  func.func @transform_4(%arg0: i32) -> (i32, i32) {
    %c0_i32 = arith.constant 0 : i32
    %c0_i32_0 = arith.constant 0 : i32
    %c0_i32_1 = arith.constant 0 : i32
    return %c0_i32, %c0_i32_0 : i32, i32
  }
  func.func @transform_5(%arg0: i32) -> (i32, i32) {
    %c0_i32 = arith.constant 0 : i32
    %c0_i32_0 = arith.constant 0 : i32
    %c0_i32_1 = arith.constant 0 : i32
    return %c0_i32, %c0_i32_0 : i32, i32
  }
  func.func @transform_6(%arg0: i32) -> (i32, i32) {
    %c0_i32 = arith.constant 0 : i32
    %c0_i32_0 = arith.constant 0 : i32
    %c0_i32_1 = arith.constant 0 : i32
    return %c0_i32, %c0_i32_0 : i32, i32
  }
  func.func @transform_7(%arg0: i32) -> (i32, i32, i32) {
    %c0_i32 = arith.constant 0 : i32
    %c0_i32_0 = arith.constant 0 : i32
    %c0_i32_1 = arith.constant 0 : i32
    return %arg0, %c0_i32, %c0_i32_0 : i32, i32, i32
  }
  func.func @transform_8(%arg0: i32) -> (i32, i32, i32) {
    %c0_i32 = arith.constant 0 : i32
    %c0_i32_0 = arith.constant 0 : i32
    %c0_i32_1 = arith.constant 0 : i32
    return %arg0, %c0_i32, %c0_i32_0 : i32, i32, i32
  }
}

module attributes {stable_mosaic.version = 11 : i64} {
  func.func @_linear_kernel(%arg0: i32, %arg1: memref<32x32xf32, #tpu.memory_space<vmem>>, %arg2: memref<32x640xbf16, #tpu.memory_space<vmem>>, %arg3: memref<1x640xf32, #tpu.memory_space<vmem>>, %arg4: memref<32x640xf32, #tpu.memory_space<vmem>>) attributes {dimension_semantics = [#tpu.dimension_semantics<parallel>], iteration_bounds = array<i64: 1>, scalar_prefetch = 0 : i64, scratch_operands = 0 : i64, tpu.core_type = #tpu.core_type<tc>, window_params = [{transform_indices = @transform_0, window_bounds = array<i64: 32, 32>}, {pipeline_mode = #tpu.pipeline_mode<synchronous>, transform_indices = @transform_1, window_bounds = array<i64: 32, 640>}, {pipeline_mode = #tpu.pipeline_mode<synchronous>, transform_indices = @transform_2, window_bounds = array<i64: 1, 640>}, {transform_indices = @transform_3, window_bounds = array<i64: 32, 640>}]} {
    %c0 = arith.constant 0 : index
    %c0_0 = arith.constant 0 : index
    %0 = vector.load %arg1[%c0, %c0_0] : memref<32x32xf32, #tpu.memory_space<vmem>>, vector<32x32xf32>
    %1 = arith.truncf %0 : vector<32x32xf32> to vector<32x32xbf16>
    %c0_1 = arith.constant 0 : index
    %c0_2 = arith.constant 0 : index
    %2 = vector.load %arg2[%c0_1, %c0_2] : memref<32x640xbf16, #tpu.memory_space<vmem>>, vector<32x640xbf16>
    %cst = arith.constant dense<0.000000e+00> : vector<32x640xf32>
    %3 = tpu.matmul %1, %2, %cst {dimension_numbers = #tpu.dot_dimension_numbers<[1], [0], [0], [1], [0, 0, 1, 1], [], []>} : vector<32x32xbf16>, vector<32x640xbf16>, vector<32x640xf32> -> vector<32x640xf32>
    %c0_3 = arith.constant 0 : index
    %c0_4 = arith.constant 0 : index
    %4 = vector.load %arg3[%c0_3, %c0_4] : memref<1x640xf32, #tpu.memory_space<vmem>>, vector<1x640xf32>
    %5 = vector.broadcast %4 : vector<1x640xf32> to vector<32x640xf32>
    %6 = arith.addf %3, %5 : vector<32x640xf32>
    %c0_5 = arith.constant 0 : index
    %c0_6 = arith.constant 0 : index
    %7 = vector.load %arg4[%c0_5, %c0_6] : memref<32x640xf32, #tpu.memory_space<vmem>>, vector<32x640xf32>
    tpu.vector_store %arg4[%c0_5, %c0_6], %6 {strides = array<i32>} : memref<32x640xf32, #tpu.memory_space<vmem>>, vector<32x640xf32>,
    return
  }
  func.func @transform_0(%arg0: i32) -> (i32, i32) {
    %c0_i32 = arith.constant 0 : i32
    %c0_i32_0 = arith.constant 0 : i32
    return %arg0, %c0_i32 : i32, i32
  }
  func.func @transform_1(%arg0: i32) -> (i32, i32) {
    %c0_i32 = arith.constant 0 : i32
    %c0_i32_0 = arith.constant 0 : i32
    %c0_i32_1 = arith.constant 0 : i32
    return %c0_i32, %c0_i32_0 : i32, i32
  }
  func.func @transform_2(%arg0: i32) -> (i32, i32) {
    %c0_i32 = arith.constant 0 : i32
    %c0_i32_0 = arith.constant 0 : i32
    %c0_i32_1 = arith.constant 0 : i32
    return %c0_i32, %c0_i32_0 : i32, i32
  }
  func.func @transform_3(%arg0: i32) -> (i32, i32) {
    %c0_i32 = arith.constant 0 : i32
    %c0_i32_0 = arith.constant 0 : i32
    return %arg0, %c0_i32 : i32, i32
  }
}

module attributes {stable_mosaic.version = 11 : i64} {
  func.func @_attention_kernel(%arg0: i32, %arg1: memref<1x16x640xf32, #tpu.memory_space<vmem>>, %arg2: memref<1x1x16xf32, #tpu.memory_space<vmem>>, %arg3: memref<1x16x128xf32, #tpu.memory_space<vmem>>, %arg4: memref<1x2x16x16xf32, #tpu.memory_space<vmem>>) attributes {dimension_semantics = [#tpu.dimension_semantics<parallel>], iteration_bounds = array<i64: 2>, scalar_prefetch = 0 : i64, scratch_operands = 0 : i64, tpu.core_type = #tpu.core_type<tc>, window_params = [{transform_indices = @transform_0, window_bounds = array<i64: 1, 16, 640>}, {transform_indices = @transform_1, window_bounds = array<i64: 1, 1, 16>}, {transform_indices = @transform_2, window_bounds = array<i64: 1, 16, 128>}, {transform_indices = @transform_3, window_bounds = array<i64: 1, 2, 16, 16>}]} {
    %c0 = arith.constant 0 : index
    %c0_0 = arith.constant 0 : index
    %c0_1 = arith.constant 0 : index
    %0 = vector.load %arg2[%c0, %c0_0, %c0_1] : memref<1x1x16xf32, #tpu.memory_space<vmem>>, vector<1x1x16xf32>
    %1 = vector.shape_cast %0 : vector<1x1x16xf32> to vector<1x16xf32>
    %c0_2 = arith.constant 0 : index
    %c0_3 = arith.constant 0 : index
    %c0_4 = arith.constant 0 : index
    %2 = vector.load %arg1[%c0_2, %c0_3, %c0_4] : memref<1x16x640xf32, #tpu.memory_space<vmem>>, vector<1x16x128xf32>
    %3 = vector.shape_cast %2 : vector<1x16x128xf32> to vector<16x128xf32>
    %4 = arith.truncf %3 : vector<16x128xf32> to vector<16x128xbf16>
    %c0_5 = arith.constant 0 : index
    %c0_6 = arith.constant 0 : index
    %c256 = arith.constant 256 : index
    %5 = vector.load %arg1[%c0_5, %c0_6, %c256] : memref<1x16x640xf32, #tpu.memory_space<vmem>>, vector<1x16x128xf32>
    %6 = vector.shape_cast %5 : vector<1x16x128xf32> to vector<16x128xf32>
    %7 = arith.truncf %6 : vector<16x128xf32> to vector<16x128xbf16>
    %c0_7 = arith.constant 0 : index
    %c0_8 = arith.constant 0 : index
    %c512 = arith.constant 512 : index
    %8 = vector.load %arg1[%c0_7, %c0_8, %c512] : memref<1x16x640xf32, #tpu.memory_space<vmem>>, vector<1x16x64xf32>
    %9 = vector.shape_cast %8 : vector<1x16x64xf32> to vector<16x64xf32>
    %10 = arith.truncf %9 : vector<16x64xf32> to vector<16x64xbf16>
    %cst = arith.constant dense<0.000000e+00> : vector<16x16xf32>
    %11 = tpu.matmul %4, %7, %cst {dimension_numbers = #tpu.dot_dimension_numbers<[1], [1], [0], [0], [0, 0, 1, 0], [], []>} : vector<16x128xbf16>, vector<16x128xbf16>, vector<16x16xf32> -> vector<16x16xf32>
    %cst_9 = arith.constant 0.0883883461 : f32
    %12 = vector.broadcast %cst_9 : f32 to vector<16x16xf32>
    %13 = arith.mulf %11, %12 : vector<16x16xf32>
    %14 = vector.broadcast %1 : vector<1x16xf32> to vector<16x16xf32>
    %15 = arith.addf %13, %14 : vector<16x16xf32>
    %cst_10 = arith.constant dense<0xFF800000> : vector<16xf32>
    %16 = vector.multi_reduction <maximumf>, %15, %cst_10 [1] : vector<16x16xf32> to vector<16xf32>
    %17 = vector.shape_cast %16 : vector<16xf32> to vector<16x1xf32>
    %18 = vector.broadcast %17 : vector<16x1xf32> to vector<16x16xf32>
    %19 = arith.subf %15, %18 : vector<16x16xf32>
    %20 = math.exp %19 : vector<16x16xf32>
    %cst_11 = arith.constant dense<0.000000e+00> : vector<16xf32>
    %21 = vector.multi_reduction <add>, %20, %cst_11 [1] : vector<16x16xf32> to vector<16xf32>
    %22 = vector.shape_cast %21 : vector<16xf32> to vector<16x1xf32>
    %23 = tpu.reciprocal %22 {approx = true} : vector<16x1xf32> -> vector<16x1xf32>
    %24 = vector.broadcast %23 : vector<16x1xf32> to vector<16x16xf32>
    %25 = arith.mulf %20, %24 : vector<16x16xf32>
    %c0_12 = arith.constant 0 : index
    %c0_13 = arith.constant 0 : index
    %c0_14 = arith.constant 0 : index
    %c0_15 = arith.constant 0 : index
    %26 = vector.load %arg4[%c0_12, %c0_13, %c0_14, %c0_15] : memref<1x2x16x16xf32, #tpu.memory_space<vmem>>, vector<1x1x16x16xf32>
    %27 = vector.shape_cast %26 : vector<1x1x16x16xf32> to vector<16x16xf32>
    %28 = vector.shape_cast %25 : vector<16x16xf32> to vector<1x1x16x16xf32>
    tpu.vector_store %arg4[%c0_12, %c0_13, %c0_14, %c0_15], %28 {strides = array<i32>} : memref<1x2x16x16xf32, #tpu.memory_space<vmem>>, vector<1x1x16x16xf32>,
    %29 = arith.truncf %25 : vector<16x16xf32> to vector<16x16xbf16>
    %cst_16 = arith.constant dense<0.000000e+00> : vector<16x64xf32>
    %30 = tpu.matmul %29, %10, %cst_16 {dimension_numbers = #tpu.dot_dimension_numbers<[1], [0], [0], [1], [0, 0, 1, 1], [], []>} : vector<16x16xbf16>, vector<16x64xbf16>, vector<16x64xf32> -> vector<16x64xf32>
    %c0_17 = arith.constant 0 : index
    %c0_18 = arith.constant 0 : index
    %c0_19 = arith.constant 0 : index
    %31 = vector.load %arg3[%c0_17, %c0_18, %c0_19] : memref<1x16x128xf32, #tpu.memory_space<vmem>>, vector<1x16x64xf32>
    %32 = vector.shape_cast %31 : vector<1x16x64xf32> to vector<16x64xf32>
    %33 = vector.shape_cast %30 : vector<16x64xf32> to vector<1x16x64xf32>
    tpu.vector_store %arg3[%c0_17, %c0_18, %c0_19], %33 {strides = array<i32>} : memref<1x16x128xf32, #tpu.memory_space<vmem>>, vector<1x16x64xf32>,
    %c0_20 = arith.constant 0 : index
    %c0_21 = arith.constant 0 : index
    %c128 = arith.constant 128 : index
    %34 = vector.load %arg1[%c0_20, %c0_21, %c128] : memref<1x16x640xf32, #tpu.memory_space<vmem>>, vector<1x16x128xf32>
    %35 = vector.shape_cast %34 : vector<1x16x128xf32> to vector<16x128xf32>
    %36 = arith.truncf %35 : vector<16x128xf32> to vector<16x128xbf16>
    %c0_22 = arith.constant 0 : index
    %c0_23 = arith.constant 0 : index
    %c384 = arith.constant 384 : index
    %37 = vector.load %arg1[%c0_22, %c0_23, %c384] : memref<1x16x640xf32, #tpu.memory_space<vmem>>, vector<1x16x128xf32>
    %38 = vector.shape_cast %37 : vector<1x16x128xf32> to vector<16x128xf32>
    %39 = arith.truncf %38 : vector<16x128xf32> to vector<16x128xbf16>
    %c0_24 = arith.constant 0 : index
    %c0_25 = arith.constant 0 : index
    %c576 = arith.constant 576 : index
    %40 = vector.load %arg1[%c0_24, %c0_25, %c576] : memref<1x16x640xf32, #tpu.memory_space<vmem>>, vector<1x16x64xf32>
    %41 = vector.shape_cast %40 : vector<1x16x64xf32> to vector<16x64xf32>
    %42 = arith.truncf %41 : vector<16x64xf32> to vector<16x64xbf16>
    %cst_26 = arith.constant dense<0.000000e+00> : vector<16x16xf32>
    %43 = tpu.matmul %36, %39, %cst_26 {dimension_numbers = #tpu.dot_dimension_numbers<[1], [1], [0], [0], [0, 0, 1, 0], [], []>} : vector<16x128xbf16>, vector<16x128xbf16>, vector<16x16xf32> -> vector<16x16xf32>
    %cst_27 = arith.constant 0.0883883461 : f32
    %44 = vector.broadcast %cst_27 : f32 to vector<16x16xf32>
    %45 = arith.mulf %43, %44 : vector<16x16xf32>
    %46 = vector.broadcast %1 : vector<1x16xf32> to vector<16x16xf32>
    %47 = arith.addf %45, %46 : vector<16x16xf32>
    %cst_28 = arith.constant dense<0xFF800000> : vector<16xf32>
    %48 = vector.multi_reduction <maximumf>, %47, %cst_28 [1] : vector<16x16xf32> to vector<16xf32>
    %49 = vector.shape_cast %48 : vector<16xf32> to vector<16x1xf32>
    %50 = vector.broadcast %49 : vector<16x1xf32> to vector<16x16xf32>
    %51 = arith.subf %47, %50 : vector<16x16xf32>
    %52 = math.exp %51 : vector<16x16xf32>
    %cst_29 = arith.constant dense<0.000000e+00> : vector<16xf32>
    %53 = vector.multi_reduction <add>, %52, %cst_29 [1] : vector<16x16xf32> to vector<16xf32>
    %54 = vector.shape_cast %53 : vector<16xf32> to vector<16x1xf32>
    %55 = tpu.reciprocal %54 {approx = true} : vector<16x1xf32> -> vector<16x1xf32>
    %56 = vector.broadcast %55 : vector<16x1xf32> to vector<16x16xf32>
    %57 = arith.mulf %52, %56 : vector<16x16xf32>
    %c0_30 = arith.constant 0 : index
    %c1 = arith.constant 1 : index
    %c0_31 = arith.constant 0 : index
    %c0_32 = arith.constant 0 : index
    %58 = vector.load %arg4[%c0_30, %c1, %c0_31, %c0_32] : memref<1x2x16x16xf32, #tpu.memory_space<vmem>>, vector<1x1x16x16xf32>
    %59 = vector.shape_cast %58 : vector<1x1x16x16xf32> to vector<16x16xf32>
    %60 = vector.shape_cast %57 : vector<16x16xf32> to vector<1x1x16x16xf32>
    tpu.vector_store %arg4[%c0_30, %c1, %c0_31, %c0_32], %60 {strides = array<i32>} : memref<1x2x16x16xf32, #tpu.memory_space<vmem>>, vector<1x1x16x16xf32>,
    %61 = arith.truncf %57 : vector<16x16xf32> to vector<16x16xbf16>
    %cst_33 = arith.constant dense<0.000000e+00> : vector<16x64xf32>
    %62 = tpu.matmul %61, %42, %cst_33 {dimension_numbers = #tpu.dot_dimension_numbers<[1], [0], [0], [1], [0, 0, 1, 1], [], []>} : vector<16x16xbf16>, vector<16x64xbf16>, vector<16x64xf32> -> vector<16x64xf32>
    %c0_34 = arith.constant 0 : index
    %c0_35 = arith.constant 0 : index
    %c64 = arith.constant 64 : index
    %63 = vector.load %arg3[%c0_34, %c0_35, %c64] : memref<1x16x128xf32, #tpu.memory_space<vmem>>, vector<1x16x64xf32>
    %64 = vector.shape_cast %63 : vector<1x16x64xf32> to vector<16x64xf32>
    %65 = vector.shape_cast %62 : vector<16x64xf32> to vector<1x16x64xf32>
    tpu.vector_store %arg3[%c0_34, %c0_35, %c64], %65 {strides = array<i32>} : memref<1x16x128xf32, #tpu.memory_space<vmem>>, vector<1x16x64xf32>,
    return
  }
  func.func @transform_0(%arg0: i32) -> (i32, i32, i32) {
    %c0_i32 = arith.constant 0 : i32
    %c0_i32_0 = arith.constant 0 : i32
    %c0_i32_1 = arith.constant 0 : i32
    return %arg0, %c0_i32, %c0_i32_0 : i32, i32, i32
  }
  func.func @transform_1(%arg0: i32) -> (i32, i32, i32) {
    %c0_i32 = arith.constant 0 : i32
    %c0_i32_0 = arith.constant 0 : i32
    %c0_i32_1 = arith.constant 0 : i32
    return %arg0, %c0_i32, %c0_i32_0 : i32, i32, i32
  }
  func.func @transform_2(%arg0: i32) -> (i32, i32, i32) {
    %c0_i32 = arith.constant 0 : i32
    %c0_i32_0 = arith.constant 0 : i32
    %c0_i32_1 = arith.constant 0 : i32
    return %arg0, %c0_i32, %c0_i32_0 : i32, i32, i32
  }
  func.func @transform_3(%arg0: i32) -> (i32, i32, i32, i32) {
    %c0_i32 = arith.constant 0 : i32
    %c0_i32_0 = arith.constant 0 : i32
    %c0_i32_1 = arith.constant 0 : i32
    %c0_i32_2 = arith.constant 0 : i32
    return %arg0, %c0_i32, %c0_i32_0, %c0_i32_1 : i32, i32, i32, i32
  }
}

module attributes {stable_mosaic.version = 11 : i64} {
  func.func @_proj_res_ln_kernel(%arg0: i32, %arg1: memref<32x128xf32, #tpu.memory_space<vmem>>, %arg2: memref<128x32xbf16, #tpu.memory_space<vmem>>, %arg3: memref<1x32xf32, #tpu.memory_space<vmem>>, %arg4: memref<32x32xf32, #tpu.memory_space<vmem>>, %arg5: memref<32x1xf32, #tpu.memory_space<vmem>>, %arg6: memref<1x32xf32, #tpu.memory_space<vmem>>, %arg7: memref<1x32xf32, #tpu.memory_space<vmem>>, %arg8: memref<32x32xf32, #tpu.memory_space<vmem>>) attributes {dimension_semantics = [#tpu.dimension_semantics<parallel>], iteration_bounds = array<i64: 1>, scalar_prefetch = 0 : i64, scratch_operands = 0 : i64, tpu.core_type = #tpu.core_type<tc>, window_params = [{transform_indices = @transform_0, window_bounds = array<i64: 32, 128>}, {pipeline_mode = #tpu.pipeline_mode<synchronous>, transform_indices = @transform_1, window_bounds = array<i64: 128, 32>}, {pipeline_mode = #tpu.pipeline_mode<synchronous>, transform_indices = @transform_2, window_bounds = array<i64: 1, 32>}, {transform_indices = @transform_3, window_bounds = array<i64: 32, 32>}, {transform_indices = @transform_4, window_bounds = array<i64: 32, 1>}, {pipeline_mode = #tpu.pipeline_mode<synchronous>, transform_indices = @transform_5, window_bounds = array<i64: 1, 32>}, {pipeline_mode = #tpu.pipeline_mode<synchronous>, transform_indices = @transform_6, window_bounds = array<i64: 1, 32>}, {transform_indices = @transform_7, window_bounds = array<i64: 32, 32>}]} {
    %c0 = arith.constant 0 : index
    %c0_0 = arith.constant 0 : index
    %0 = vector.load %arg1[%c0, %c0_0] : memref<32x128xf32, #tpu.memory_space<vmem>>, vector<32x128xf32>
    %1 = arith.truncf %0 : vector<32x128xf32> to vector<32x128xbf16>
    %c0_1 = arith.constant 0 : index
    %c0_2 = arith.constant 0 : index
    %2 = vector.load %arg2[%c0_1, %c0_2] : memref<128x32xbf16, #tpu.memory_space<vmem>>, vector<128x32xbf16>
    %cst = arith.constant dense<0.000000e+00> : vector<32x32xf32>
    %3 = tpu.matmul %1, %2, %cst {dimension_numbers = #tpu.dot_dimension_numbers<[1], [0], [0], [1], [0, 0, 1, 1], [], []>} : vector<32x128xbf16>, vector<128x32xbf16>, vector<32x32xf32> -> vector<32x32xf32>
    %c0_3 = arith.constant 0 : index
    %c0_4 = arith.constant 0 : index
    %4 = vector.load %arg3[%c0_3, %c0_4] : memref<1x32xf32, #tpu.memory_space<vmem>>, vector<1x32xf32>
    %5 = vector.broadcast %4 : vector<1x32xf32> to vector<32x32xf32>
    %6 = arith.addf %3, %5 : vector<32x32xf32>
    %c0_5 = arith.constant 0 : index
    %c0_6 = arith.constant 0 : index
    %7 = vector.load %arg4[%c0_5, %c0_6] : memref<32x32xf32, #tpu.memory_space<vmem>>, vector<32x32xf32>
    %8 = arith.addf %6, %7 : vector<32x32xf32>
    %cst_7 = arith.constant dense<0.000000e+00> : vector<32xf32>
    %9 = vector.multi_reduction <add>, %8, %cst_7 [1] : vector<32x32xf32> to vector<32xf32>
    %10 = vector.shape_cast %9 : vector<32xf32> to vector<32x1xf32>
    %cst_8 = arith.constant 3.200000e+01 : f32
    %11 = vector.broadcast %cst_8 : f32 to vector<32x1xf32>
    %12 = arith.divf %10, %11 : vector<32x1xf32>
    %13 = vector.broadcast %12 : vector<32x1xf32> to vector<32x32xf32>
    %14 = arith.subf %8, %13 : vector<32x32xf32>
    %15 = arith.mulf %14, %14 : vector<32x32xf32>
    %cst_9 = arith.constant dense<0.000000e+00> : vector<32xf32>
    %16 = vector.multi_reduction <add>, %15, %cst_9 [1] : vector<32x32xf32> to vector<32xf32>
    %17 = vector.shape_cast %16 : vector<32xf32> to vector<32x1xf32>
    %cst_10 = arith.constant 3.200000e+01 : f32
    %18 = vector.broadcast %cst_10 : f32 to vector<32x1xf32>
    %19 = arith.divf %17, %18 : vector<32x1xf32>
    %20 = vector.broadcast %12 : vector<32x1xf32> to vector<32x32xf32>
    %21 = arith.subf %8, %20 : vector<32x32xf32>
    %cst_11 = arith.constant 9.99999974E-6 : f32
    %22 = vector.broadcast %cst_11 : f32 to vector<32x1xf32>
    %23 = arith.addf %19, %22 : vector<32x1xf32>
    %24 = math.rsqrt %23 : vector<32x1xf32>
    %25 = vector.broadcast %24 : vector<32x1xf32> to vector<32x32xf32>
    %26 = arith.mulf %21, %25 : vector<32x32xf32>
    %c0_12 = arith.constant 0 : index
    %c0_13 = arith.constant 0 : index
    %27 = vector.load %arg6[%c0_12, %c0_13] : memref<1x32xf32, #tpu.memory_space<vmem>>, vector<1x32xf32>
    %28 = vector.broadcast %27 : vector<1x32xf32> to vector<32x32xf32>
    %29 = arith.mulf %26, %28 : vector<32x32xf32>
    %c0_14 = arith.constant 0 : index
    %c0_15 = arith.constant 0 : index
    %30 = vector.load %arg7[%c0_14, %c0_15] : memref<1x32xf32, #tpu.memory_space<vmem>>, vector<1x32xf32>
    %31 = vector.broadcast %30 : vector<1x32xf32> to vector<32x32xf32>
    %32 = arith.addf %29, %31 : vector<32x32xf32>
    %c0_16 = arith.constant 0 : index
    %c0_17 = arith.constant 0 : index
    %33 = vector.load %arg5[%c0_16, %c0_17] : memref<32x1xf32, #tpu.memory_space<vmem>>, vector<32x1xf32>
    %34 = vector.broadcast %33 : vector<32x1xf32> to vector<32x32xf32>
    %35 = arith.mulf %32, %34 : vector<32x32xf32>
    %c0_18 = arith.constant 0 : index
    %c0_19 = arith.constant 0 : index
    %36 = vector.load %arg8[%c0_18, %c0_19] : memref<32x32xf32, #tpu.memory_space<vmem>>, vector<32x32xf32>
    tpu.vector_store %arg8[%c0_18, %c0_19], %35 {strides = array<i32>} : memref<32x32xf32, #tpu.memory_space<vmem>>, vector<32x32xf32>,
    return
  }
  func.func @transform_0(%arg0: i32) -> (i32, i32) {
    %c0_i32 = arith.constant 0 : i32
    %c0_i32_0 = arith.constant 0 : i32
    return %arg0, %c0_i32 : i32, i32
  }
  func.func @transform_1(%arg0: i32) -> (i32, i32) {
    %c0_i32 = arith.constant 0 : i32
    %c0_i32_0 = arith.constant 0 : i32
    %c0_i32_1 = arith.constant 0 : i32
    return %c0_i32, %c0_i32_0 : i32, i32
  }
  func.func @transform_2(%arg0: i32) -> (i32, i32) {
    %c0_i32 = arith.constant 0 : i32
    %c0_i32_0 = arith.constant 0 : i32
    %c0_i32_1 = arith.constant 0 : i32
    return %c0_i32, %c0_i32_0 : i32, i32
  }
  func.func @transform_3(%arg0: i32) -> (i32, i32) {
    %c0_i32 = arith.constant 0 : i32
    %c0_i32_0 = arith.constant 0 : i32
    return %arg0, %c0_i32 : i32, i32
  }
  func.func @transform_4(%arg0: i32) -> (i32, i32) {
    %c0_i32 = arith.constant 0 : i32
    %c0_i32_0 = arith.constant 0 : i32
    return %arg0, %c0_i32 : i32, i32
  }
  func.func @transform_5(%arg0: i32) -> (i32, i32) {
    %c0_i32 = arith.constant 0 : i32
    %c0_i32_0 = arith.constant 0 : i32
    %c0_i32_1 = arith.constant 0 : i32
    return %c0_i32, %c0_i32_0 : i32, i32
  }
  func.func @transform_6(%arg0: i32) -> (i32, i32) {
    %c0_i32 = arith.constant 0 : i32
    %c0_i32_0 = arith.constant 0 : i32
    %c0_i32_1 = arith.constant 0 : i32
    return %c0_i32, %c0_i32_0 : i32, i32
  }
  func.func @transform_7(%arg0: i32) -> (i32, i32) {
    %c0_i32 = arith.constant 0 : i32
    %c0_i32_0 = arith.constant 0 : i32
    return %arg0, %c0_i32 : i32, i32
  }
}

module attributes {stable_mosaic.version = 11 : i64} {
  func.func @_ffn_kernel(%arg0: i32, %arg1: memref<1x18x32xf32, #tpu.memory_space<vmem>>, %arg2: memref<3x32x32xbf16, #tpu.memory_space<vmem>>, %arg3: memref<1x32xf32, #tpu.memory_space<vmem>>, %arg4: memref<3x32x32xbf16, #tpu.memory_space<vmem>>, %arg5: memref<1x32xf32, #tpu.memory_space<vmem>>, %arg6: memref<1x32xf32, #tpu.memory_space<vmem>>, %arg7: memref<1x32xf32, #tpu.memory_space<vmem>>, %arg8: memref<1x16x1xf32, #tpu.memory_space<vmem>>, %arg9: memref<1x16x32xf32, #tpu.memory_space<vmem>>, %arg10: memref<18x32xf32, #tpu.memory_space<vmem>>) attributes {dimension_semantics = [#tpu.dimension_semantics<parallel>], iteration_bounds = array<i64: 2>, scalar_prefetch = 0 : i64, scratch_operands = 1 : i64, tpu.core_type = #tpu.core_type<tc>, window_params = [{transform_indices = @transform_0, window_bounds = array<i64: 1, 18, 32>}, {pipeline_mode = #tpu.pipeline_mode<synchronous>, transform_indices = @transform_1, window_bounds = array<i64: 3, 32, 32>}, {pipeline_mode = #tpu.pipeline_mode<synchronous>, transform_indices = @transform_2, window_bounds = array<i64: 1, 32>}, {pipeline_mode = #tpu.pipeline_mode<synchronous>, transform_indices = @transform_3, window_bounds = array<i64: 3, 32, 32>}, {pipeline_mode = #tpu.pipeline_mode<synchronous>, transform_indices = @transform_4, window_bounds = array<i64: 1, 32>}, {pipeline_mode = #tpu.pipeline_mode<synchronous>, transform_indices = @transform_5, window_bounds = array<i64: 1, 32>}, {pipeline_mode = #tpu.pipeline_mode<synchronous>, transform_indices = @transform_6, window_bounds = array<i64: 1, 32>}, {transform_indices = @transform_7, window_bounds = array<i64: 1, 16, 1>}, {transform_indices = @transform_8, window_bounds = array<i64: 1, 16, 32>}]} {
    %c0 = arith.constant 0 : index
    %c1 = arith.constant 1 : index
    %c0_0 = arith.constant 0 : index
    %0 = vector.load %arg1[%c0, %c1, %c0_0] : memref<1x18x32xf32, #tpu.memory_space<vmem>>, vector<1x16x32xf32>
    %1 = vector.shape_cast %0 : vector<1x16x32xf32> to vector<16x32xf32>
    %cst = arith.constant 0.000000e+00 : f32
    %2 = vector.broadcast %cst : f32 to vector<16x32xf32>
    %c0_1 = arith.constant 0 : index
    %c0_2 = arith.constant 0 : index
    %c0_3 = arith.constant 0 : index
    %3 = vector.load %arg1[%c0_1, %c0_2, %c0_3] : memref<1x18x32xf32, #tpu.memory_space<vmem>>, vector<1x16x32xf32>
    %4 = vector.shape_cast %3 : vector<1x16x32xf32> to vector<16x32xf32>
    %5 = arith.truncf %4 : vector<16x32xf32> to vector<16x32xbf16>
    %c0_4 = arith.constant 0 : index
    %c0_5 = arith.constant 0 : index
    %c0_6 = arith.constant 0 : index
    %6 = vector.load %arg2[%c0_4, %c0_5, %c0_6] : memref<3x32x32xbf16, #tpu.memory_space<vmem>>, vector<1x32x32xbf16>
    %7 = vector.shape_cast %6 : vector<1x32x32xbf16> to vector<32x32xbf16>
    %cst_7 = arith.constant dense<0.000000e+00> : vector<16x32xf32>
    %8 = tpu.matmul %5, %7, %cst_7 {dimension_numbers = #tpu.dot_dimension_numbers<[1], [0], [0], [1], [0, 0, 1, 1], [], []>} : vector<16x32xbf16>, vector<32x32xbf16>, vector<16x32xf32> -> vector<16x32xf32>
    %9 = arith.addf %2, %8 : vector<16x32xf32>
    %c0_8 = arith.constant 0 : index
    %c1_9 = arith.constant 1 : index
    %c0_10 = arith.constant 0 : index
    %10 = vector.load %arg1[%c0_8, %c1_9, %c0_10] : memref<1x18x32xf32, #tpu.memory_space<vmem>>, vector<1x16x32xf32>
    %11 = vector.shape_cast %10 : vector<1x16x32xf32> to vector<16x32xf32>
    %12 = arith.truncf %11 : vector<16x32xf32> to vector<16x32xbf16>
    %c1_11 = arith.constant 1 : index
    %c0_12 = arith.constant 0 : index
    %c0_13 = arith.constant 0 : index
    %13 = vector.load %arg2[%c1_11, %c0_12, %c0_13] : memref<3x32x32xbf16, #tpu.memory_space<vmem>>, vector<1x32x32xbf16>
    %14 = vector.shape_cast %13 : vector<1x32x32xbf16> to vector<32x32xbf16>
    %cst_14 = arith.constant dense<0.000000e+00> : vector<16x32xf32>
    %15 = tpu.matmul %12, %14, %cst_14 {dimension_numbers = #tpu.dot_dimension_numbers<[1], [0], [0], [1], [0, 0, 1, 1], [], []>} : vector<16x32xbf16>, vector<32x32xbf16>, vector<16x32xf32> -> vector<16x32xf32>
    %16 = arith.addf %9, %15 : vector<16x32xf32>
    %c0_15 = arith.constant 0 : index
    %c2 = arith.constant 2 : index
    %c0_16 = arith.constant 0 : index
    %17 = vector.load %arg1[%c0_15, %c2, %c0_16] : memref<1x18x32xf32, #tpu.memory_space<vmem>>, vector<1x16x32xf32>
    %18 = vector.shape_cast %17 : vector<1x16x32xf32> to vector<16x32xf32>
    %19 = arith.truncf %18 : vector<16x32xf32> to vector<16x32xbf16>
    %c2_17 = arith.constant 2 : index
    %c0_18 = arith.constant 0 : index
    %c0_19 = arith.constant 0 : index
    %20 = vector.load %arg2[%c2_17, %c0_18, %c0_19] : memref<3x32x32xbf16, #tpu.memory_space<vmem>>, vector<1x32x32xbf16>
    %21 = vector.shape_cast %20 : vector<1x32x32xbf16> to vector<32x32xbf16>
    %cst_20 = arith.constant dense<0.000000e+00> : vector<16x32xf32>
    %22 = tpu.matmul %19, %21, %cst_20 {dimension_numbers = #tpu.dot_dimension_numbers<[1], [0], [0], [1], [0, 0, 1, 1], [], []>} : vector<16x32xbf16>, vector<32x32xbf16>, vector<16x32xf32> -> vector<16x32xf32>
    %23 = arith.addf %16, %22 : vector<16x32xf32>
    %c0_21 = arith.constant 0 : index
    %c0_22 = arith.constant 0 : index
    %24 = vector.load %arg3[%c0_21, %c0_22] : memref<1x32xf32, #tpu.memory_space<vmem>>, vector<1x32xf32>
    %25 = vector.broadcast %24 : vector<1x32xf32> to vector<16x32xf32>
    %26 = arith.addf %23, %25 : vector<16x32xf32>
    %cst_23 = arith.constant 0.000000e+00 : f32
    %27 = vector.broadcast %cst_23 : f32 to vector<16x32xf32>
    %28 = arith.maximumf %26, %27 : vector<16x32xf32>
    %cst_24 = arith.constant 0.000000e+00 : f32
    %29 = vector.broadcast %cst_24 : f32 to vector<18x32xf32>
    %c0_25 = arith.constant 0 : index
    %c0_26 = arith.constant 0 : index
    %30 = vector.load %arg10[%c0_25, %c0_26] : memref<18x32xf32, #tpu.memory_space<vmem>>, vector<18x32xf32>
    tpu.vector_store %arg10[%c0_25, %c0_26], %29 {strides = array<i32>} : memref<18x32xf32, #tpu.memory_space<vmem>>, vector<18x32xf32>,
    %c1_27 = arith.constant 1 : index
    %c0_28 = arith.constant 0 : index
    %31 = vector.load %arg10[%c1_27, %c0_28] : memref<18x32xf32, #tpu.memory_space<vmem>>, vector<16x32xf32>
    tpu.vector_store %arg10[%c1_27, %c0_28], %28 {strides = array<i32>} : memref<18x32xf32, #tpu.memory_space<vmem>>, vector<16x32xf32>,
    %cst_29 = arith.constant 0.000000e+00 : f32
    %32 = vector.broadcast %cst_29 : f32 to vector<16x32xf32>
    %c0_30 = arith.constant 0 : index
    %c0_31 = arith.constant 0 : index
    %33 = vector.load %arg10[%c0_30, %c0_31] : memref<18x32xf32, #tpu.memory_space<vmem>>, vector<16x32xf32>
    %34 = arith.truncf %33 : vector<16x32xf32> to vector<16x32xbf16>
    %c0_32 = arith.constant 0 : index
    %c0_33 = arith.constant 0 : index
    %c0_34 = arith.constant 0 : index
    %35 = vector.load %arg4[%c0_32, %c0_33, %c0_34] : memref<3x32x32xbf16, #tpu.memory_space<vmem>>, vector<1x32x32xbf16>
    %36 = vector.shape_cast %35 : vector<1x32x32xbf16> to vector<32x32xbf16>
    %cst_35 = arith.constant dense<0.000000e+00> : vector<16x32xf32>
    %37 = tpu.matmul %34, %36, %cst_35 {dimension_numbers = #tpu.dot_dimension_numbers<[1], [0], [0], [1], [0, 0, 1, 1], [], []>} : vector<16x32xbf16>, vector<32x32xbf16>, vector<16x32xf32> -> vector<16x32xf32>
    %38 = arith.addf %32, %37 : vector<16x32xf32>
    %c1_36 = arith.constant 1 : index
    %c0_37 = arith.constant 0 : index
    %39 = vector.load %arg10[%c1_36, %c0_37] : memref<18x32xf32, #tpu.memory_space<vmem>>, vector<16x32xf32>
    %40 = arith.truncf %39 : vector<16x32xf32> to vector<16x32xbf16>
    %c1_38 = arith.constant 1 : index
    %c0_39 = arith.constant 0 : index
    %c0_40 = arith.constant 0 : index
    %41 = vector.load %arg4[%c1_38, %c0_39, %c0_40] : memref<3x32x32xbf16, #tpu.memory_space<vmem>>, vector<1x32x32xbf16>
    %42 = vector.shape_cast %41 : vector<1x32x32xbf16> to vector<32x32xbf16>
    %cst_41 = arith.constant dense<0.000000e+00> : vector<16x32xf32>
    %43 = tpu.matmul %40, %42, %cst_41 {dimension_numbers = #tpu.dot_dimension_numbers<[1], [0], [0], [1], [0, 0, 1, 1], [], []>} : vector<16x32xbf16>, vector<32x32xbf16>, vector<16x32xf32> -> vector<16x32xf32>
    %44 = arith.addf %38, %43 : vector<16x32xf32>
    %c2_42 = arith.constant 2 : index
    %c0_43 = arith.constant 0 : index
    %45 = vector.load %arg10[%c2_42, %c0_43] : memref<18x32xf32, #tpu.memory_space<vmem>>, vector<16x32xf32>
    %46 = arith.truncf %45 : vector<16x32xf32> to vector<16x32xbf16>
    %c2_44 = arith.constant 2 : index
    %c0_45 = arith.constant 0 : index
    %c0_46 = arith.constant 0 : index
    %47 = vector.load %arg4[%c2_44, %c0_45, %c0_46] : memref<3x32x32xbf16, #tpu.memory_space<vmem>>, vector<1x32x32xbf16>
    %48 = vector.shape_cast %47 : vector<1x32x32xbf16> to vector<32x32xbf16>
    %cst_47 = arith.constant dense<0.000000e+00> : vector<16x32xf32>
    %49 = tpu.matmul %46, %48, %cst_47 {dimension_numbers = #tpu.dot_dimension_numbers<[1], [0], [0], [1], [0, 0, 1, 1], [], []>} : vector<16x32xbf16>, vector<32x32xbf16>, vector<16x32xf32> -> vector<16x32xf32>
    %50 = arith.addf %44, %49 : vector<16x32xf32>
    %c0_48 = arith.constant 0 : index
    %c0_49 = arith.constant 0 : index
    %51 = vector.load %arg5[%c0_48, %c0_49] : memref<1x32xf32, #tpu.memory_space<vmem>>, vector<1x32xf32>
    %52 = vector.broadcast %51 : vector<1x32xf32> to vector<16x32xf32>
    %53 = arith.addf %50, %52 : vector<16x32xf32>
    %54 = arith.addf %53, %1 : vector<16x32xf32>
    %cst_50 = arith.constant dense<0.000000e+00> : vector<16xf32>
    %55 = vector.multi_reduction <add>, %54, %cst_50 [1] : vector<16x32xf32> to vector<16xf32>
    %56 = vector.shape_cast %55 : vector<16xf32> to vector<16x1xf32>
    %cst_51 = arith.constant 3.200000e+01 : f32
    %57 = vector.broadcast %cst_51 : f32 to vector<16x1xf32>
    %58 = arith.divf %56, %57 : vector<16x1xf32>
    %59 = vector.broadcast %58 : vector<16x1xf32> to vector<16x32xf32>
    %60 = arith.subf %54, %59 : vector<16x32xf32>
    %61 = arith.mulf %60, %60 : vector<16x32xf32>
    %cst_52 = arith.constant dense<0.000000e+00> : vector<16xf32>
    %62 = vector.multi_reduction <add>, %61, %cst_52 [1] : vector<16x32xf32> to vector<16xf32>
    %63 = vector.shape_cast %62 : vector<16xf32> to vector<16x1xf32>
    %cst_53 = arith.constant 3.200000e+01 : f32
    %64 = vector.broadcast %cst_53 : f32 to vector<16x1xf32>
    %65 = arith.divf %63, %64 : vector<16x1xf32>
    %66 = vector.broadcast %58 : vector<16x1xf32> to vector<16x32xf32>
    %67 = arith.subf %54, %66 : vector<16x32xf32>
    %cst_54 = arith.constant 9.99999974E-6 : f32
    %68 = vector.broadcast %cst_54 : f32 to vector<16x1xf32>
    %69 = arith.addf %65, %68 : vector<16x1xf32>
    %70 = math.rsqrt %69 : vector<16x1xf32>
    %71 = vector.broadcast %70 : vector<16x1xf32> to vector<16x32xf32>
    %72 = arith.mulf %67, %71 : vector<16x32xf32>
    %c0_55 = arith.constant 0 : index
    %c0_56 = arith.constant 0 : index
    %73 = vector.load %arg6[%c0_55, %c0_56] : memref<1x32xf32, #tpu.memory_space<vmem>>, vector<1x32xf32>
    %74 = vector.broadcast %73 : vector<1x32xf32> to vector<16x32xf32>
    %75 = arith.mulf %72, %74 : vector<16x32xf32>
    %c0_57 = arith.constant 0 : index
    %c0_58 = arith.constant 0 : index
    %76 = vector.load %arg7[%c0_57, %c0_58] : memref<1x32xf32, #tpu.memory_space<vmem>>, vector<1x32xf32>
    %77 = vector.broadcast %76 : vector<1x32xf32> to vector<16x32xf32>
    %78 = arith.addf %75, %77 : vector<16x32xf32>
    %c0_59 = arith.constant 0 : index
    %c0_60 = arith.constant 0 : index
    %c0_61 = arith.constant 0 : index
    %79 = vector.load %arg8[%c0_59, %c0_60, %c0_61] : memref<1x16x1xf32, #tpu.memory_space<vmem>>, vector<1x16x1xf32>
    %80 = vector.shape_cast %79 : vector<1x16x1xf32> to vector<16x1xf32>
    %81 = vector.broadcast %80 : vector<16x1xf32> to vector<16x32xf32>
    %82 = arith.mulf %78, %81 : vector<16x32xf32>
    %c0_62 = arith.constant 0 : index
    %c0_63 = arith.constant 0 : index
    %c0_64 = arith.constant 0 : index
    %83 = vector.load %arg9[%c0_62, %c0_63, %c0_64] : memref<1x16x32xf32, #tpu.memory_space<vmem>>, vector<1x16x32xf32>
    %84 = vector.shape_cast %83 : vector<1x16x32xf32> to vector<16x32xf32>
    %85 = vector.shape_cast %82 : vector<16x32xf32> to vector<1x16x32xf32>
    tpu.vector_store %arg9[%c0_62, %c0_63, %c0_64], %85 {strides = array<i32>} : memref<1x16x32xf32, #tpu.memory_space<vmem>>, vector<1x16x32xf32>,
    return
  }
  func.func @transform_0(%arg0: i32) -> (i32, i32, i32) {
    %c0_i32 = arith.constant 0 : i32
    %c0_i32_0 = arith.constant 0 : i32
    %c0_i32_1 = arith.constant 0 : i32
    return %arg0, %c0_i32, %c0_i32_0 : i32, i32, i32
  }
  func.func @transform_1(%arg0: i32) -> (i32, i32, i32) {
    %c0_i32 = arith.constant 0 : i32
    %c0_i32_0 = arith.constant 0 : i32
    %c0_i32_1 = arith.constant 0 : i32
    %c0_i32_2 = arith.constant 0 : i32
    return %c0_i32, %c0_i32_0, %c0_i32_1 : i32, i32, i32
  }
  func.func @transform_2(%arg0: i32) -> (i32, i32) {
    %c0_i32 = arith.constant 0 : i32
    %c0_i32_0 = arith.constant 0 : i32
    %c0_i32_1 = arith.constant 0 : i32
    return %c0_i32, %c0_i32_0 : i32, i32
  }
  func.func @transform_3(%arg0: i32) -> (i32, i32, i32) {
    %c0_i32 = arith.constant 0 : i32
    %c0_i32_0 = arith.constant 0 : i32
    %c0_i32_1 = arith.constant 0 : i32
    %c0_i32_2 = arith.constant 0 : i32
    return %c0_i32, %c0_i32_0, %c0_i32_1 : i32, i32, i32
  }
  func.func @transform_4(%arg0: i32) -> (i32, i32) {
    %c0_i32 = arith.constant 0 : i32
    %c0_i32_0 = arith.constant 0 : i32
    %c0_i32_1 = arith.constant 0 : i32
    return %c0_i32, %c0_i32_0 : i32, i32
  }
  func.func @transform_5(%arg0: i32) -> (i32, i32) {
    %c0_i32 = arith.constant 0 : i32
    %c0_i32_0 = arith.constant 0 : i32
    %c0_i32_1 = arith.constant 0 : i32
    return %c0_i32, %c0_i32_0 : i32, i32
  }
  func.func @transform_6(%arg0: i32) -> (i32, i32) {
    %c0_i32 = arith.constant 0 : i32
    %c0_i32_0 = arith.constant 0 : i32
    %c0_i32_1 = arith.constant 0 : i32
    return %c0_i32, %c0_i32_0 : i32, i32
  }
  func.func @transform_7(%arg0: i32) -> (i32, i32, i32) {
    %c0_i32 = arith.constant 0 : i32
    %c0_i32_0 = arith.constant 0 : i32
    %c0_i32_1 = arith.constant 0 : i32
    return %arg0, %c0_i32, %c0_i32_0 : i32, i32, i32
  }
  func.func @transform_8(%arg0: i32) -> (i32, i32, i32) {
    %c0_i32 = arith.constant 0 : i32
    %c0_i32_0 = arith.constant 0 : i32
    %c0_i32_1 = arith.constant 0 : i32
    return %arg0, %c0_i32, %c0_i32_0 : i32, i32, i32
  }
}

module attributes {stable_mosaic.version = 11 : i64} {
  func.func @_linear_kernel(%arg0: i32, %arg1: memref<32x32xf32, #tpu.memory_space<vmem>>, %arg2: memref<32x16xbf16, #tpu.memory_space<vmem>>, %arg3: memref<1x16xf32, #tpu.memory_space<vmem>>, %arg4: memref<32x16xf32, #tpu.memory_space<vmem>>) attributes {dimension_semantics = [#tpu.dimension_semantics<parallel>], iteration_bounds = array<i64: 1>, scalar_prefetch = 0 : i64, scratch_operands = 0 : i64, tpu.core_type = #tpu.core_type<tc>, window_params = [{transform_indices = @transform_0, window_bounds = array<i64: 32, 32>}, {pipeline_mode = #tpu.pipeline_mode<synchronous>, transform_indices = @transform_1, window_bounds = array<i64: 32, 16>}, {pipeline_mode = #tpu.pipeline_mode<synchronous>, transform_indices = @transform_2, window_bounds = array<i64: 1, 16>}, {transform_indices = @transform_3, window_bounds = array<i64: 32, 16>}]} {
    %c0 = arith.constant 0 : index
    %c0_0 = arith.constant 0 : index
    %0 = vector.load %arg1[%c0, %c0_0] : memref<32x32xf32, #tpu.memory_space<vmem>>, vector<32x32xf32>
    %1 = arith.truncf %0 : vector<32x32xf32> to vector<32x32xbf16>
    %c0_1 = arith.constant 0 : index
    %c0_2 = arith.constant 0 : index
    %2 = vector.load %arg2[%c0_1, %c0_2] : memref<32x16xbf16, #tpu.memory_space<vmem>>, vector<32x16xbf16>
    %cst = arith.constant dense<0.000000e+00> : vector<32x16xf32>
    %3 = tpu.matmul %1, %2, %cst {dimension_numbers = #tpu.dot_dimension_numbers<[1], [0], [0], [1], [0, 0, 1, 1], [], []>} : vector<32x32xbf16>, vector<32x16xbf16>, vector<32x16xf32> -> vector<32x16xf32>
    %c0_3 = arith.constant 0 : index
    %c0_4 = arith.constant 0 : index
    %4 = vector.load %arg3[%c0_3, %c0_4] : memref<1x16xf32, #tpu.memory_space<vmem>>, vector<1x16xf32>
    %5 = vector.broadcast %4 : vector<1x16xf32> to vector<32x16xf32>
    %6 = arith.addf %3, %5 : vector<32x16xf32>
    %c0_5 = arith.constant 0 : index
    %c0_6 = arith.constant 0 : index
    %7 = vector.load %arg4[%c0_5, %c0_6] : memref<32x16xf32, #tpu.memory_space<vmem>>, vector<32x16xf32>
    tpu.vector_store %arg4[%c0_5, %c0_6], %6 {strides = array<i32>} : memref<32x16xf32, #tpu.memory_space<vmem>>, vector<32x16xf32>,
    return
  }
  func.func @transform_0(%arg0: i32) -> (i32, i32) {
    %c0_i32 = arith.constant 0 : i32
    %c0_i32_0 = arith.constant 0 : i32
    return %arg0, %c0_i32 : i32, i32
  }
  func.func @transform_1(%arg0: i32) -> (i32, i32) {
    %c0_i32 = arith.constant 0 : i32
    %c0_i32_0 = arith.constant 0 : i32
    %c0_i32_1 = arith.constant 0 : i32
    return %c0_i32, %c0_i32_0 : i32, i32
  }
  func.func @transform_2(%arg0: i32) -> (i32, i32) {
    %c0_i32 = arith.constant 0 : i32
    %c0_i32_0 = arith.constant 0 : i32
    %c0_i32_1 = arith.constant 0 : i32
    return %c0_i32, %c0_i32_0 : i32, i32
  }
  func.func @transform_3(%arg0: i32) -> (i32, i32) {
    %c0_i32 = arith.constant 0 : i32
    %c0_i32_0 = arith.constant 0 : i32
    return %arg0, %c0_i32 : i32, i32
  }
}

module attributes {stable_mosaic.version = 11 : i64} {
  func.func @_var_predictor_kernel(%arg0: i32, %arg1: memref<1x10x32xf32, #tpu.memory_space<vmem>>, %arg2: memref<3x3x32x32xbf16, #tpu.memory_space<vmem>>, %arg3: memref<3x32xf32, #tpu.memory_space<vmem>>, %arg4: memref<3x32xf32, #tpu.memory_space<vmem>>, %arg5: memref<3x32xf32, #tpu.memory_space<vmem>>, %arg6: memref<3x3x32x32xbf16, #tpu.memory_space<vmem>>, %arg7: memref<3x32xf32, #tpu.memory_space<vmem>>, %arg8: memref<3x32xf32, #tpu.memory_space<vmem>>, %arg9: memref<3x32xf32, #tpu.memory_space<vmem>>, %arg10: memref<32x3xbf16, #tpu.memory_space<vmem>>, %arg11: memref<1x3xf32, #tpu.memory_space<vmem>>, %arg12: memref<1x8x1xf32, #tpu.memory_space<vmem>>, %arg13: memref<1x8x3xf32, #tpu.memory_space<vmem>>, %arg14: memref<10x32xf32, #tpu.memory_space<vmem>>) attributes {dimension_semantics = [#tpu.dimension_semantics<parallel>], iteration_bounds = array<i64: 2>, scalar_prefetch = 0 : i64, scratch_operands = 1 : i64, tpu.core_type = #tpu.core_type<tc>, window_params = [{transform_indices = @transform_0, window_bounds = array<i64: 1, 10, 32>}, {pipeline_mode = #tpu.pipeline_mode<synchronous>, transform_indices = @transform_1, window_bounds = array<i64: 3, 3, 32, 32>}, {pipeline_mode = #tpu.pipeline_mode<synchronous>, transform_indices = @transform_2, window_bounds = array<i64: 3, 32>}, {pipeline_mode = #tpu.pipeline_mode<synchronous>, transform_indices = @transform_3, window_bounds = array<i64: 3, 32>}, {pipeline_mode = #tpu.pipeline_mode<synchronous>, transform_indices = @transform_4, window_bounds = array<i64: 3, 32>}, {pipeline_mode = #tpu.pipeline_mode<synchronous>, transform_indices = @transform_5, window_bounds = array<i64: 3, 3, 32, 32>}, {pipeline_mode = #tpu.pipeline_mode<synchronous>, transform_indices = @transform_6, window_bounds = array<i64: 3, 32>}, {pipeline_mode = #tpu.pipeline_mode<synchronous>, transform_indices = @transform_7, window_bounds = array<i64: 3, 32>}, {pipeline_mode = #tpu.pipeline_mode<synchronous>, transform_indices = @transform_8, window_bounds = array<i64: 3, 32>}, {pipeline_mode = #tpu.pipeline_mode<synchronous>, transform_indices = @transform_9, window_bounds = array<i64: 32, 3>}, {pipeline_mode = #tpu.pipeline_mode<synchronous>, transform_indices = @transform_10, window_bounds = array<i64: 1, 3>}, {transform_indices = @transform_11, window_bounds = array<i64: 1, 8, 1>}, {transform_indices = @transform_12, window_bounds = array<i64: 1, 8, 3>}]} {
    %cst = arith.constant 0.000000e+00 : f32
    %0 = vector.broadcast %cst : f32 to vector<8x3xf32>
    %cst_0 = arith.constant 0.000000e+00 : f32
    %1 = vector.broadcast %cst_0 : f32 to vector<8x32xf32>
    %c0 = arith.constant 0 : index
    %c0_1 = arith.constant 0 : index
    %c0_2 = arith.constant 0 : index
    %2 = vector.load %arg1[%c0, %c0_1, %c0_2] : memref<1x10x32xf32, #tpu.memory_space<vmem>>, vector<1x8x32xf32>
    %3 = vector.shape_cast %2 : vector<1x8x32xf32> to vector<8x32xf32>
    %4 = arith.truncf %3 : vector<8x32xf32> to vector<8x32xbf16>
    %c0_3 = arith.constant 0 : index
    %c0_4 = arith.constant 0 : index
    %c0_5 = arith.constant 0 : index
    %c0_6 = arith.constant 0 : index
    %5 = vector.load %arg2[%c0_3, %c0_4, %c0_5, %c0_6] : memref<3x3x32x32xbf16, #tpu.memory_space<vmem>>, vector<1x1x32x32xbf16>
    %6 = vector.shape_cast %5 : vector<1x1x32x32xbf16> to vector<32x32xbf16>
    %cst_7 = arith.constant dense<0.000000e+00> : vector<8x32xf32>
    %7 = tpu.matmul %4, %6, %cst_7 {dimension_numbers = #tpu.dot_dimension_numbers<[1], [0], [0], [1], [0, 0, 1, 1], [], []>} : vector<8x32xbf16>, vector<32x32xbf16>, vector<8x32xf32> -> vector<8x32xf32>
    %8 = arith.addf %1, %7 : vector<8x32xf32>
    %c0_8 = arith.constant 0 : index
    %c1 = arith.constant 1 : index
    %c0_9 = arith.constant 0 : index
    %9 = vector.load %arg1[%c0_8, %c1, %c0_9] : memref<1x10x32xf32, #tpu.memory_space<vmem>>, vector<1x8x32xf32>
    %10 = vector.shape_cast %9 : vector<1x8x32xf32> to vector<8x32xf32>
    %11 = arith.truncf %10 : vector<8x32xf32> to vector<8x32xbf16>
    %c0_10 = arith.constant 0 : index
    %c1_11 = arith.constant 1 : index
    %c0_12 = arith.constant 0 : index
    %c0_13 = arith.constant 0 : index
    %12 = vector.load %arg2[%c0_10, %c1_11, %c0_12, %c0_13] : memref<3x3x32x32xbf16, #tpu.memory_space<vmem>>, vector<1x1x32x32xbf16>
    %13 = vector.shape_cast %12 : vector<1x1x32x32xbf16> to vector<32x32xbf16>
    %cst_14 = arith.constant dense<0.000000e+00> : vector<8x32xf32>
    %14 = tpu.matmul %11, %13, %cst_14 {dimension_numbers = #tpu.dot_dimension_numbers<[1], [0], [0], [1], [0, 0, 1, 1], [], []>} : vector<8x32xbf16>, vector<32x32xbf16>, vector<8x32xf32> -> vector<8x32xf32>
    %15 = arith.addf %8, %14 : vector<8x32xf32>
    %c0_15 = arith.constant 0 : index
    %c2 = arith.constant 2 : index
    %c0_16 = arith.constant 0 : index
    %16 = vector.load %arg1[%c0_15, %c2, %c0_16] : memref<1x10x32xf32, #tpu.memory_space<vmem>>, vector<1x8x32xf32>
    %17 = vector.shape_cast %16 : vector<1x8x32xf32> to vector<8x32xf32>
    %18 = arith.truncf %17 : vector<8x32xf32> to vector<8x32xbf16>
    %c0_17 = arith.constant 0 : index
    %c2_18 = arith.constant 2 : index
    %c0_19 = arith.constant 0 : index
    %c0_20 = arith.constant 0 : index
    %19 = vector.load %arg2[%c0_17, %c2_18, %c0_19, %c0_20] : memref<3x3x32x32xbf16, #tpu.memory_space<vmem>>, vector<1x1x32x32xbf16>
    %20 = vector.shape_cast %19 : vector<1x1x32x32xbf16> to vector<32x32xbf16>
    %cst_21 = arith.constant dense<0.000000e+00> : vector<8x32xf32>
    %21 = tpu.matmul %18, %20, %cst_21 {dimension_numbers = #tpu.dot_dimension_numbers<[1], [0], [0], [1], [0, 0, 1, 1], [], []>} : vector<8x32xbf16>, vector<32x32xbf16>, vector<8x32xf32> -> vector<8x32xf32>
    %22 = arith.addf %15, %21 : vector<8x32xf32>
    %c0_22 = arith.constant 0 : index
    %c0_23 = arith.constant 0 : index
    %23 = vector.load %arg3[%c0_22, %c0_23] : memref<3x32xf32, #tpu.memory_space<vmem>>, vector<1x32xf32>
    %24 = vector.broadcast %23 : vector<1x32xf32> to vector<8x32xf32>
    %25 = arith.addf %22, %24 : vector<8x32xf32>
    %cst_24 = arith.constant 0.000000e+00 : f32
    %26 = vector.broadcast %cst_24 : f32 to vector<8x32xf32>
    %27 = arith.maximumf %25, %26 : vector<8x32xf32>
    %cst_25 = arith.constant dense<0.000000e+00> : vector<8xf32>
    %28 = vector.multi_reduction <add>, %27, %cst_25 [1] : vector<8x32xf32> to vector<8xf32>
    %29 = vector.shape_cast %28 : vector<8xf32> to vector<8x1xf32>
    %cst_26 = arith.constant 3.200000e+01 : f32
    %30 = vector.broadcast %cst_26 : f32 to vector<8x1xf32>
    %31 = arith.divf %29, %30 : vector<8x1xf32>
    %32 = vector.broadcast %31 : vector<8x1xf32> to vector<8x32xf32>
    %33 = arith.subf %27, %32 : vector<8x32xf32>
    %34 = arith.mulf %33, %33 : vector<8x32xf32>
    %cst_27 = arith.constant dense<0.000000e+00> : vector<8xf32>
    %35 = vector.multi_reduction <add>, %34, %cst_27 [1] : vector<8x32xf32> to vector<8xf32>
    %36 = vector.shape_cast %35 : vector<8xf32> to vector<8x1xf32>
    %cst_28 = arith.constant 3.200000e+01 : f32
    %37 = vector.broadcast %cst_28 : f32 to vector<8x1xf32>
    %38 = arith.divf %36, %37 : vector<8x1xf32>
    %39 = vector.broadcast %31 : vector<8x1xf32> to vector<8x32xf32>
    %40 = arith.subf %27, %39 : vector<8x32xf32>
    %cst_29 = arith.constant 9.99999974E-6 : f32
    %41 = vector.broadcast %cst_29 : f32 to vector<8x1xf32>
    %42 = arith.addf %38, %41 : vector<8x1xf32>
    %43 = math.rsqrt %42 : vector<8x1xf32>
    %44 = vector.broadcast %43 : vector<8x1xf32> to vector<8x32xf32>
    %45 = arith.mulf %40, %44 : vector<8x32xf32>
    %c0_30 = arith.constant 0 : index
    %c0_31 = arith.constant 0 : index
    %46 = vector.load %arg4[%c0_30, %c0_31] : memref<3x32xf32, #tpu.memory_space<vmem>>, vector<1x32xf32>
    %47 = vector.broadcast %46 : vector<1x32xf32> to vector<8x32xf32>
    %48 = arith.mulf %45, %47 : vector<8x32xf32>
    %c0_32 = arith.constant 0 : index
    %c0_33 = arith.constant 0 : index
    %49 = vector.load %arg5[%c0_32, %c0_33] : memref<3x32xf32, #tpu.memory_space<vmem>>, vector<1x32xf32>
    %50 = vector.broadcast %49 : vector<1x32xf32> to vector<8x32xf32>
    %51 = arith.addf %48, %50 : vector<8x32xf32>
    %cst_34 = arith.constant 0.000000e+00 : f32
    %52 = vector.broadcast %cst_34 : f32 to vector<10x32xf32>
    %c0_35 = arith.constant 0 : index
    %c0_36 = arith.constant 0 : index
    %53 = vector.load %arg14[%c0_35, %c0_36] : memref<10x32xf32, #tpu.memory_space<vmem>>, vector<10x32xf32>
    tpu.vector_store %arg14[%c0_35, %c0_36], %52 {strides = array<i32>} : memref<10x32xf32, #tpu.memory_space<vmem>>, vector<10x32xf32>,
    %c1_37 = arith.constant 1 : index
    %c0_38 = arith.constant 0 : index
    %54 = vector.load %arg14[%c1_37, %c0_38] : memref<10x32xf32, #tpu.memory_space<vmem>>, vector<8x32xf32>
    tpu.vector_store %arg14[%c1_37, %c0_38], %51 {strides = array<i32>} : memref<10x32xf32, #tpu.memory_space<vmem>>, vector<8x32xf32>,
    %cst_39 = arith.constant 0.000000e+00 : f32
    %55 = vector.broadcast %cst_39 : f32 to vector<8x32xf32>
    %c0_40 = arith.constant 0 : index
    %c0_41 = arith.constant 0 : index
    %56 = vector.load %arg14[%c0_40, %c0_41] : memref<10x32xf32, #tpu.memory_space<vmem>>, vector<8x32xf32>
    %57 = arith.truncf %56 : vector<8x32xf32> to vector<8x32xbf16>
    %c0_42 = arith.constant 0 : index
    %c0_43 = arith.constant 0 : index
    %c0_44 = arith.constant 0 : index
    %c0_45 = arith.constant 0 : index
    %58 = vector.load %arg6[%c0_42, %c0_43, %c0_44, %c0_45] : memref<3x3x32x32xbf16, #tpu.memory_space<vmem>>, vector<1x1x32x32xbf16>
    %59 = vector.shape_cast %58 : vector<1x1x32x32xbf16> to vector<32x32xbf16>
    %cst_46 = arith.constant dense<0.000000e+00> : vector<8x32xf32>
    %60 = tpu.matmul %57, %59, %cst_46 {dimension_numbers = #tpu.dot_dimension_numbers<[1], [0], [0], [1], [0, 0, 1, 1], [], []>} : vector<8x32xbf16>, vector<32x32xbf16>, vector<8x32xf32> -> vector<8x32xf32>
    %61 = arith.addf %55, %60 : vector<8x32xf32>
    %c1_47 = arith.constant 1 : index
    %c0_48 = arith.constant 0 : index
    %62 = vector.load %arg14[%c1_47, %c0_48] : memref<10x32xf32, #tpu.memory_space<vmem>>, vector<8x32xf32>
    %63 = arith.truncf %62 : vector<8x32xf32> to vector<8x32xbf16>
    %c0_49 = arith.constant 0 : index
    %c1_50 = arith.constant 1 : index
    %c0_51 = arith.constant 0 : index
    %c0_52 = arith.constant 0 : index
    %64 = vector.load %arg6[%c0_49, %c1_50, %c0_51, %c0_52] : memref<3x3x32x32xbf16, #tpu.memory_space<vmem>>, vector<1x1x32x32xbf16>
    %65 = vector.shape_cast %64 : vector<1x1x32x32xbf16> to vector<32x32xbf16>
    %cst_53 = arith.constant dense<0.000000e+00> : vector<8x32xf32>
    %66 = tpu.matmul %63, %65, %cst_53 {dimension_numbers = #tpu.dot_dimension_numbers<[1], [0], [0], [1], [0, 0, 1, 1], [], []>} : vector<8x32xbf16>, vector<32x32xbf16>, vector<8x32xf32> -> vector<8x32xf32>
    %67 = arith.addf %61, %66 : vector<8x32xf32>
    %c2_54 = arith.constant 2 : index
    %c0_55 = arith.constant 0 : index
    %68 = vector.load %arg14[%c2_54, %c0_55] : memref<10x32xf32, #tpu.memory_space<vmem>>, vector<8x32xf32>
    %69 = arith.truncf %68 : vector<8x32xf32> to vector<8x32xbf16>
    %c0_56 = arith.constant 0 : index
    %c2_57 = arith.constant 2 : index
    %c0_58 = arith.constant 0 : index
    %c0_59 = arith.constant 0 : index
    %70 = vector.load %arg6[%c0_56, %c2_57, %c0_58, %c0_59] : memref<3x3x32x32xbf16, #tpu.memory_space<vmem>>, vector<1x1x32x32xbf16>
    %71 = vector.shape_cast %70 : vector<1x1x32x32xbf16> to vector<32x32xbf16>
    %cst_60 = arith.constant dense<0.000000e+00> : vector<8x32xf32>
    %72 = tpu.matmul %69, %71, %cst_60 {dimension_numbers = #tpu.dot_dimension_numbers<[1], [0], [0], [1], [0, 0, 1, 1], [], []>} : vector<8x32xbf16>, vector<32x32xbf16>, vector<8x32xf32> -> vector<8x32xf32>
    %73 = arith.addf %67, %72 : vector<8x32xf32>
    %c0_61 = arith.constant 0 : index
    %c0_62 = arith.constant 0 : index
    %74 = vector.load %arg7[%c0_61, %c0_62] : memref<3x32xf32, #tpu.memory_space<vmem>>, vector<1x32xf32>
    %75 = vector.broadcast %74 : vector<1x32xf32> to vector<8x32xf32>
    %76 = arith.addf %73, %75 : vector<8x32xf32>
    %cst_63 = arith.constant 0.000000e+00 : f32
    %77 = vector.broadcast %cst_63 : f32 to vector<8x32xf32>
    %78 = arith.maximumf %76, %77 : vector<8x32xf32>
    %cst_64 = arith.constant dense<0.000000e+00> : vector<8xf32>
    %79 = vector.multi_reduction <add>, %78, %cst_64 [1] : vector<8x32xf32> to vector<8xf32>
    %80 = vector.shape_cast %79 : vector<8xf32> to vector<8x1xf32>
    %cst_65 = arith.constant 3.200000e+01 : f32
    %81 = vector.broadcast %cst_65 : f32 to vector<8x1xf32>
    %82 = arith.divf %80, %81 : vector<8x1xf32>
    %83 = vector.broadcast %82 : vector<8x1xf32> to vector<8x32xf32>
    %84 = arith.subf %78, %83 : vector<8x32xf32>
    %85 = arith.mulf %84, %84 : vector<8x32xf32>
    %cst_66 = arith.constant dense<0.000000e+00> : vector<8xf32>
    %86 = vector.multi_reduction <add>, %85, %cst_66 [1] : vector<8x32xf32> to vector<8xf32>
    %87 = vector.shape_cast %86 : vector<8xf32> to vector<8x1xf32>
    %cst_67 = arith.constant 3.200000e+01 : f32
    %88 = vector.broadcast %cst_67 : f32 to vector<8x1xf32>
    %89 = arith.divf %87, %88 : vector<8x1xf32>
    %90 = vector.broadcast %82 : vector<8x1xf32> to vector<8x32xf32>
    %91 = arith.subf %78, %90 : vector<8x32xf32>
    %cst_68 = arith.constant 9.99999974E-6 : f32
    %92 = vector.broadcast %cst_68 : f32 to vector<8x1xf32>
    %93 = arith.addf %89, %92 : vector<8x1xf32>
    %94 = math.rsqrt %93 : vector<8x1xf32>
    %95 = vector.broadcast %94 : vector<8x1xf32> to vector<8x32xf32>
    %96 = arith.mulf %91, %95 : vector<8x32xf32>
    %c0_69 = arith.constant 0 : index
    %c0_70 = arith.constant 0 : index
    %97 = vector.load %arg8[%c0_69, %c0_70] : memref<3x32xf32, #tpu.memory_space<vmem>>, vector<1x32xf32>
    %98 = vector.broadcast %97 : vector<1x32xf32> to vector<8x32xf32>
    %99 = arith.mulf %96, %98 : vector<8x32xf32>
    %c0_71 = arith.constant 0 : index
    %c0_72 = arith.constant 0 : index
    %100 = vector.load %arg9[%c0_71, %c0_72] : memref<3x32xf32, #tpu.memory_space<vmem>>, vector<1x32xf32>
    %101 = vector.broadcast %100 : vector<1x32xf32> to vector<8x32xf32>
    %102 = arith.addf %99, %101 : vector<8x32xf32>
    %103 = arith.truncf %102 : vector<8x32xf32> to vector<8x32xbf16>
    %c0_73 = arith.constant 0 : index
    %c0_74 = arith.constant 0 : index
    %104 = vector.load %arg10[%c0_73, %c0_74] : memref<32x3xbf16, #tpu.memory_space<vmem>>, vector<32x1xbf16>
    %cst_75 = arith.constant dense<0.000000e+00> : vector<8x1xf32>
    %105 = tpu.matmul %103, %104, %cst_75 {dimension_numbers = #tpu.dot_dimension_numbers<[1], [0], [0], [1], [0, 0, 1, 1], [], []>} : vector<8x32xbf16>, vector<32x1xbf16>, vector<8x1xf32> -> vector<8x1xf32>
    %106 = tpu.iota {dimensions = array<i32: 1>} : vector<1x3xi32>
    %c0_i32 = arith.constant 0 : i32
    %107 = vector.broadcast %c0_i32 : i32 to vector<1x3xi32>
    %108 = arith.cmpi eq, %106, %107 : vector<1x3xi32>
    %109 = arith.extui %108 : vector<1x3xi1> to vector<1x3xi32>
    %110 = arith.sitofp %109 : vector<1x3xi32> to vector<1x3xf32>
    %111 = vector.broadcast %105 : vector<8x1xf32> to vector<8x3xf32>
    %112 = vector.broadcast %110 : vector<1x3xf32> to vector<8x3xf32>
    %113 = arith.mulf %111, %112 : vector<8x3xf32>
    %114 = arith.addf %0, %113 : vector<8x3xf32>
    %cst_76 = arith.constant 0.000000e+00 : f32
    %115 = vector.broadcast %cst_76 : f32 to vector<8x32xf32>
    %c0_77 = arith.constant 0 : index
    %c0_78 = arith.constant 0 : index
    %c0_79 = arith.constant 0 : index
    %116 = vector.load %arg1[%c0_77, %c0_78, %c0_79] : memref<1x10x32xf32, #tpu.memory_space<vmem>>, vector<1x8x32xf32>
    %117 = vector.shape_cast %116 : vector<1x8x32xf32> to vector<8x32xf32>
    %118 = arith.truncf %117 : vector<8x32xf32> to vector<8x32xbf16>
    %c1_80 = arith.constant 1 : index
    %c0_81 = arith.constant 0 : index
    %c0_82 = arith.constant 0 : index
    %c0_83 = arith.constant 0 : index
    %119 = vector.load %arg2[%c1_80, %c0_81, %c0_82, %c0_83] : memref<3x3x32x32xbf16, #tpu.memory_space<vmem>>, vector<1x1x32x32xbf16>
    %120 = vector.shape_cast %119 : vector<1x1x32x32xbf16> to vector<32x32xbf16>
    %cst_84 = arith.constant dense<0.000000e+00> : vector<8x32xf32>
    %121 = tpu.matmul %118, %120, %cst_84 {dimension_numbers = #tpu.dot_dimension_numbers<[1], [0], [0], [1], [0, 0, 1, 1], [], []>} : vector<8x32xbf16>, vector<32x32xbf16>, vector<8x32xf32> -> vector<8x32xf32>
    %122 = arith.addf %115, %121 : vector<8x32xf32>
    %c0_85 = arith.constant 0 : index
    %c1_86 = arith.constant 1 : index
    %c0_87 = arith.constant 0 : index
    %123 = vector.load %arg1[%c0_85, %c1_86, %c0_87] : memref<1x10x32xf32, #tpu.memory_space<vmem>>, vector<1x8x32xf32>
    %124 = vector.shape_cast %123 : vector<1x8x32xf32> to vector<8x32xf32>
    %125 = arith.truncf %124 : vector<8x32xf32> to vector<8x32xbf16>
    %c1_88 = arith.constant 1 : index
    %c1_89 = arith.constant 1 : index
    %c0_90 = arith.constant 0 : index
    %c0_91 = arith.constant 0 : index
    %126 = vector.load %arg2[%c1_88, %c1_89, %c0_90, %c0_91] : memref<3x3x32x32xbf16, #tpu.memory_space<vmem>>, vector<1x1x32x32xbf16>
    %127 = vector.shape_cast %126 : vector<1x1x32x32xbf16> to vector<32x32xbf16>
    %cst_92 = arith.constant dense<0.000000e+00> : vector<8x32xf32>
    %128 = tpu.matmul %125, %127, %cst_92 {dimension_numbers = #tpu.dot_dimension_numbers<[1], [0], [0], [1], [0, 0, 1, 1], [], []>} : vector<8x32xbf16>, vector<32x32xbf16>, vector<8x32xf32> -> vector<8x32xf32>
    %129 = arith.addf %122, %128 : vector<8x32xf32>
    %c0_93 = arith.constant 0 : index
    %c2_94 = arith.constant 2 : index
    %c0_95 = arith.constant 0 : index
    %130 = vector.load %arg1[%c0_93, %c2_94, %c0_95] : memref<1x10x32xf32, #tpu.memory_space<vmem>>, vector<1x8x32xf32>
    %131 = vector.shape_cast %130 : vector<1x8x32xf32> to vector<8x32xf32>
    %132 = arith.truncf %131 : vector<8x32xf32> to vector<8x32xbf16>
    %c1_96 = arith.constant 1 : index
    %c2_97 = arith.constant 2 : index
    %c0_98 = arith.constant 0 : index
    %c0_99 = arith.constant 0 : index
    %133 = vector.load %arg2[%c1_96, %c2_97, %c0_98, %c0_99] : memref<3x3x32x32xbf16, #tpu.memory_space<vmem>>, vector<1x1x32x32xbf16>
    %134 = vector.shape_cast %133 : vector<1x1x32x32xbf16> to vector<32x32xbf16>
    %cst_100 = arith.constant dense<0.000000e+00> : vector<8x32xf32>
    %135 = tpu.matmul %132, %134, %cst_100 {dimension_numbers = #tpu.dot_dimension_numbers<[1], [0], [0], [1], [0, 0, 1, 1], [], []>} : vector<8x32xbf16>, vector<32x32xbf16>, vector<8x32xf32> -> vector<8x32xf32>
    %136 = arith.addf %129, %135 : vector<8x32xf32>
    %c1_101 = arith.constant 1 : index
    %c0_102 = arith.constant 0 : index
    %137 = vector.load %arg3[%c1_101, %c0_102] : memref<3x32xf32, #tpu.memory_space<vmem>>, vector<1x32xf32>
    %138 = vector.broadcast %137 : vector<1x32xf32> to vector<8x32xf32>
    %139 = arith.addf %136, %138 : vector<8x32xf32>
    %cst_103 = arith.constant 0.000000e+00 : f32
    %140 = vector.broadcast %cst_103 : f32 to vector<8x32xf32>
    %141 = arith.maximumf %139, %140 : vector<8x32xf32>
    %cst_104 = arith.constant dense<0.000000e+00> : vector<8xf32>
    %142 = vector.multi_reduction <add>, %141, %cst_104 [1] : vector<8x32xf32> to vector<8xf32>
    %143 = vector.shape_cast %142 : vector<8xf32> to vector<8x1xf32>
    %cst_105 = arith.constant 3.200000e+01 : f32
    %144 = vector.broadcast %cst_105 : f32 to vector<8x1xf32>
    %145 = arith.divf %143, %144 : vector<8x1xf32>
    %146 = vector.broadcast %145 : vector<8x1xf32> to vector<8x32xf32>
    %147 = arith.subf %141, %146 : vector<8x32xf32>
    %148 = arith.mulf %147, %147 : vector<8x32xf32>
    %cst_106 = arith.constant dense<0.000000e+00> : vector<8xf32>
    %149 = vector.multi_reduction <add>, %148, %cst_106 [1] : vector<8x32xf32> to vector<8xf32>
    %150 = vector.shape_cast %149 : vector<8xf32> to vector<8x1xf32>
    %cst_107 = arith.constant 3.200000e+01 : f32
    %151 = vector.broadcast %cst_107 : f32 to vector<8x1xf32>
    %152 = arith.divf %150, %151 : vector<8x1xf32>
    %153 = vector.broadcast %145 : vector<8x1xf32> to vector<8x32xf32>
    %154 = arith.subf %141, %153 : vector<8x32xf32>
    %cst_108 = arith.constant 9.99999974E-6 : f32
    %155 = vector.broadcast %cst_108 : f32 to vector<8x1xf32>
    %156 = arith.addf %152, %155 : vector<8x1xf32>
    %157 = math.rsqrt %156 : vector<8x1xf32>
    %158 = vector.broadcast %157 : vector<8x1xf32> to vector<8x32xf32>
    %159 = arith.mulf %154, %158 : vector<8x32xf32>
    %c1_109 = arith.constant 1 : index
    %c0_110 = arith.constant 0 : index
    %160 = vector.load %arg4[%c1_109, %c0_110] : memref<3x32xf32, #tpu.memory_space<vmem>>, vector<1x32xf32>
    %161 = vector.broadcast %160 : vector<1x32xf32> to vector<8x32xf32>
    %162 = arith.mulf %159, %161 : vector<8x32xf32>
    %c1_111 = arith.constant 1 : index
    %c0_112 = arith.constant 0 : index
    %163 = vector.load %arg5[%c1_111, %c0_112] : memref<3x32xf32, #tpu.memory_space<vmem>>, vector<1x32xf32>
    %164 = vector.broadcast %163 : vector<1x32xf32> to vector<8x32xf32>
    %165 = arith.addf %162, %164 : vector<8x32xf32>
    %cst_113 = arith.constant 0.000000e+00 : f32
    %166 = vector.broadcast %cst_113 : f32 to vector<10x32xf32>
    %c0_114 = arith.constant 0 : index
    %c0_115 = arith.constant 0 : index
    %167 = vector.load %arg14[%c0_114, %c0_115] : memref<10x32xf32, #tpu.memory_space<vmem>>, vector<10x32xf32>
    tpu.vector_store %arg14[%c0_114, %c0_115], %166 {strides = array<i32>} : memref<10x32xf32, #tpu.memory_space<vmem>>, vector<10x32xf32>,
    %c1_116 = arith.constant 1 : index
    %c0_117 = arith.constant 0 : index
    %168 = vector.load %arg14[%c1_116, %c0_117] : memref<10x32xf32, #tpu.memory_space<vmem>>, vector<8x32xf32>
    tpu.vector_store %arg14[%c1_116, %c0_117], %165 {strides = array<i32>} : memref<10x32xf32, #tpu.memory_space<vmem>>, vector<8x32xf32>,
    %cst_118 = arith.constant 0.000000e+00 : f32
    %169 = vector.broadcast %cst_118 : f32 to vector<8x32xf32>
    %c0_119 = arith.constant 0 : index
    %c0_120 = arith.constant 0 : index
    %170 = vector.load %arg14[%c0_119, %c0_120] : memref<10x32xf32, #tpu.memory_space<vmem>>, vector<8x32xf32>
    %171 = arith.truncf %170 : vector<8x32xf32> to vector<8x32xbf16>
    %c1_121 = arith.constant 1 : index
    %c0_122 = arith.constant 0 : index
    %c0_123 = arith.constant 0 : index
    %c0_124 = arith.constant 0 : index
    %172 = vector.load %arg6[%c1_121, %c0_122, %c0_123, %c0_124] : memref<3x3x32x32xbf16, #tpu.memory_space<vmem>>, vector<1x1x32x32xbf16>
    %173 = vector.shape_cast %172 : vector<1x1x32x32xbf16> to vector<32x32xbf16>
    %cst_125 = arith.constant dense<0.000000e+00> : vector<8x32xf32>
    %174 = tpu.matmul %171, %173, %cst_125 {dimension_numbers = #tpu.dot_dimension_numbers<[1], [0], [0], [1], [0, 0, 1, 1], [], []>} : vector<8x32xbf16>, vector<32x32xbf16>, vector<8x32xf32> -> vector<8x32xf32>
    %175 = arith.addf %169, %174 : vector<8x32xf32>
    %c1_126 = arith.constant 1 : index
    %c0_127 = arith.constant 0 : index
    %176 = vector.load %arg14[%c1_126, %c0_127] : memref<10x32xf32, #tpu.memory_space<vmem>>, vector<8x32xf32>
    %177 = arith.truncf %176 : vector<8x32xf32> to vector<8x32xbf16>
    %c1_128 = arith.constant 1 : index
    %c1_129 = arith.constant 1 : index
    %c0_130 = arith.constant 0 : index
    %c0_131 = arith.constant 0 : index
    %178 = vector.load %arg6[%c1_128, %c1_129, %c0_130, %c0_131] : memref<3x3x32x32xbf16, #tpu.memory_space<vmem>>, vector<1x1x32x32xbf16>
    %179 = vector.shape_cast %178 : vector<1x1x32x32xbf16> to vector<32x32xbf16>
    %cst_132 = arith.constant dense<0.000000e+00> : vector<8x32xf32>
    %180 = tpu.matmul %177, %179, %cst_132 {dimension_numbers = #tpu.dot_dimension_numbers<[1], [0], [0], [1], [0, 0, 1, 1], [], []>} : vector<8x32xbf16>, vector<32x32xbf16>, vector<8x32xf32> -> vector<8x32xf32>
    %181 = arith.addf %175, %180 : vector<8x32xf32>
    %c2_133 = arith.constant 2 : index
    %c0_134 = arith.constant 0 : index
    %182 = vector.load %arg14[%c2_133, %c0_134] : memref<10x32xf32, #tpu.memory_space<vmem>>, vector<8x32xf32>
    %183 = arith.truncf %182 : vector<8x32xf32> to vector<8x32xbf16>
    %c1_135 = arith.constant 1 : index
    %c2_136 = arith.constant 2 : index
    %c0_137 = arith.constant 0 : index
    %c0_138 = arith.constant 0 : index
    %184 = vector.load %arg6[%c1_135, %c2_136, %c0_137, %c0_138] : memref<3x3x32x32xbf16, #tpu.memory_space<vmem>>, vector<1x1x32x32xbf16>
    %185 = vector.shape_cast %184 : vector<1x1x32x32xbf16> to vector<32x32xbf16>
    %cst_139 = arith.constant dense<0.000000e+00> : vector<8x32xf32>
    %186 = tpu.matmul %183, %185, %cst_139 {dimension_numbers = #tpu.dot_dimension_numbers<[1], [0], [0], [1], [0, 0, 1, 1], [], []>} : vector<8x32xbf16>, vector<32x32xbf16>, vector<8x32xf32> -> vector<8x32xf32>
    %187 = arith.addf %181, %186 : vector<8x32xf32>
    %c1_140 = arith.constant 1 : index
    %c0_141 = arith.constant 0 : index
    %188 = vector.load %arg7[%c1_140, %c0_141] : memref<3x32xf32, #tpu.memory_space<vmem>>, vector<1x32xf32>
    %189 = vector.broadcast %188 : vector<1x32xf32> to vector<8x32xf32>
    %190 = arith.addf %187, %189 : vector<8x32xf32>
    %cst_142 = arith.constant 0.000000e+00 : f32
    %191 = vector.broadcast %cst_142 : f32 to vector<8x32xf32>
    %192 = arith.maximumf %190, %191 : vector<8x32xf32>
    %cst_143 = arith.constant dense<0.000000e+00> : vector<8xf32>
    %193 = vector.multi_reduction <add>, %192, %cst_143 [1] : vector<8x32xf32> to vector<8xf32>
    %194 = vector.shape_cast %193 : vector<8xf32> to vector<8x1xf32>
    %cst_144 = arith.constant 3.200000e+01 : f32
    %195 = vector.broadcast %cst_144 : f32 to vector<8x1xf32>
    %196 = arith.divf %194, %195 : vector<8x1xf32>
    %197 = vector.broadcast %196 : vector<8x1xf32> to vector<8x32xf32>
    %198 = arith.subf %192, %197 : vector<8x32xf32>
    %199 = arith.mulf %198, %198 : vector<8x32xf32>
    %cst_145 = arith.constant dense<0.000000e+00> : vector<8xf32>
    %200 = vector.multi_reduction <add>, %199, %cst_145 [1] : vector<8x32xf32> to vector<8xf32>
    %201 = vector.shape_cast %200 : vector<8xf32> to vector<8x1xf32>
    %cst_146 = arith.constant 3.200000e+01 : f32
    %202 = vector.broadcast %cst_146 : f32 to vector<8x1xf32>
    %203 = arith.divf %201, %202 : vector<8x1xf32>
    %204 = vector.broadcast %196 : vector<8x1xf32> to vector<8x32xf32>
    %205 = arith.subf %192, %204 : vector<8x32xf32>
    %cst_147 = arith.constant 9.99999974E-6 : f32
    %206 = vector.broadcast %cst_147 : f32 to vector<8x1xf32>
    %207 = arith.addf %203, %206 : vector<8x1xf32>
    %208 = math.rsqrt %207 : vector<8x1xf32>
    %209 = vector.broadcast %208 : vector<8x1xf32> to vector<8x32xf32>
    %210 = arith.mulf %205, %209 : vector<8x32xf32>
    %c1_148 = arith.constant 1 : index
    %c0_149 = arith.constant 0 : index
    %211 = vector.load %arg8[%c1_148, %c0_149] : memref<3x32xf32, #tpu.memory_space<vmem>>, vector<1x32xf32>
    %212 = vector.broadcast %211 : vector<1x32xf32> to vector<8x32xf32>
    %213 = arith.mulf %210, %212 : vector<8x32xf32>
    %c1_150 = arith.constant 1 : index
    %c0_151 = arith.constant 0 : index
    %214 = vector.load %arg9[%c1_150, %c0_151] : memref<3x32xf32, #tpu.memory_space<vmem>>, vector<1x32xf32>
    %215 = vector.broadcast %214 : vector<1x32xf32> to vector<8x32xf32>
    %216 = arith.addf %213, %215 : vector<8x32xf32>
    %217 = arith.truncf %216 : vector<8x32xf32> to vector<8x32xbf16>
    %c0_152 = arith.constant 0 : index
    %c1_153 = arith.constant 1 : index
    %218 = vector.load %arg10[%c0_152, %c1_153] : memref<32x3xbf16, #tpu.memory_space<vmem>>, vector<32x1xbf16>
    %cst_154 = arith.constant dense<0.000000e+00> : vector<8x1xf32>
    %219 = tpu.matmul %217, %218, %cst_154 {dimension_numbers = #tpu.dot_dimension_numbers<[1], [0], [0], [1], [0, 0, 1, 1], [], []>} : vector<8x32xbf16>, vector<32x1xbf16>, vector<8x1xf32> -> vector<8x1xf32>
    %220 = tpu.iota {dimensions = array<i32: 1>} : vector<1x3xi32>
    %c1_i32 = arith.constant 1 : i32
    %221 = vector.broadcast %c1_i32 : i32 to vector<1x3xi32>
    %222 = arith.cmpi eq, %220, %221 : vector<1x3xi32>
    %223 = arith.extui %222 : vector<1x3xi1> to vector<1x3xi32>
    %224 = arith.sitofp %223 : vector<1x3xi32> to vector<1x3xf32>
    %225 = vector.broadcast %219 : vector<8x1xf32> to vector<8x3xf32>
    %226 = vector.broadcast %224 : vector<1x3xf32> to vector<8x3xf32>
    %227 = arith.mulf %225, %226 : vector<8x3xf32>
    %228 = arith.addf %114, %227 : vector<8x3xf32>
    %cst_155 = arith.constant 0.000000e+00 : f32
    %229 = vector.broadcast %cst_155 : f32 to vector<8x32xf32>
    %c0_156 = arith.constant 0 : index
    %c0_157 = arith.constant 0 : index
    %c0_158 = arith.constant 0 : index
    %230 = vector.load %arg1[%c0_156, %c0_157, %c0_158] : memref<1x10x32xf32, #tpu.memory_space<vmem>>, vector<1x8x32xf32>
    %231 = vector.shape_cast %230 : vector<1x8x32xf32> to vector<8x32xf32>
    %232 = arith.truncf %231 : vector<8x32xf32> to vector<8x32xbf16>
    %c2_159 = arith.constant 2 : index
    %c0_160 = arith.constant 0 : index
    %c0_161 = arith.constant 0 : index
    %c0_162 = arith.constant 0 : index
    %233 = vector.load %arg2[%c2_159, %c0_160, %c0_161, %c0_162] : memref<3x3x32x32xbf16, #tpu.memory_space<vmem>>, vector<1x1x32x32xbf16>
    %234 = vector.shape_cast %233 : vector<1x1x32x32xbf16> to vector<32x32xbf16>
    %cst_163 = arith.constant dense<0.000000e+00> : vector<8x32xf32>
    %235 = tpu.matmul %232, %234, %cst_163 {dimension_numbers = #tpu.dot_dimension_numbers<[1], [0], [0], [1], [0, 0, 1, 1], [], []>} : vector<8x32xbf16>, vector<32x32xbf16>, vector<8x32xf32> -> vector<8x32xf32>
    %236 = arith.addf %229, %235 : vector<8x32xf32>
    %c0_164 = arith.constant 0 : index
    %c1_165 = arith.constant 1 : index
    %c0_166 = arith.constant 0 : index
    %237 = vector.load %arg1[%c0_164, %c1_165, %c0_166] : memref<1x10x32xf32, #tpu.memory_space<vmem>>, vector<1x8x32xf32>
    %238 = vector.shape_cast %237 : vector<1x8x32xf32> to vector<8x32xf32>
    %239 = arith.truncf %238 : vector<8x32xf32> to vector<8x32xbf16>
    %c2_167 = arith.constant 2 : index
    %c1_168 = arith.constant 1 : index
    %c0_169 = arith.constant 0 : index
    %c0_170 = arith.constant 0 : index
    %240 = vector.load %arg2[%c2_167, %c1_168, %c0_169, %c0_170] : memref<3x3x32x32xbf16, #tpu.memory_space<vmem>>, vector<1x1x32x32xbf16>
    %241 = vector.shape_cast %240 : vector<1x1x32x32xbf16> to vector<32x32xbf16>
    %cst_171 = arith.constant dense<0.000000e+00> : vector<8x32xf32>
    %242 = tpu.matmul %239, %241, %cst_171 {dimension_numbers = #tpu.dot_dimension_numbers<[1], [0], [0], [1], [0, 0, 1, 1], [], []>} : vector<8x32xbf16>, vector<32x32xbf16>, vector<8x32xf32> -> vector<8x32xf32>
    %243 = arith.addf %236, %242 : vector<8x32xf32>
    %c0_172 = arith.constant 0 : index
    %c2_173 = arith.constant 2 : index
    %c0_174 = arith.constant 0 : index
    %244 = vector.load %arg1[%c0_172, %c2_173, %c0_174] : memref<1x10x32xf32, #tpu.memory_space<vmem>>, vector<1x8x32xf32>
    %245 = vector.shape_cast %244 : vector<1x8x32xf32> to vector<8x32xf32>
    %246 = arith.truncf %245 : vector<8x32xf32> to vector<8x32xbf16>
    %c2_175 = arith.constant 2 : index
    %c2_176 = arith.constant 2 : index
    %c0_177 = arith.constant 0 : index
    %c0_178 = arith.constant 0 : index
    %247 = vector.load %arg2[%c2_175, %c2_176, %c0_177, %c0_178] : memref<3x3x32x32xbf16, #tpu.memory_space<vmem>>, vector<1x1x32x32xbf16>
    %248 = vector.shape_cast %247 : vector<1x1x32x32xbf16> to vector<32x32xbf16>
    %cst_179 = arith.constant dense<0.000000e+00> : vector<8x32xf32>
    %249 = tpu.matmul %246, %248, %cst_179 {dimension_numbers = #tpu.dot_dimension_numbers<[1], [0], [0], [1], [0, 0, 1, 1], [], []>} : vector<8x32xbf16>, vector<32x32xbf16>, vector<8x32xf32> -> vector<8x32xf32>
    %250 = arith.addf %243, %249 : vector<8x32xf32>
    %c2_180 = arith.constant 2 : index
    %c0_181 = arith.constant 0 : index
    %251 = vector.load %arg3[%c2_180, %c0_181] : memref<3x32xf32, #tpu.memory_space<vmem>>, vector<1x32xf32>
    %252 = vector.broadcast %251 : vector<1x32xf32> to vector<8x32xf32>
    %253 = arith.addf %250, %252 : vector<8x32xf32>
    %cst_182 = arith.constant 0.000000e+00 : f32
    %254 = vector.broadcast %cst_182 : f32 to vector<8x32xf32>
    %255 = arith.maximumf %253, %254 : vector<8x32xf32>
    %cst_183 = arith.constant dense<0.000000e+00> : vector<8xf32>
    %256 = vector.multi_reduction <add>, %255, %cst_183 [1] : vector<8x32xf32> to vector<8xf32>
    %257 = vector.shape_cast %256 : vector<8xf32> to vector<8x1xf32>
    %cst_184 = arith.constant 3.200000e+01 : f32
    %258 = vector.broadcast %cst_184 : f32 to vector<8x1xf32>
    %259 = arith.divf %257, %258 : vector<8x1xf32>
    %260 = vector.broadcast %259 : vector<8x1xf32> to vector<8x32xf32>
    %261 = arith.subf %255, %260 : vector<8x32xf32>
    %262 = arith.mulf %261, %261 : vector<8x32xf32>
    %cst_185 = arith.constant dense<0.000000e+00> : vector<8xf32>
    %263 = vector.multi_reduction <add>, %262, %cst_185 [1] : vector<8x32xf32> to vector<8xf32>
    %264 = vector.shape_cast %263 : vector<8xf32> to vector<8x1xf32>
    %cst_186 = arith.constant 3.200000e+01 : f32
    %265 = vector.broadcast %cst_186 : f32 to vector<8x1xf32>
    %266 = arith.divf %264, %265 : vector<8x1xf32>
    %267 = vector.broadcast %259 : vector<8x1xf32> to vector<8x32xf32>
    %268 = arith.subf %255, %267 : vector<8x32xf32>
    %cst_187 = arith.constant 9.99999974E-6 : f32
    %269 = vector.broadcast %cst_187 : f32 to vector<8x1xf32>
    %270 = arith.addf %266, %269 : vector<8x1xf32>
    %271 = math.rsqrt %270 : vector<8x1xf32>
    %272 = vector.broadcast %271 : vector<8x1xf32> to vector<8x32xf32>
    %273 = arith.mulf %268, %272 : vector<8x32xf32>
    %c2_188 = arith.constant 2 : index
    %c0_189 = arith.constant 0 : index
    %274 = vector.load %arg4[%c2_188, %c0_189] : memref<3x32xf32, #tpu.memory_space<vmem>>, vector<1x32xf32>
    %275 = vector.broadcast %274 : vector<1x32xf32> to vector<8x32xf32>
    %276 = arith.mulf %273, %275 : vector<8x32xf32>
    %c2_190 = arith.constant 2 : index
    %c0_191 = arith.constant 0 : index
    %277 = vector.load %arg5[%c2_190, %c0_191] : memref<3x32xf32, #tpu.memory_space<vmem>>, vector<1x32xf32>
    %278 = vector.broadcast %277 : vector<1x32xf32> to vector<8x32xf32>
    %279 = arith.addf %276, %278 : vector<8x32xf32>
    %cst_192 = arith.constant 0.000000e+00 : f32
    %280 = vector.broadcast %cst_192 : f32 to vector<10x32xf32>
    %c0_193 = arith.constant 0 : index
    %c0_194 = arith.constant 0 : index
    %281 = vector.load %arg14[%c0_193, %c0_194] : memref<10x32xf32, #tpu.memory_space<vmem>>, vector<10x32xf32>
    tpu.vector_store %arg14[%c0_193, %c0_194], %280 {strides = array<i32>} : memref<10x32xf32, #tpu.memory_space<vmem>>, vector<10x32xf32>,
    %c1_195 = arith.constant 1 : index
    %c0_196 = arith.constant 0 : index
    %282 = vector.load %arg14[%c1_195, %c0_196] : memref<10x32xf32, #tpu.memory_space<vmem>>, vector<8x32xf32>
    tpu.vector_store %arg14[%c1_195, %c0_196], %279 {strides = array<i32>} : memref<10x32xf32, #tpu.memory_space<vmem>>, vector<8x32xf32>,
    %cst_197 = arith.constant 0.000000e+00 : f32
    %283 = vector.broadcast %cst_197 : f32 to vector<8x32xf32>
    %c0_198 = arith.constant 0 : index
    %c0_199 = arith.constant 0 : index
    %284 = vector.load %arg14[%c0_198, %c0_199] : memref<10x32xf32, #tpu.memory_space<vmem>>, vector<8x32xf32>
    %285 = arith.truncf %284 : vector<8x32xf32> to vector<8x32xbf16>
    %c2_200 = arith.constant 2 : index
    %c0_201 = arith.constant 0 : index
    %c0_202 = arith.constant 0 : index
    %c0_203 = arith.constant 0 : index
    %286 = vector.load %arg6[%c2_200, %c0_201, %c0_202, %c0_203] : memref<3x3x32x32xbf16, #tpu.memory_space<vmem>>, vector<1x1x32x32xbf16>
    %287 = vector.shape_cast %286 : vector<1x1x32x32xbf16> to vector<32x32xbf16>
    %cst_204 = arith.constant dense<0.000000e+00> : vector<8x32xf32>
    %288 = tpu.matmul %285, %287, %cst_204 {dimension_numbers = #tpu.dot_dimension_numbers<[1], [0], [0], [1], [0, 0, 1, 1], [], []>} : vector<8x32xbf16>, vector<32x32xbf16>, vector<8x32xf32> -> vector<8x32xf32>
    %289 = arith.addf %283, %288 : vector<8x32xf32>
    %c1_205 = arith.constant 1 : index
    %c0_206 = arith.constant 0 : index
    %290 = vector.load %arg14[%c1_205, %c0_206] : memref<10x32xf32, #tpu.memory_space<vmem>>, vector<8x32xf32>
    %291 = arith.truncf %290 : vector<8x32xf32> to vector<8x32xbf16>
    %c2_207 = arith.constant 2 : index
    %c1_208 = arith.constant 1 : index
    %c0_209 = arith.constant 0 : index
    %c0_210 = arith.constant 0 : index
    %292 = vector.load %arg6[%c2_207, %c1_208, %c0_209, %c0_210] : memref<3x3x32x32xbf16, #tpu.memory_space<vmem>>, vector<1x1x32x32xbf16>
    %293 = vector.shape_cast %292 : vector<1x1x32x32xbf16> to vector<32x32xbf16>
    %cst_211 = arith.constant dense<0.000000e+00> : vector<8x32xf32>
    %294 = tpu.matmul %291, %293, %cst_211 {dimension_numbers = #tpu.dot_dimension_numbers<[1], [0], [0], [1], [0, 0, 1, 1], [], []>} : vector<8x32xbf16>, vector<32x32xbf16>, vector<8x32xf32> -> vector<8x32xf32>
    %295 = arith.addf %289, %294 : vector<8x32xf32>
    %c2_212 = arith.constant 2 : index
    %c0_213 = arith.constant 0 : index
    %296 = vector.load %arg14[%c2_212, %c0_213] : memref<10x32xf32, #tpu.memory_space<vmem>>, vector<8x32xf32>
    %297 = arith.truncf %296 : vector<8x32xf32> to vector<8x32xbf16>
    %c2_214 = arith.constant 2 : index
    %c2_215 = arith.constant 2 : index
    %c0_216 = arith.constant 0 : index
    %c0_217 = arith.constant 0 : index
    %298 = vector.load %arg6[%c2_214, %c2_215, %c0_216, %c0_217] : memref<3x3x32x32xbf16, #tpu.memory_space<vmem>>, vector<1x1x32x32xbf16>
    %299 = vector.shape_cast %298 : vector<1x1x32x32xbf16> to vector<32x32xbf16>
    %cst_218 = arith.constant dense<0.000000e+00> : vector<8x32xf32>
    %300 = tpu.matmul %297, %299, %cst_218 {dimension_numbers = #tpu.dot_dimension_numbers<[1], [0], [0], [1], [0, 0, 1, 1], [], []>} : vector<8x32xbf16>, vector<32x32xbf16>, vector<8x32xf32> -> vector<8x32xf32>
    %301 = arith.addf %295, %300 : vector<8x32xf32>
    %c2_219 = arith.constant 2 : index
    %c0_220 = arith.constant 0 : index
    %302 = vector.load %arg7[%c2_219, %c0_220] : memref<3x32xf32, #tpu.memory_space<vmem>>, vector<1x32xf32>
    %303 = vector.broadcast %302 : vector<1x32xf32> to vector<8x32xf32>
    %304 = arith.addf %301, %303 : vector<8x32xf32>
    %cst_221 = arith.constant 0.000000e+00 : f32
    %305 = vector.broadcast %cst_221 : f32 to vector<8x32xf32>
    %306 = arith.maximumf %304, %305 : vector<8x32xf32>
    %cst_222 = arith.constant dense<0.000000e+00> : vector<8xf32>
    %307 = vector.multi_reduction <add>, %306, %cst_222 [1] : vector<8x32xf32> to vector<8xf32>
    %308 = vector.shape_cast %307 : vector<8xf32> to vector<8x1xf32>
    %cst_223 = arith.constant 3.200000e+01 : f32
    %309 = vector.broadcast %cst_223 : f32 to vector<8x1xf32>
    %310 = arith.divf %308, %309 : vector<8x1xf32>
    %311 = vector.broadcast %310 : vector<8x1xf32> to vector<8x32xf32>
    %312 = arith.subf %306, %311 : vector<8x32xf32>
    %313 = arith.mulf %312, %312 : vector<8x32xf32>
    %cst_224 = arith.constant dense<0.000000e+00> : vector<8xf32>
    %314 = vector.multi_reduction <add>, %313, %cst_224 [1] : vector<8x32xf32> to vector<8xf32>
    %315 = vector.shape_cast %314 : vector<8xf32> to vector<8x1xf32>
    %cst_225 = arith.constant 3.200000e+01 : f32
    %316 = vector.broadcast %cst_225 : f32 to vector<8x1xf32>
    %317 = arith.divf %315, %316 : vector<8x1xf32>
    %318 = vector.broadcast %310 : vector<8x1xf32> to vector<8x32xf32>
    %319 = arith.subf %306, %318 : vector<8x32xf32>
    %cst_226 = arith.constant 9.99999974E-6 : f32
    %320 = vector.broadcast %cst_226 : f32 to vector<8x1xf32>
    %321 = arith.addf %317, %320 : vector<8x1xf32>
    %322 = math.rsqrt %321 : vector<8x1xf32>
    %323 = vector.broadcast %322 : vector<8x1xf32> to vector<8x32xf32>
    %324 = arith.mulf %319, %323 : vector<8x32xf32>
    %c2_227 = arith.constant 2 : index
    %c0_228 = arith.constant 0 : index
    %325 = vector.load %arg8[%c2_227, %c0_228] : memref<3x32xf32, #tpu.memory_space<vmem>>, vector<1x32xf32>
    %326 = vector.broadcast %325 : vector<1x32xf32> to vector<8x32xf32>
    %327 = arith.mulf %324, %326 : vector<8x32xf32>
    %c2_229 = arith.constant 2 : index
    %c0_230 = arith.constant 0 : index
    %328 = vector.load %arg9[%c2_229, %c0_230] : memref<3x32xf32, #tpu.memory_space<vmem>>, vector<1x32xf32>
    %329 = vector.broadcast %328 : vector<1x32xf32> to vector<8x32xf32>
    %330 = arith.addf %327, %329 : vector<8x32xf32>
    %331 = arith.truncf %330 : vector<8x32xf32> to vector<8x32xbf16>
    %c0_231 = arith.constant 0 : index
    %c2_232 = arith.constant 2 : index
    %332 = vector.load %arg10[%c0_231, %c2_232] : memref<32x3xbf16, #tpu.memory_space<vmem>>, vector<32x1xbf16>
    %cst_233 = arith.constant dense<0.000000e+00> : vector<8x1xf32>
    %333 = tpu.matmul %331, %332, %cst_233 {dimension_numbers = #tpu.dot_dimension_numbers<[1], [0], [0], [1], [0, 0, 1, 1], [], []>} : vector<8x32xbf16>, vector<32x1xbf16>, vector<8x1xf32> -> vector<8x1xf32>
    %334 = tpu.iota {dimensions = array<i32: 1>} : vector<1x3xi32>
    %c2_i32 = arith.constant 2 : i32
    %335 = vector.broadcast %c2_i32 : i32 to vector<1x3xi32>
    %336 = arith.cmpi eq, %334, %335 : vector<1x3xi32>
    %337 = arith.extui %336 : vector<1x3xi1> to vector<1x3xi32>
    %338 = arith.sitofp %337 : vector<1x3xi32> to vector<1x3xf32>
    %339 = vector.broadcast %333 : vector<8x1xf32> to vector<8x3xf32>
    %340 = vector.broadcast %338 : vector<1x3xf32> to vector<8x3xf32>
    %341 = arith.mulf %339, %340 : vector<8x3xf32>
    %342 = arith.addf %228, %341 : vector<8x3xf32>
    %c0_234 = arith.constant 0 : index
    %c0_235 = arith.constant 0 : index
    %343 = vector.load %arg11[%c0_234, %c0_235] : memref<1x3xf32, #tpu.memory_space<vmem>>, vector<1x3xf32>
    %344 = vector.broadcast %343 : vector<1x3xf32> to vector<8x3xf32>
    %345 = arith.addf %342, %344 : vector<8x3xf32>
    %c0_236 = arith.constant 0 : index
    %c0_237 = arith.constant 0 : index
    %c0_238 = arith.constant 0 : index
    %346 = vector.load %arg12[%c0_236, %c0_237, %c0_238] : memref<1x8x1xf32, #tpu.memory_space<vmem>>, vector<1x8x1xf32>
    %347 = vector.shape_cast %346 : vector<1x8x1xf32> to vector<8x1xf32>
    %348 = vector.broadcast %347 : vector<8x1xf32> to vector<8x3xf32>
    %349 = arith.mulf %345, %348 : vector<8x3xf32>
    %c0_239 = arith.constant 0 : index
    %c0_240 = arith.constant 0 : index
    %c0_241 = arith.constant 0 : index
    %350 = vector.load %arg13[%c0_239, %c0_240, %c0_241] : memref<1x8x3xf32, #tpu.memory_space<vmem>>, vector<1x8x3xf32>
    %351 = vector.shape_cast %350 : vector<1x8x3xf32> to vector<8x3xf32>
    %352 = vector.shape_cast %349 : vector<8x3xf32> to vector<1x8x3xf32>
    tpu.vector_store %arg13[%c0_239, %c0_240, %c0_241], %352 {strides = array<i32>} : memref<1x8x3xf32, #tpu.memory_space<vmem>>, vector<1x8x3xf32>,
    return
  }
  func.func @transform_0(%arg0: i32) -> (i32, i32, i32) {
    %c0_i32 = arith.constant 0 : i32
    %c0_i32_0 = arith.constant 0 : i32
    %c0_i32_1 = arith.constant 0 : i32
    return %arg0, %c0_i32, %c0_i32_0 : i32, i32, i32
  }
  func.func @transform_1(%arg0: i32) -> (i32, i32, i32, i32) {
    %c0_i32 = arith.constant 0 : i32
    %c0_i32_0 = arith.constant 0 : i32
    %c0_i32_1 = arith.constant 0 : i32
    %c0_i32_2 = arith.constant 0 : i32
    %c0_i32_3 = arith.constant 0 : i32
    return %c0_i32, %c0_i32_0, %c0_i32_1, %c0_i32_2 : i32, i32, i32, i32
  }
  func.func @transform_2(%arg0: i32) -> (i32, i32) {
    %c0_i32 = arith.constant 0 : i32
    %c0_i32_0 = arith.constant 0 : i32
    %c0_i32_1 = arith.constant 0 : i32
    return %c0_i32, %c0_i32_0 : i32, i32
  }
  func.func @transform_3(%arg0: i32) -> (i32, i32) {
    %c0_i32 = arith.constant 0 : i32
    %c0_i32_0 = arith.constant 0 : i32
    %c0_i32_1 = arith.constant 0 : i32
    return %c0_i32, %c0_i32_0 : i32, i32
  }
  func.func @transform_4(%arg0: i32) -> (i32, i32) {
    %c0_i32 = arith.constant 0 : i32
    %c0_i32_0 = arith.constant 0 : i32
    %c0_i32_1 = arith.constant 0 : i32
    return %c0_i32, %c0_i32_0 : i32, i32
  }
  func.func @transform_5(%arg0: i32) -> (i32, i32, i32, i32) {
    %c0_i32 = arith.constant 0 : i32
    %c0_i32_0 = arith.constant 0 : i32
    %c0_i32_1 = arith.constant 0 : i32
    %c0_i32_2 = arith.constant 0 : i32
    %c0_i32_3 = arith.constant 0 : i32
    return %c0_i32, %c0_i32_0, %c0_i32_1, %c0_i32_2 : i32, i32, i32, i32
  }
  func.func @transform_6(%arg0: i32) -> (i32, i32) {
    %c0_i32 = arith.constant 0 : i32
    %c0_i32_0 = arith.constant 0 : i32
    %c0_i32_1 = arith.constant 0 : i32
    return %c0_i32, %c0_i32_0 : i32, i32
  }
  func.func @transform_7(%arg0: i32) -> (i32, i32) {
    %c0_i32 = arith.constant 0 : i32
    %c0_i32_0 = arith.constant 0 : i32
    %c0_i32_1 = arith.constant 0 : i32
    return %c0_i32, %c0_i32_0 : i32, i32
  }
  func.func @transform_8(%arg0: i32) -> (i32, i32) {
    %c0_i32 = arith.constant 0 : i32
    %c0_i32_0 = arith.constant 0 : i32
    %c0_i32_1 = arith.constant 0 : i32
    return %c0_i32, %c0_i32_0 : i32, i32
  }
  func.func @transform_9(%arg0: i32) -> (i32, i32) {
    %c0_i32 = arith.constant 0 : i32
    %c0_i32_0 = arith.constant 0 : i32
    %c0_i32_1 = arith.constant 0 : i32
    return %c0_i32, %c0_i32_0 : i32, i32
  }
  func.func @transform_10(%arg0: i32) -> (i32, i32) {
    %c0_i32 = arith.constant 0 : i32
    %c0_i32_0 = arith.constant 0 : i32
    %c0_i32_1 = arith.constant 0 : i32
    return %c0_i32, %c0_i32_0 : i32, i32
  }
  func.func @transform_11(%arg0: i32) -> (i32, i32, i32) {
    %c0_i32 = arith.constant 0 : i32
    %c0_i32_0 = arith.constant 0 : i32
    %c0_i32_1 = arith.constant 0 : i32
    return %arg0, %c0_i32, %c0_i32_0 : i32, i32, i32
  }
  func.func @transform_12(%arg0: i32) -> (i32, i32, i32) {
    %c0_i32 = arith.constant 0 : i32
    %c0_i32_0 = arith.constant 0 : i32
    %c0_i32_1 = arith.constant 0 : i32
    return %arg0, %c0_i32, %c0_i32_0 : i32, i32, i32
  }
}

</mosaic_0001>

<bundles_post_ra>
// kernel: fastspeech2_forward.36
= control target key start
LH: loop header
LB: loop body
LE: loop exit
PB: predicated region body
PF: predicated region fallthrough
CT: control target
= control target key end

     0   :  { %v269_v0 = vmov 0.0   ;;  %vm270_vm0 = vmmov 0   ;;  %vm146_vm1 = vcmask 261120   ;;  %v271_v25 = vmov 0   ;;  %s375_s1 = inlined_call_operand.vmem [shape: bf16[128,32], index: 1, kind: input, shape index: {}]   ;;  %s376_s0 = inlined_call_operand.vmem [shape: f32[16,128], index: 0, kind: input, shape index: {}]   ;;  %s377_s2 = inlined_call_operand.vmem [shape: f32[1,32], index: 2, kind: input, shape index: {}]   ;;  %s378_s3 = inlined_call_operand.vmem [shape: f32[16,32], index: 3, kind: input, shape index: {}]   ;;  %s379_s4 = inlined_call_operand.vmem [shape: f32[16,1], index: 4, kind: input, shape index: {}]   ;;  %s380_s5 = inlined_call_operand.vmem [shape: f32[1,32], index: 5, kind: input, shape index: {}]   ;;  %s381_s6 = inlined_call_operand.vmem [shape: f32[1,32], index: 6, kind: input, shape index: {}]   ;;  %s382_s7 = inlined_call_operand.vmem [shape: f32[16,32], index: 7, kind: output, shape index: {}]  }
   0x1   :  { %232 = vmatprep.subr.bf16.mxu0 %v269_v0  ;;  %v257_v1 = vld [vmem:[%s375_s1 + $0x38] sm:$0xff]   ;;  %248 = vmatprep.mubr.msk.bf16.mxu0 %vm270_vm0, %v269_v0  ;;  %v258_v2 = vld [vmem:[%s375_s1 + $0x30] sm:$0xff]   ;;  %v259_v3 = vld [vmem:[%s375_s1 + $0x28] sm:$0xff]  }
   0x2   :  { %233 = vmatpush3.bf16.msra.mxu0 %v257_v1  ;;  %v260_v4 = vld [vmem:[%s375_s1 + $0x20] sm:$0xff]   ;;  %v261_v5 = vld [vmem:[%s375_s1 + $0x18] sm:$0xff]   ;;  %v262_v6 = vld [vmem:[%s375_s1 + $0x10] sm:$0xff]   ;;  %255 = vset.pattern.permute.xlu0 %v271_v25 }
   0x3   :  { %234 = vmatprep.subr.bf16.mxu0 %v269_v0  ;;  %v263_v7 = vld [vmem:[%s375_s1 + $0x8] sm:$0xff]   ;;  %v264_v8 = vld [vmem:[%s375_s1] sm:$0xff]   ;;  %256 = vset.pattern.permute.xlu1 %v271_v25 }
   0x4   :  { %v27_v9 = vld [vmem:[%s376_s0] sm:$0xff]  ;;  %v28_v10 = vld [vmem:[%s376_s0 + $0x8] sm:$0xff] }
   0x5   :  { %v29_v11 = vpack.c.bf16 %v28_v10, %v27_v9  ;;  %v212_v12 = vld [vmem:[%s377_s2] ss:$0 sm:$0xff]  ;;  %v143_v19 = vld [vmem:[%s378_s3 + $0x8] sm:$0xff] }
   0x6   :  { %235 = vmatpush3.bf16.msra.mxu0 %v258_v2  ;;  %v142_v14 = vld [vmem:[%s378_s3] sm:$0xff]  ;;  %v193_v37 = vld [vmem:[%s379_s4 + $0x8] sm:$0xff] }
   0x7   :  { %236 = vmatprep.subr.bf16.mxu0 %v269_v0  ;;  %v192_v26 = vld [vmem:[%s379_s4] sm:$0xff] }
   0x8   :  { %v221_v45 = vld [vmem:[%s380_s5] ss:$0 sm:$0xff] }
   0x9   :  { %v222_v47 = vld [vmem:[%s381_s6] ss:$0 sm:$0xff] }
   0xa   :  { %237 = vmatpush3.bf16.msra.mxu0 %v259_v3 }
   0xb   :  { %238 = vmatprep.subr.bf16.mxu0 %v269_v0 }
   0xe   :  { %239 = vmatpush3.bf16.msra.mxu0 %v260_v4 }
   0xf   :  { %240 = vmatprep.subr.bf16.mxu0 %v269_v0 }
  0x12   :  { %241 = vmatpush3.bf16.msra.mxu0 %v261_v5 }
  0x13   :  { %242 = vmatprep.subr.bf16.mxu0 %v269_v0 }
  0x16   :  { %243 = vmatpush3.bf16.msra.mxu0 %v262_v6 }
  0x17   :  { %244 = vmatprep.subr.bf16.mxu0 %v269_v0 }
  0x1a   :  { %245 = vmatpush3.bf16.msra.mxu0 %v263_v7 }
  0x1b   :  { %246 = vmatprep.subr.bf16.mxu0 %v269_v0 }
  0x1e   :  { %247 = vmatpush3.bf16.msra.mxu0 %v264_v8 }
  0x21   :  { %249 = vmatmul.mubr.bf16.vlgmr.msra.gmra.mxu0 %v29_v11 }
  0xe1   :  { %v135_v13 = vpop.f32.mrf.mxu0 }
  0xe2   :  { %v136_v15 = vadd.f32 %v212_v12, %v135_v13 }
  0xe3   :  { %v250_v16 = vpop.f32.mrf.mxu0 }
  0xe4   :  { %v144_v17 = vadd.f32 %v142_v14, %v136_v15 }
  0xe5   :  { %v138_v18 = vpop.f32.mrf.mxu0 }
  0xe6   :  { %v139_v20 = vadd.f32 %v212_v12, %v138_v18  ;;  %v147_v21 = vsel %vm146_vm1, %v144_v17, 0.0 }
  0xe7   :  { %148 = vadd.xlane.f32.xlu0 %v147_v21  ;;  %v251_v22 = vpop.f32.mrf.mxu0 }
  0xe8   :  { %v145_v23 = vadd.f32 %v143_v19, %v139_v20 }
  0xea   :  { %v150_v24 = vsel %vm146_vm1, %v145_v23, 0.0 }
  0xeb   :  { %151 = vadd.xlane.f32.xlu0 %v150_v24 }
 0x101   :  { %196 = vperm.xlu0 %255, %v192_v26  }
 0x170   :  { %v149_v27 = vpop.xlane.xlu0 %148 }
 0x171   :  { %v154_v28 = vmul.f32 0.03125, %v149_v27 }
 0x173   :  { %v156_v29 = vsub.f32 %v144_v17, %v154_v28 }
 0x174   :  { %v152_v30 = vpop.xlane.xlu0 %151 }
 0x175   :  { %v155_v31 = vmul.f32 0.03125, %v152_v30  ;;  %v158_v32 = vmul.f32 %v156_v29, %v156_v29 }
 0x177   :  { %v157_v33 = vsub.f32 %v145_v23, %v155_v31  ;;  %v160_v34 = vsel %vm146_vm1, %v158_v32, 0.0 }
 0x178   :  { %161 = vadd.xlane.f32.xlu1 %v160_v34 }
 0x179   :  { %v159_v35 = vmul.f32 %v157_v33, %v157_v33 }
 0x17b   :  { %v163_v36 = vsel %vm146_vm1, %v159_v35, 0.0 }
 0x17c   :  { %164 = vadd.xlane.f32.xlu1 %v163_v36  ;;  %v197_v50 = vpop.permute.xlu0 %196 }
 0x18d   :  { %201 = vperm.xlu1 %256, %v193_v37  }
 0x201   :  { %v162_v38 = vpop.xlane.xlu1 %161 }
 0x202   :  { %v166_v39 = vmul.f32 0.03125, %v162_v38 }
 0x204   :  { %v168_v40 = vadd.f32 1e-05, %v166_v39 }
 0x205   :  { %v165_v41 = vpop.xlane.xlu1 %164 }
 0x206   :  { %265 = vrsqrt.f32 %v168_v40  ;;  %v167_v42 = vmul.f32 0.03125, %v165_v41 }
 0x208   :  { %v169_v43 = vadd.f32 1e-05, %v167_v42 }
 0x209   :  { %v202_v55 = vpop.permute.xlu1 %201 }
 0x20a   :  { %267 = vrsqrt.f32 %v169_v43 }
 0x213   :  { %v266_v44 = vpop.eup %265 }
 0x214   :  { %v172_v46 = vmul.f32 %v266_v44, %v156_v29 }
 0x216   :  { %v181_v48 = vmul.f32 %v221_v45, %v172_v46 }
 0x217   :  { %v268_v49 = vpop.eup %267 }
 0x218   :  { %v190_v51 = vadd.f32 %v222_v47, %v181_v48  ;;  %v173_v52 = vmul.f32 %v268_v49, %v157_v33 }
 0x21a   :  { %v204_v53 = vmul.f32 %v197_v50, %v190_v51  ;;  %v182_v54 = vmul.f32 %v221_v45, %v173_v52 }
 0x21c   :  { %206 = vst.msk [vmem:[%s382_s7] sm:$0xff] %vm146_vm1, %v204_v53  ;;  %v191_v56 = vadd.f32 %v222_v47, %v182_v54 }
 0x21e   :  { %v205_v57 = vmul.f32 %v202_v55, %v191_v56 }
 0x220   :  { %207 = vst.msk [vmem:[%s382_s7 + $0x8] sm:$0xff] %vm146_vm1, %v205_v57 }

// kernel: fastspeech2_forward.34
= control target key start
LH: loop header
LB: loop body
LE: loop exit
PB: predicated region body
PF: predicated region fallthrough
CT: control target
= control target key end

     0   :  { %v203_v0 = vmov 0.0   ;;  %vm204_vm0 = vmmov 0   ;;  %v205_v3 = vmov 0   ;;  %vm75_vm1 = vcmask 261120   ;;  %s271_s1 = inlined_call_operand.vmem [shape: bf16[32,384], index: 1, kind: input, shape index: {}]   ;;  %s272_s0 = inlined_call_operand.vmem [shape: f32[16,32], index: 0, kind: input, shape index: {}]   ;;  %s273_s2 = inlined_call_operand.vmem [shape: f32[1,384], index: 2, kind: input, shape index: {}]   ;;  %s274_s3 = inlined_call_operand.vmem [shape: f32[16,384], index: 3, kind: output, shape index: {}]  }
   0x1   :  { %184 = vmatprep.subr.bf16.mxu1 %v203_v0  ;;  %v195_v1 = vld [vmem:[%s271_s1 + $0x1c] ss:$12 sps:$4 sm:$0xff]   ;;  %188 = vmatprep.mubr.msk.bf16.mxu1 %vm204_vm0, %v203_v0  ;;  %v197_v2 = vld [vmem:[%s271_s1 + $0x20] ss:$12 sps:$4 sm:$0xff]   ;;  %v198_v4 = vld [vmem:[%s271_s1 + $0x18] ss:$12 sps:$4 sm:$0xff]   ;;  %v28_v11 = vlaneseq }
   0x2   :  { %111 = vmatprep.mubr.bf16.mxu0 %v205_v3  ;;  %91 = vmatprep.subr.bf16.mxu0 %v195_v1  ;;  %v199_v5 = vld [vmem:[%s271_s1 + $0x4] ss:$12 sps:$4 sm:$0xff]   ;;  %v201_v6 = vld [vmem:[%s271_s1 + $0x8] ss:$12 sps:$4 sm:$0xff]   ;;  %v202_v7 = vld [vmem:[%s271_s1] ss:$12 sps:$4 sm:$0xff]  }
   0x3   :  { %185 = vmatpush3.bf16.msra.mxu1 %v197_v2  ;;  %92 = vmatpush1.bf16.msra.mxu0 %v198_v4  ;;  %v15_v8 = vld [vmem:[%s272_s0] sm:$0xff]  ;;  %v16_v9 = vld [vmem:[%s272_s0 + $0x8] sm:$0xff]  ;;  %v29_v12 = vshrl.u32 %v28_v11, 7 }
   0x4   :  { %186 = vmatprep.subr.bf16.mxu1 %v203_v0  ;;  %93 = vmatprep.subr.bf16.mxu0 %v199_v5  ;;  %v17_v10 = vpack.c.bf16 %v16_v9, %v15_v8  ;;  %v26_v15 = vld [vmem:[%s273_s2] sm:$0x7] }
   0x5   :  { %v38_v13 = vsub.s32 2, %v29_v12  ;;  %v30_v14 = vsub.s32 0, %v29_v12  ;;  %v34_v16 = vsub.s32 1, %v29_v12 }
   0x7   :  { %187 = vmatpush3.bf16.msra.mxu1 %v201_v6  ;;  %94 = vmatpush1.bf16.msra.mxu0 %v202_v7  ;;  %v39_v17 = vrot.slane %v26_v15, %v38_v13  ;;  %v31_v18 = vrot.slane %v26_v15, %v30_v14  ;;  %v35_v20 = vrot.slane %v26_v15, %v34_v16 }
   0xa   :  { %189 = vmatmul.mubr.msk.bf16.vlgmr.msra.gmra.mxu1 %vm75_vm1, %v17_v10  ;;  %179 = vmatmul.mubr.msk.bf16.vlgmr.msra.gmra.mxu0 %vm75_vm1, %v17_v10 }
  0xca   :  { %v156_v19 = vpop.f32.mrf.mxu1  ;;  %v113_v22 = vpop.f32.mrf.mxu0 }
  0xcb   :  { %v157_v21 = vadd.f32 %v156_v19, %v39_v17  ;;  %v114_v23 = vadd.f32 %v113_v22, %v31_v18 }
  0xcc   :  { %v190_v24 = vpop.f32.mrf.mxu1  ;;  %v115_v25 = vpop.f32.mrf.mxu0 }
  0xcd   :  { %165 = vst [vmem:[%s274_s3 + $0x10] sm:$0xff] %v157_v21  ;;  %163 = vst [vmem:[%s274_s3] sm:$0xff] %v114_v23  ;;  %v116_v26 = vadd.f32 %v115_v25, %v35_v20 }
  0xce   :  { %v159_v27 = vpop.f32.mrf.mxu1  ;;  %v117_v29 = vpop.f32.mrf.mxu0 }
  0xcf   :  { %v160_v28 = vadd.f32 %v159_v27, %v39_v17  ;;  %164 = vst [vmem:[%s274_s3 + $0x8] sm:$0xff] %v116_v26  ;;  %v118_v30 = vadd.f32 %v117_v29, %v31_v18 }
  0xd0   :  { %v191_v31 = vpop.f32.mrf.mxu1  ;;  %v119_v32 = vpop.f32.mrf.mxu0 }
  0xd1   :  { %168 = vst [vmem:[%s274_s3 + $0x28] sm:$0xff] %v160_v28  ;;  %166 = vst [vmem:[%s274_s3 + $0x18] sm:$0xff] %v118_v30  ;;  %v120_v33 = vadd.f32 %v119_v32, %v35_v20 }
  0xd3   :  { %167 = vst [vmem:[%s274_s3 + $0x20] sm:$0xff] %v120_v33 }

// kernel: fastspeech2_forward.35
= control target key start
LH: loop header
LB: loop body
LE: loop exit
PB: predicated region body
PF: predicated region fallthrough
CT: control target
= control target key end

     0   :  { %s646_s12 = smov 0   ;;  %s711_s0 = inlined_call_operand.vmem [shape: f32[2,8,384], index: 0, kind: input, shape index: {}]   ;;  %s712_s1 = inlined_call_operand.vmem [shape: f32[2,1,8], index: 1, kind: input, shape index: {}]   ;;  %s713_s2 = inlined_call_operand.vmem [shape: f32[2,8,128], index: 2, kind: output, shape index: {0}]   ;;  %s714_s3 = inlined_call_operand.vmem [shape: f32[2,2,8,8], index: 3, kind: output, shape index: {1}]  }
   0x1 LB: > { %s545_s13 = sadd.s32 4294967295, %s621_s12   ;;  %p549_p0 = scmp.ge.s32.totalorder %s621_s12, 1  ;;  %s621_s12 = sphi %s646_s12, %s14_s12  }
   0x2   : > { %p148_p1 = scmp.lt.s32.totalorder %s621_s12, 3 }
   0x4   : > { %p149_p2 = pnand %p549_p0, %p148_p1 }
   0x5   : > { %p179_p3 = scmp.lt.s32.totalorder (!%p149_p2), %s545_s13, 1  ;;  %s625_s21 = smov (!%p149_p2), 64  }
   0x6   : > { %152 = sbr.rel (%p149_p2) target bundleno = 1365 (0x555), region = 28 }
   0xb   : > { %v623_v0 = vmov 0.0   ;;  %vm624_vm0 = vmmov 0   ;;  %s716_s13 = smov (!%p179_p3, %s545_s13), 1  ;;  %vm204_vm1 = vcmask 523264   ;;  %vm259_vm2 = vcmask 64512  }
   0xc   : > { %571 = vmatprep.subr.bf16.mxu0 %v623_v0  ;;  %573 = vmatprep.mubr.msk.bf16.mxu0 %vm624_vm0, %v623_v0  ;;  %s595_s14 = smul.u32 24, %s716_s13  ;;  %s186_s20 = scalar_lea.vmem %s712_s1, %s716_s13  ;;  %vm276_vm3 = vcmask 1043456   ;;  %vm448_vm4 = vcmask 1048064  }
   0xd   : > { %577 = vmatprep.subr.bf16.mxu1 %v623_v0  ;;  %579 = vmatprep.mubr.msk.bf16.mxu1 %vm624_vm0, %v623_v0  ;;  %v555_v7 = vld [vmem:[%s186_s20] ss:$0 sm:$0xff]  ;;  %s562_s22 = sshll.u32 %s716_s13, 4  ;;  %s551_s26 = sshll.u32 %s716_s13, 3 }
   0xe   : > { %s662_s17 = scalar_lea.vmem %s711_s0, %s595_s14  ;;  %s683_s25 = scalar_lea.vmem %s714_s3, %s562_s22 }
   0xf   : > { %v200_v1 = vld [vmem:[%s662_s17 + $0x8] sm:$0xff]  ;;  %v198_v4 = vld [vmem:[%s662_s17] sm:$0xff]  ;;  %v202_v19 = vld [vmem:[%s662_s17 + $0x10] sm:$0xff]  ;;  %s695_s29 = scalar_lea.vmem %s713_s2, %s551_s26 }
  0x10   : > { %v201_v2 = vpack.c.bf16 %v200_v1, %v200_v1  ;;  %v199_v5 = vpack.c.bf16 %v198_v4, %v198_v4  ;;  %v203_v20 = vpack.c.bf16 %v202_v19, %v202_v19 }
  0x12   : > { %v209_v3 = vsel %vm204_vm1, %v201_v2, 0  ;;  %331 = vrot.lane.b32.xlu1 %v201_v2, %s625_s21  ;;  %v278_v21 = vsel %vm276_vm3, %v203_v20, 0 }
  0x13   : > { %572 = vmatpush3.bf16.xpose.msra.mxu0 %v209_v3  ;;  %578 = vmatpush3.bf16.msra.mxu1 %v278_v21 }
  0x14   : > { %589 = vmatprep.subr.bf16.mxu0 %v623_v0  ;;  %583 = vmatprep.subr.bf16.mxu1 %v623_v0 }
  0x16   : > { %328 = vrot.lane.b32.xlu1 %v199_v5, %s625_s21 }
  0x1a   : > { %574 = vmatmul.mubr.msk.bf16.vlgmr.msra.gmra.mxu0 %vm204_vm1, %v199_v5 }
  0x1b   : > { %591 = vmatprep.mubr.msk.bf16.mxu0 %vm624_vm0, %v623_v0 }
  0x84   : > { %v332_v24 = vpop.permute.xlu1 %331 }
  0x85   : > { %v337_v26 = vsel %vm204_vm1, %v332_v24, 0 }
  0x88   : > { %v329_v28 = vpop.permute.xlu1 %328 }
  0xda   : > { %v245_v6 = vpop.f32.mrf.mxu0 }
  0xdb   : > { %v251_v8 = vmul.f32 0.125, %v245_v6 }
  0xdc   : > { %v575_v9 = vpop.f32.mrf.mxu0 }
  0xdd   : > { %v258_v10 = vadd.f32 %v555_v7, %v251_v8 }
  0xde   : > { %v248_v11 = vpop.f32.mrf.mxu0 }
  0xdf   : > { %v260_v12 = vsel %vm259_vm2, %v258_v10, -inf }
  0xe0   : > { %261 = vmax.xlane.f32.xlu0 %v260_v12  ;;  %v576_v13 = vpop.f32.mrf.mxu0 }
 0x169   : > { %v262_v14 = vpop.xlane.xlu0 %261 }
 0x16a   : > { %v263_v15 = vsub.f32 %v258_v10, %v262_v14 }
 0x16c   : > { %v264_v16 = vmul.f32 1.442695, %v263_v15 }
 0x16e   : > { %607 = vpow2.f32 %v264_v16 }
 0x17b   : > { %v608_v17 = vpop.eup %607 }
 0x17c   : > { %v266_v18 = vsel %vm259_vm2, %v608_v17, 0.0 }
 0x17d   : > { %267 = vadd.xlane.f32.xlu0 %v266_v18 }
 0x206   : > { %v268_v22 = vpop.xlane.xlu0 %267 }
 0x207   : > { %609 = vrcp.f32 %v268_v22 }
 0x214   : > { %v610_v23 = vpop.eup %609 }
 0x215   : > { %v270_v25 = vmul.f32 %v610_v23, %v608_v17 }
 0x217   : > { %271 = vst.msk [vmem:[%s683_s25] sm:$0xff] %vm259_vm2, %v270_v25  ;;  %v272_v27 = vpack.c.bf16 %v270_v25, %v270_v25 }
 0x219   : > { %580 = vmatmul.mubr.msk.bf16.vlgmr.msra.gmra.mxu1 %vm259_vm2, %v272_v27 }
 0x21a   : > { %584 = vmatpush3.bf16.xpose.msra.mxu1 %v337_v26  ;;  %585 = vmatprep.mubr.msk.bf16.mxu1 %vm624_vm0, %v623_v0 }
 0x221   : > { %586 = vmatmul.mubr.msk.bf16.vlgmr.msra.gmra.mxu1 %vm204_vm1, %v329_v28 }
 0x2d9   : > { %v314_v29 = vpop.f32.mrf.mxu1 }
 0x2da   : > { %320 = vst.msk [vmem:[%s695_s29] sm:$0xff] %vm204_vm1, %v314_v29 }
 0x2db   : > { %v581_v30 = vpop.f32.mrf.mxu1 }
 0x2dd   : > { %v317_v31 = vpop.f32.mrf.mxu1 }
 0x2df   : > { %v582_v32 = vpop.f32.mrf.mxu1 }
 0x2e1   : > { %v373_v33 = vpop.f32.mrf.mxu1 }
 0x2e2   : > { %v379_v34 = vmul.f32 0.125, %v373_v33 }
 0x2e3   : > { %v587_v35 = vpop.f32.mrf.mxu1 }
 0x2e4   : > { %v380_v36 = vadd.f32 %v555_v7, %v379_v34 }
 0x2e5   : > { %v376_v37 = vpop.f32.mrf.mxu1 }
 0x2e6   : > { %v381_v38 = vsel %vm259_vm2, %v380_v36, -inf }
 0x2e7   : > { %382 = vmax.xlane.f32.xlu0 %v381_v38  ;;  %v588_v39 = vpop.f32.mrf.mxu1 }
 0x2fd   : > { %396 = vrot.lane.b32.xlu0 %v203_v20, %s625_s21 }
 0x370   : > { %v383_v40 = vpop.xlane.xlu0 %382 }
 0x371   : > { %v384_v41 = vsub.f32 %v380_v36, %v383_v40 }
 0x373   : > { %v385_v42 = vmul.f32 1.442695, %v384_v41 }
 0x374   : > { %v397_v45 = vpop.permute.xlu0 %396 }
 0x375   : > { %611 = vpow2.f32 %v385_v42  ;;  %v402_v46 = vsel %vm276_vm3, %v397_v45, 0 }
 0x376   : > { %590 = vmatpush3.bf16.msra.mxu0 %v402_v46 }
 0x382   : > { %v612_v43 = vpop.eup %611 }
 0x383   : > { %v387_v44 = vsel %vm259_vm2, %v612_v43, 0.0 }
 0x384   : > { %388 = vadd.xlane.f32.xlu1 %v387_v44 }
 0x40d   : > { %v389_v47 = vpop.xlane.xlu1 %388 }
 0x40e   : > { %613 = vrcp.f32 %v389_v47 }
 0x41b   : > { %v614_v48 = vpop.eup %613 }
 0x41c   : > { %v391_v49 = vmul.f32 %v614_v48, %v612_v43 }
 0x41e   : > { %558 = vst.msk [vmem:[%s683_s25 + $0x8] sm:$0xff] %vm259_vm2, %v391_v49  ;;  %v394_v50 = vpack.c.bf16 %v391_v49, %v391_v49 }
 0x420   : > { %592 = vmatmul.mubr.msk.bf16.vlgmr.msra.gmra.mxu0 %vm259_vm2, %v394_v50 }
 0x4e0   : > { %v438_v51 = vpop.f32.mrf.mxu0 }
 0x4e1   : > { %445 = vrot.lane.b32.xlu0 %v438_v51, %s625_s21 }
 0x4e2   : > { %v593_v52 = vpop.f32.mrf.mxu0 }
 0x4e4   : > { %v441_v53 = vpop.f32.mrf.mxu0 }
 0x4e6   : > { %v594_v54 = vpop.f32.mrf.mxu0 }
 0x553   : > { %v446_v55 = vpop.permute.xlu0 %445 }
 0x554   : > { %449 = vst.msk [vmem:[%s695_s29] sm:$0xff] %vm448_vm4, %v446_v55 }
 0x555 PF: > { %s14_s12 = sadd.s32 1, %s621_s12  }
 0x556   : > { %p11_p4 = scmp.ge.s32.totalorder %s14_s12, 4  }
 0x558   :  { %13 = sbr.rel (!%p11_p4) target bundleno = 1 (0x1), region = 74 }

// kernel: fastspeech2_forward.37
= control target key start
LH: loop header
LB: loop body
LE: loop exit
PB: predicated region body
PF: predicated region fallthrough
CT: control target
= control target key end

     0   :  { %s1019_s27 = smov 0   ;;  %s1133_s0 = inlined_call_operand.vmem [shape: f32[2,10,32], index: 0, kind: input, shape index: {}]   ;;  %s1134_s1 = inlined_call_operand.vmem [shape: bf16[3,32,32], index: 1, kind: input, shape index: {}]   ;;  %s1135_s2 = inlined_call_operand.vmem [shape: f32[1,32], index: 2, kind: input, shape index: {}]   ;;  %s1136_s3 = inlined_call_operand.vmem [shape: bf16[3,32,32], index: 3, kind: input, shape index: {}]   ;;  %s1137_s4 = inlined_call_operand.vmem [shape: f32[1,32], index: 4, kind: input, shape index: {}]   ;;  %s1138_s5 = inlined_call_operand.vmem [shape: f32[1,32], index: 5, kind: input, shape index: {}]   ;;  %s1139_s6 = inlined_call_operand.vmem [shape: f32[1,32], index: 6, kind: input, shape index: {}]   ;;  %s1140_s7 = inlined_call_operand.vmem [shape: f32[2,8,1], index: 7, kind: input, shape index: {}]   ;;  %s1141_s8 = inlined_call_operand.vmem [shape: f32[2,8,32], index: 8, kind: output, shape index: {}]  }
   0x1 LB: > { %s820_s28 = sadd.s32 4294967295, %s969_s27   ;;  %p824_p0 = scmp.ge.s32.totalorder %s969_s27, 1  ;;  %s969_s27 = sphi %s1019_s27, %s18_s27  }
   0x2   : > { %p271_p1 = scmp.lt.s32.totalorder %s969_s27, 3 }
   0x4   : > { %p272_p2 = pnand %p824_p0, %p271_p1 }
   0x5   : > { %p308_p3 = scmp.lt.s32.totalorder (!%p272_p2), %s820_s28, 1 }
   0x6   : > { %275 = sbr.rel (%p272_p2) target bundleno = 755 (0x2f3), region = 52 }
   0xb   : > { %v949_v0 = vld [vmem:[%s1134_s1 + $0x18] sm:$0xff]   ;;  %v971_v1 = vmov 0.0   ;;  %v950_v2 = vld [vmem:[%s1134_s1 + $0x8] sm:$0xff]   ;;  %v951_v3 = vld [vmem:[%s1134_s1 + $0x10] sm:$0xff]   ;;  %vm972_vm0 = vmmov 0   ;;  %vm347_vm1 = vcmask 261120  }
   0xc   : > { %888 = vmatprep.subr.bf16.mxu0 %v971_v1  ;;  %896 = vmatprep.subr.bf16.mxu1 %v971_v1  ;;  %v952_v4 = vld [vmem:[%s1134_s1] sm:$0xff]   ;;  %s1143_s28 = smov (!%p308_p3, %s820_s28), 1  ;;  %518 = vst.msk [vmem:[#allocation2] sm:$0xff] %vm347_vm1, %v971_v1  ;;  %v953_v7 = vld [vmem:[%s1134_s1 + $0x28] sm:$0xff]   ;;  %vm519_vm2 = vcmask 254976   ;;  %v955_v13 = vld [vmem:[%s1136_s3 + $0x18] sm:$0xff]  }
   0xd   : > { %889 = vmatpush3.bf16.msra.mxu0 %v949_v0  ;;  %892 = vmatprep.mubr.msk.bf16.mxu0 %vm972_vm0, %v971_v1  ;;  %s869_s15 = sshll.u32 %s1143_s28, 4  ;;  %v954_v10 = vld [vmem:[%s1134_s1 + $0x20] sm:$0xff]   ;;  %520 = vst.msk [vmem:[#allocation2 + $0x8] sm:$0x3] %vm519_vm2, %v971_v1  ;;  %v956_v14 = vld [vmem:[%s1136_s3 + $0x8] sm:$0xff]   ;;  %v957_v15 = vld [vmem:[%s1136_s3 + $0x10] sm:$0xff]  }
   0xe   : > { %897 = vmatpush3.bf16.msra.mxu1 %v950_v2  ;;  %890 = vmatprep.subr.bf16.mxu0 %v971_v1  ;;  %s312_s18 = scalar_lea.vmem %s1133_s0, %s869_s15  ;;  %v958_v16 = vld [vmem:[%s1136_s3] sm:$0xff]   ;;  %v959_v36 = vld [vmem:[%s1136_s3 + $0x28] sm:$0xff]   ;;  %s827_s19 = sshll.u32 %s1143_s28, 3  ;;  %v973_v60 = vmov 0  }
   0xf   : > { %898 = vmatprep.subr.bf16.mxu1 %v971_v1  ;;  %900 = vmatprep.mubr.msk.bf16.mxu1 %vm972_vm0, %v971_v1  ;;  %v1056_v5 = vld [vmem:[%s312_s18 + $0x1] sm:$0xff]  ;;  %v846_v27 = vld [vmem:[%s1135_s2] ss:$0 sm:$0xff]  ;;  %s316_s22 = scalar_lea.vmem %s1140_s7, %s827_s19  ;;  %s320_s30 = scalar_lea.vmem %s1141_s8, %s827_s19 }
  0x10   : > { %v323_v6 = vld [vmem:[%s312_s18] sm:$0xff]  ;;  %v329_v8 = vpack.c.bf16 %v1056_v5, %v1056_v5  ;;  %947 = vset.pattern.permute.xlu1 %v973_v60  ;;  %948 = vset.pattern.permute.xlu0 %v973_v60 }
  0x11   : > { %891 = vmatpush3.bf16.msra.mxu0 %v951_v3  ;;  %v324_v9 = vpack.c.bf16 %v323_v6, %v323_v6  ;;  %v446_v11 = vld [vmem:[%s312_s18 + $0x2] sm:$0xff]  ;;  %v864_v52 = vld [vmem:[%s1137_s4] ss:$0 sm:$0xff] }
  0x12   : > { %899 = vmatpush3.bf16.msra.mxu1 %v952_v4  ;;  %904 = vmatprep.subr.bf16.mxu0 %v971_v1  ;;  %v447_v12 = vpack.c.bf16 %v446_v11, %v446_v11  ;;  %v960_v39 = vld [vmem:[%s1136_s3 + $0x20] sm:$0xff]  }
  0x13   : > { %912 = vmatprep.subr.bf16.mxu1 %v971_v1  ;;  %v747_v61 = vld [vmem:[%s316_s22] sm:$0xff] }
  0x14   : > { %893 = vmatmul.mubr.msk.bf16.vlgmr.msra.gmra.mxu0 %vm347_vm1, %v329_v8  ;;  %750 = vperm.xlu1 %947, %v747_v61  }
  0x15   : > { %901 = vmatmul.mubr.msk.bf16.vlgmr.msra.gmra.mxu1 %vm347_vm1, %v324_v9  ;;  %905 = vmatpush3.bf16.msra.mxu0 %v953_v7  ;;  %v865_v7 = vld [vmem:[%s1138_s5] ss:$0 sm:$0xff] }
  0x16   : > { %908 = vmatprep.mubr.msk.bf16.mxu0 %vm972_vm0, %v971_v1  ;;  %906 = vmatprep.subr.bf16.mxu0 %v971_v1  ;;  %v866_v9 = vld [vmem:[%s1139_s6] ss:$0 sm:$0xff] }
  0x17   : > { %916 = vmatprep.mubr.msk.bf16.mxu1 %vm972_vm0, %v971_v1  ;;  %913 = vmatpush3.bf16.msra.mxu1 %v955_v13 }
  0x18   : > { %914 = vmatprep.subr.bf16.mxu1 %v971_v1 }
  0x19   : > { %907 = vmatpush3.bf16.msra.mxu0 %v954_v10 }
  0x1a   : > { %920 = vmatprep.subr.bf16.mxu0 %v971_v1 }
  0x1b   : > { %915 = vmatpush3.bf16.msra.mxu1 %v957_v15 }
  0x1c   : > { %909 = vmatmul.mubr.msk.bf16.vlgmr.msra.gmra.mxu0 %vm347_vm1, %v447_v12  ;;  %928 = vmatprep.subr.bf16.mxu1 %v971_v1 }
  0x1d   : > { %924 = vmatprep.mubr.msk.bf16.mxu0 %vm972_vm0, %v971_v1  ;;  %921 = vmatpush3.bf16.msra.mxu0 %v956_v14 }
  0x1e   : > { %922 = vmatprep.subr.bf16.mxu0 %v971_v1 }
  0x21   : > { %923 = vmatpush3.bf16.msra.mxu0 %v958_v16 }
  0x8f   : > { %v751_v11 = vpop.permute.xlu1 %750 }
  0xd4   : > { %v385_v17 = vpop.f32.mrf.mxu0 }
  0xd5   : > { %v440_v18 = vpop.f32.mrf.mxu1 }
  0xd6   : > { %v894_v19 = vpop.f32.mrf.mxu0  ;;  %v441_v25 = vadd.f32 %v440_v18, %v385_v17 }
  0xd7   : > { %v902_v20 = vpop.f32.mrf.mxu1 }
  0xd8   : > { %v388_v21 = vpop.f32.mrf.mxu0 }
  0xd9   : > { %v443_v22 = vpop.f32.mrf.mxu1 }
  0xda   : > { %v895_v23 = vpop.f32.mrf.mxu0 }
  0xdb   : > { %v903_v24 = vpop.f32.mrf.mxu1 }
  0xdc   : > { %v502_v26 = vpop.f32.mrf.mxu0 }
  0xdd   : > { %v508_v28 = vadd.f32 %v502_v26, %v441_v25 }
  0xde   : > { %v910_v29 = vpop.f32.mrf.mxu0 }
  0xdf   : > { %v516_v30 = vadd.f32 %v846_v27, %v508_v28 }
  0xe0   : > { %v505_v31 = vpop.f32.mrf.mxu0 }
  0xe1   : > { %v517_v32 = vmax.f32 %v516_v30, 0.0 }
  0xe2   : > { %v911_v33 = vpop.f32.mrf.mxu0 }
  0xe3   : > { %521 = vst.msk [vmem:[#allocation2 + $0x1] sm:$0xff] %vm347_vm1, %v517_v32 }
  0xea   : > { %v528_v34 = vld [vmem:[#allocation2 + $0x1] sm:$0xff] }
  0xeb   : > { %v522_v35 = vld [vmem:[#allocation2] sm:$0xff]  ;;  %v529_v37 = vpack.c.bf16 %v528_v34, %v528_v34 }
  0xec   : > { %v523_v38 = vpack.c.bf16 %v522_v35, %v522_v35  ;;  %v645_v40 = vld [vmem:[#allocation2 + $0x2] sm:$0xff] }
  0xed   : > { %917 = vmatmul.mubr.msk.bf16.vlgmr.msra.gmra.mxu1 %vm347_vm1, %v529_v37  ;;  %v646_v41 = vpack.c.bf16 %v645_v40, %v645_v40 }
  0xee   : > { %925 = vmatmul.mubr.msk.bf16.vlgmr.msra.gmra.mxu0 %vm347_vm1, %v523_v38  ;;  %929 = vmatpush3.bf16.msra.mxu1 %v959_v36 }
  0xef   : > { %932 = vmatprep.mubr.msk.bf16.mxu1 %vm972_vm0, %v971_v1  ;;  %930 = vmatprep.subr.bf16.mxu1 %v971_v1 }
  0xf2   : > { %931 = vmatpush3.bf16.msra.mxu1 %v960_v39 }
  0xf5   : > { %933 = vmatmul.mubr.msk.bf16.vlgmr.msra.gmra.mxu1 %vm347_vm1, %v646_v41 }
 0x1ad   : > { %v584_v42 = vpop.f32.mrf.mxu1 }
 0x1ae   : > { %v639_v43 = vpop.f32.mrf.mxu0 }
 0x1af   : > { %v918_v44 = vpop.f32.mrf.mxu1  ;;  %v640_v50 = vadd.f32 %v639_v43, %v584_v42 }
 0x1b0   : > { %v926_v45 = vpop.f32.mrf.mxu0 }
 0x1b1   : > { %v587_v46 = vpop.f32.mrf.mxu1 }
 0x1b2   : > { %v642_v47 = vpop.f32.mrf.mxu0 }
 0x1b3   : > { %v919_v48 = vpop.f32.mrf.mxu1 }
 0x1b4   : > { %v927_v49 = vpop.f32.mrf.mxu0 }
 0x1b5   : > { %v701_v51 = vpop.f32.mrf.mxu1 }
 0x1b6   : > { %v707_v53 = vadd.f32 %v701_v51, %v640_v50 }
 0x1b7   : > { %v934_v54 = vpop.f32.mrf.mxu1 }
 0x1b8   : > { %v715_v55 = vadd.f32 %v864_v52, %v707_v53 }
 0x1b9   : > { %v704_v56 = vpop.f32.mrf.mxu1 }
 0x1ba   : > { %v716_v57 = vadd.f32 %v715_v55, %v1056_v5 }
 0x1bb   : > { %v935_v58 = vpop.f32.mrf.mxu1 }
 0x1bc   : > { %v717_v59 = vsel %vm347_vm1, %v716_v57, 0.0 }
 0x1bd   : > { %718 = vadd.xlane.f32.xlu0 %v717_v59 }
 0x246   : > { %v719_v62 = vpop.xlane.xlu0 %718 }
 0x247   : > { %v721_v63 = vmul.f32 0.03125, %v719_v62 }
 0x249   : > { %v722_v0 = vsub.f32 %v716_v57, %v721_v63 }
 0x24b   : > { %v723_v1 = vmul.f32 %v722_v0, %v722_v0 }
 0x24d   : > { %v724_v2 = vsel %vm347_vm1, %v723_v1, 0.0 }
 0x24e   : > { %725 = vadd.xlane.f32.xlu0 %v724_v2 }
 0x2d7   : > { %v726_v3 = vpop.xlane.xlu0 %725 }
 0x2d8   : > { %v727_v4 = vmul.f32 0.03125, %v726_v3 }
 0x2da   : > { %v728_v5 = vadd.f32 1e-05, %v727_v4 }
 0x2dc   : > { %961 = vrsqrt.f32 %v728_v5 }
 0x2e9   : > { %v962_v6 = vpop.eup %961 }
 0x2ea   : > { %v730_v8 = vmul.f32 %v962_v6, %v722_v0 }
 0x2ec   : > { %v738_v10 = vmul.f32 %v865_v7, %v730_v8 }
 0x2ee   : > { %v746_v12 = vadd.f32 %v866_v9, %v738_v10 }
 0x2f0   : > { %v753_v13 = vmul.f32 %v751_v11, %v746_v12 }
 0x2f2   : > { %754 = vst.msk [vmem:[%s320_s30] sm:$0xff] %vm347_vm1, %v753_v13 }
 0x2f3 PF: > { %s18_s27 = sadd.s32 1, %s969_s27  }
 0x2f4   : > { %p15_p4 = scmp.ge.s32.totalorder %s18_s27, 4  }
 0x2f6   :  { %17 = sbr.rel (!%p15_p4) target bundleno = 1 (0x1), region = 89 }

// kernel: fastspeech2_forward.51
= control target key start
LH: loop header
LB: loop body
LE: loop exit
PB: predicated region body
PF: predicated region fallthrough
CT: control target
= control target key end

     0   :  { %v341_v1 = vmov 0   ;;  %vm112_vm0 = vcmask 261120   ;;  %v35_v17 = vlaneseq  ;;  %s473_s1 = inlined_call_operand.vmem [shape: bf16[32,640], index: 1, kind: input, shape index: {}]   ;;  %s474_s0 = inlined_call_operand.vmem [shape: f32[32,32], index: 0, kind: input, shape index: {}]   ;;  %s475_s2 = inlined_call_operand.vmem [shape: f32[1,640], index: 2, kind: input, shape index: {}]   ;;  %s476_s3 = inlined_call_operand.vmem [shape: f32[32,640], index: 3, kind: output, shape index: {}]  }
   0x1   :  { %v327_v0 = vld [vmem:[%s473_s1 + $0x2c] ss:$20 sps:$4 sm:$0xff]   ;;  %151 = vmatprep.mubr.bf16.mxu0 %v341_v1  ;;  %204 = vmatprep.mubr.bf16.mxu1 %v341_v1  ;;  %v329_v2 = vld [vmem:[%s473_s1 + $0x28] ss:$20 sps:$4 sm:$0xff]   ;;  %v332_v4 = vld [vmem:[%s473_s1 + $0x4] ss:$20 sps:$4 sm:$0xff]  }
   0x2   :  { %131 = vmatprep.subr.bf16.mxu0 %v327_v0  ;;  %v330_v3 = vld [vmem:[%s473_s1 + $0x34] ss:$20 sps:$4 sm:$0xff]   ;;  %v334_v5 = vld [vmem:[%s473_s1 + $0x30] ss:$20 sps:$4 sm:$0xff]   ;;  %v336_v7 = vld [vmem:[%s473_s1 + $0xc] ss:$20 sps:$4 sm:$0xff]  }
   0x3   :  { %132 = vmatpush1.bf16.msra.mxu0 %v329_v2  ;;  %v335_v6 = vld [vmem:[%s473_s1] ss:$20 sps:$4 sm:$0xff]   ;;  %184 = vmatprep.subr.bf16.mxu1 %v330_v3  ;;  %v16_v9 = vld [vmem:[%s474_s0 + $0x8] sm:$0xff]  ;;  %v340_v13 = vld [vmem:[%s473_s1 + $0x10] ss:$20 sps:$4 sm:$0xff]   ;;  %v36_v18 = vshrl.u32 %v35_v17, 7 }
   0x4   :  { %133 = vmatprep.subr.bf16.mxu0 %v332_v4  ;;  %185 = vmatpush1.bf16.msra.mxu1 %v334_v5  ;;  %v15_v8 = vld [vmem:[%s474_s0] sm:$0xff]  ;;  %v338_v10 = vld [vmem:[%s473_s1 + $0x8] ss:$20 sps:$4 sm:$0xff]   ;;  %v339_v12 = vld [vmem:[%s473_s1 + $0x38] ss:$20 sps:$4 sm:$0xff]  }
   0x5   :  { %186 = vmatprep.subr.bf16.mxu1 %v336_v7  ;;  %v19_v11 = vpack.c.bf16 %v16_v9, %v15_v8  ;;  %v17_v14 = vld [vmem:[%s474_s0 + $0x10] sm:$0xff]  ;;  %v18_v15 = vld [vmem:[%s474_s0 + $0x18] sm:$0xff]  ;;  %v37_v19 = vsub.s32 0, %v36_v18  ;;  %v33_v20 = vld [vmem:[%s475_s2] sm:$0x1f]  ;;  %v41_v21 = vsub.s32 1, %v36_v18 }
   0x6   :  { %v20_v16 = vpack.c.bf16 %v18_v15, %v17_v14  ;;  %v45_v22 = vsub.s32 2, %v36_v18  ;;  %v49_v24 = vsub.s32 3, %v36_v18  ;;  %v53_v46 = vsub.s32 4, %v36_v18 }
   0x7   :  { %134 = vmatpush1.bf16.msra.mxu0 %v335_v6  ;;  %v38_v23 = vrot.slane %v33_v20, %v37_v19  ;;  %v42_v25 = vrot.slane %v33_v20, %v41_v21 }
   0x8   :  { %318 = vmatprep.subr.bf16.mxu0 %v339_v12  ;;  %187 = vmatpush1.bf16.msra.mxu1 %v338_v10  ;;  %v46_v26 = vrot.slane %v33_v20, %v45_v22  ;;  %v50_v29 = vrot.slane %v33_v20, %v49_v24  ;;  %v54_v55 = vrot.slane %v33_v20, %v53_v46 }
   0xa   :  { %308 = vmatmul.mubr.msk.bf16.vlgmr.msra.gmra.mxu0 %vm112_vm0, %v19_v11 }
   0xb   :  { %319 = vmatpush3.bf16.msra.mxu0 %v339_v12  ;;  %161 = vmatprep.mubr.bf16.mxu0 %v341_v1 }
   0xc   :  { %310 = vmatmul.mubr.msk.bf16.vlgmr.msra.gmra.mxu1 %vm112_vm0, %v19_v11  ;;  %320 = vmatprep.subr.bf16.mxu0 %v340_v13 }
   0xd   :  { %214 = vmatprep.mubr.bf16.mxu1 %v341_v1 }
   0xf   :  { %321 = vmatpush3.bf16.msra.mxu0 %v340_v13 }
  0x12   :  { %309 = vmatmul.mubr.msk.bf16.gmra.mxu0 %vm112_vm0, %v20_v16 }
  0x13   :  { %322 = vmatprep.mubr.msk.bf16.mxu0 %vm112_vm0, %v19_v11 }
  0x14   :  { %311 = vmatmul.mubr.msk.bf16.gmra.mxu1 %vm112_vm0, %v20_v16 }
  0x1a   :  { %323 = vmatmul.mubr.msk.bf16.vlgmr.msra.gmra.mxu0 %vm112_vm0, %v20_v16 }
  0xca   :  { %v153_v27 = vpop.f32.mrf.mxu0 }
  0xcb   :  { %v154_v28 = vadd.f32 %v153_v27, %v38_v23 }
  0xcc   :  { %v155_v30 = vpop.f32.mrf.mxu0  ;;  %v206_v31 = vpop.f32.mrf.mxu1 }
  0xcd   :  { %274 = vst [vmem:[%s476_s3] sm:$0xff] %v154_v28  ;;  %v156_v32 = vadd.f32 %v155_v30, %v42_v25  ;;  %v207_v33 = vadd.f32 %v206_v31, %v46_v26 }
  0xce   :  { %v157_v34 = vpop.f32.mrf.mxu0  ;;  %v208_v35 = vpop.f32.mrf.mxu1 }
  0xcf   :  { %275 = vst [vmem:[%s476_s3 + $0x8] sm:$0xff] %v156_v32  ;;  %276 = vst [vmem:[%s476_s3 + $0x10] sm:$0xff] %v207_v33  ;;  %v158_v36 = vadd.f32 %v157_v34, %v38_v23  ;;  %v209_v37 = vadd.f32 %v208_v35, %v50_v29 }
  0xd0   :  { %v159_v38 = vpop.f32.mrf.mxu0  ;;  %v210_v39 = vpop.f32.mrf.mxu1 }
  0xd1   :  { %279 = vst [vmem:[%s476_s3 + $0x28] sm:$0xff] %v158_v36  ;;  %277 = vst [vmem:[%s476_s3 + $0x18] sm:$0xff] %v209_v37  ;;  %v160_v40 = vadd.f32 %v159_v38, %v42_v25  ;;  %v211_v41 = vadd.f32 %v210_v39, %v46_v26 }
  0xd2   :  { %v163_v42 = vpop.f32.mrf.mxu0  ;;  %v212_v43 = vpop.f32.mrf.mxu1 }
  0xd3   :  { %280 = vst [vmem:[%s476_s3 + $0x30] sm:$0xff] %v160_v40  ;;  %281 = vst [vmem:[%s476_s3 + $0x38] sm:$0xff] %v211_v41  ;;  %v164_v44 = vadd.f32 %v163_v42, %v38_v23  ;;  %v213_v45 = vadd.f32 %v212_v43, %v50_v29 }
  0xd4   :  { %v165_v47 = vpop.f32.mrf.mxu0  ;;  %v216_v48 = vpop.f32.mrf.mxu1 }
  0xd5   :  { %284 = vst [vmem:[%s476_s3 + $0x50] sm:$0xff] %v164_v44  ;;  %282 = vst [vmem:[%s476_s3 + $0x40] sm:$0xff] %v213_v45  ;;  %v166_v49 = vadd.f32 %v165_v47, %v42_v25  ;;  %v217_v50 = vadd.f32 %v216_v48, %v46_v26 }
  0xd6   :  { %v167_v51 = vpop.f32.mrf.mxu0  ;;  %v218_v52 = vpop.f32.mrf.mxu1 }
  0xd7   :  { %285 = vst [vmem:[%s476_s3 + $0x58] sm:$0xff] %v166_v49  ;;  %286 = vst [vmem:[%s476_s3 + $0x60] sm:$0xff] %v217_v50  ;;  %v168_v53 = vadd.f32 %v167_v51, %v38_v23  ;;  %v219_v54 = vadd.f32 %v218_v52, %v50_v29 }
  0xd8   :  { %v169_v56 = vpop.f32.mrf.mxu0  ;;  %v220_v57 = vpop.f32.mrf.mxu1 }
  0xd9   :  { %289 = vst [vmem:[%s476_s3 + $0x78] sm:$0xff] %v168_v53  ;;  %287 = vst [vmem:[%s476_s3 + $0x68] sm:$0xff] %v219_v54  ;;  %v170_v58 = vadd.f32 %v169_v56, %v42_v25  ;;  %v221_v59 = vadd.f32 %v220_v57, %v46_v26 }
  0xda   :  { %v324_v60 = vpop.f32.mrf.mxu0  ;;  %v222_v61 = vpop.f32.mrf.mxu1 }
  0xdb   :  { %290 = vst [vmem:[%s476_s3 + $0x80] sm:$0xff] %v170_v58  ;;  %291 = vst [vmem:[%s476_s3 + $0x88] sm:$0xff] %v221_v59  ;;  %v268_v62 = vadd.f32 %v324_v60, %v54_v55  ;;  %v223_v63 = vadd.f32 %v222_v61, %v50_v29 }
  0xdc   :  { %v259_v0 = vpop.f32.mrf.mxu0 }
  0xdd   :  { %288 = vst [vmem:[%s476_s3 + $0x70] sm:$0xff] %v268_v62  ;;  %292 = vst [vmem:[%s476_s3 + $0x90] sm:$0xff] %v223_v63  ;;  %v260_v1 = vadd.f32 %v259_v0, %v54_v55 }
  0xde   :  { %v325_v2 = vpop.f32.mrf.mxu0 }
  0xdf   :  { %278 = vst [vmem:[%s476_s3 + $0x20] sm:$0xff] %v260_v1  ;;  %v271_v3 = vadd.f32 %v325_v2, %v54_v55 }
  0xe0   :  { %v262_v4 = vpop.f32.mrf.mxu0 }
  0xe1   :  { %293 = vst [vmem:[%s476_s3 + $0x98] sm:$0xff] %v271_v3  ;;  %v263_v5 = vadd.f32 %v262_v4, %v54_v55 }
  0xe3   :  { %283 = vst [vmem:[%s476_s3 + $0x48] sm:$0xff] %v263_v5 }

// kernel: fastspeech2_forward.52
= control target key start
LH: loop header
LB: loop body
LE: loop exit
PB: predicated region body
PF: predicated region fallthrough
CT: control target
= control target key end

     0   :  { %s679_s12 = smov 0   ;;  %s764_s0 = inlined_call_operand.vmem [shape: f32[2,16,640], index: 0, kind: input, shape index: {}]   ;;  %s765_s1 = inlined_call_operand.vmem [shape: f32[2,1,16], index: 1, kind: input, shape index: {}]   ;;  %s766_s2 = inlined_call_operand.vmem [shape: f32[2,16,128], index: 2, kind: output, shape index: {0}]   ;;  %s767_s3 = inlined_call_operand.vmem [shape: f32[2,2,16,16], index: 3, kind: output, shape index: {1}]  }
   0x1 LB: > { %s569_s13 = sadd.s32 4294967295, %s654_s12   ;;  %p573_p0 = scmp.ge.s32.totalorder %s654_s12, 1  ;;  %s654_s12 = sphi %s679_s12, %s14_s12  }
   0x2   : > { %p148_p1 = scmp.lt.s32.totalorder %s654_s12, 3 }
   0x4   : > { %p149_p2 = pnand %p573_p0, %p148_p1 }
   0x5   : > { %p180_p3 = scmp.lt.s32.totalorder (!%p149_p2), %s569_s13, 1  ;;  %s658_s29 = smov (!%p149_p2), 64  }
   0x6   : > { %152 = sbr.rel (%p149_p2) target bundleno = 1376 (0x560), region = 28 }
   0xb   : > { %v656_v0 = vmov 0.0   ;;  %vm657_vm0 = vmmov 0   ;;  %s769_s13 = smov (!%p180_p3, %s569_s13), 1  ;;  %vm260_vm1 = vcmask 130048   ;;  %vm330_vm2 = vcmask 523264  }
   0xc   : > { %596 = vmatprep.subr.bf16.mxu0 %v656_v0  ;;  %598 = vmatprep.mubr.msk.bf16.mxu0 %vm657_vm0, %v656_v0  ;;  %s620_s14 = smul.u32 80, %s769_s13  ;;  %s187_s20 = scalar_lea.vmem %s765_s1, %s769_s13  ;;  %vm469_vm3 = vcmask 1048064  }
   0xd   : > { %602 = vmatprep.subr.bf16.mxu1 %v656_v0  ;;  %604 = vmatprep.mubr.msk.bf16.mxu1 %vm657_vm0, %v656_v0  ;;  %v712_v8 = vld [vmem:[%s187_s20] ss:$0 sm:$0xff]  ;;  %s587_s21 = sshll.u32 %s769_s13, 5  ;;  %s586_s25 = sshll.u32 %s769_s13, 4 }
   0xe   : > { %s699_s17 = scalar_lea.vmem %s764_s0, %s620_s14  ;;  %s727_s24 = scalar_lea.vmem %s767_s3, %s587_s21 }
   0xf   : > { %v203_v1 = vld [vmem:[%s699_s17 + $0x10] sm:$0xff]  ;;  %v204_v2 = vld [vmem:[%s699_s17 + $0x38] sm:$0xff]  ;;  %v200_v4 = vld [vmem:[%s699_s17] sm:$0xff]  ;;  %s744_s28 = scalar_lea.vmem %s766_s2, %s586_s25 }
  0x10   : > { %v205_v3 = vpack.c.bf16 %v204_v2, %v203_v1  ;;  %v201_v5 = vld [vmem:[%s699_s17 + $0x28] sm:$0xff]  ;;  %v206_v28 = vld [vmem:[%s699_s17 + $0x20] sm:$0xff]  ;;  %v336_v35 = vld [vmem:[%s699_s17 + $0x18] sm:$0xff] }
  0x11   : > { %v202_v6 = vpack.c.bf16 %v201_v5, %v200_v4  ;;  %v207_v29 = vld [vmem:[%s699_s17 + $0x48] sm:$0xff]  ;;  %v337_v36 = vld [vmem:[%s699_s17 + $0x40] sm:$0xff]  ;;  %v334_v42 = vld [vmem:[%s699_s17 + $0x30] sm:$0xff] }
  0x12   : > { %597 = vmatpush3.bf16.xpose.msra.mxu0 %v205_v3  ;;  %v208_v30 = vpack.c.bf16 %v207_v29, %v206_v28  ;;  %v338_v39 = vpack.c.bf16 %v337_v36, %v336_v35  ;;  %v333_v41 = vld [vmem:[%s699_s17 + $0x8] sm:$0xff] }
  0x13   : > { %614 = vmatprep.subr.bf16.mxu0 %v656_v0  ;;  %v335_v43 = vpack.c.bf16 %v334_v42, %v333_v41 }
  0x14   : > { %603 = vmatpush3.bf16.msra.mxu1 %v208_v30 }
  0x15   : > { %608 = vmatprep.subr.bf16.mxu1 %v656_v0 }
  0x19   : > { %599 = vmatmul.mubr.bf16.vlgmr.msra.gmra.mxu0 %v202_v6 }
  0x1a   : > { %616 = vmatprep.mubr.msk.bf16.mxu0 %vm657_vm0, %v656_v0 }
  0xd9   : > { %v243_v7 = vpop.f32.mrf.mxu0 }
  0xda   : > { %v250_v9 = vmul.f32 0.088388346, %v243_v7 }
  0xdb   : > { %v600_v10 = vpop.f32.mrf.mxu0 }
  0xdc   : > { %v258_v11 = vadd.f32 %v712_v8, %v250_v9 }
  0xdd   : > { %v246_v12 = vpop.f32.mrf.mxu0 }
  0xde   : > { %v251_v13 = vmul.f32 0.088388346, %v246_v12  ;;  %v261_v14 = vsel %vm260_vm1, %v258_v11, -inf }
  0xdf   : > { %262 = vmax.xlane.f32.xlu0 %v261_v14  ;;  %v601_v15 = vpop.f32.mrf.mxu0 }
  0xe0   : > { %v259_v16 = vadd.f32 %v712_v8, %v251_v13 }
  0xe2   : > { %v264_v17 = vsel %vm260_vm1, %v259_v16, -inf }
  0xe3   : > { %265 = vmax.xlane.f32.xlu0 %v264_v17 }
 0x168   : > { %v263_v18 = vpop.xlane.xlu0 %262 }
 0x169   : > { %v267_v19 = vsub.f32 %v258_v11, %v263_v18 }
 0x16b   : > { %v269_v20 = vmul.f32 1.442695, %v267_v19 }
 0x16c   : > { %v266_v21 = vpop.xlane.xlu0 %265 }
 0x16d   : > { %632 = vpow2.f32 %v269_v20  ;;  %v268_v22 = vsub.f32 %v259_v16, %v266_v21 }
 0x16f   : > { %v271_v23 = vmul.f32 1.442695, %v268_v22 }
 0x171   : > { %634 = vpow2.f32 %v271_v23 }
 0x17a   : > { %v633_v24 = vpop.eup %632 }
 0x17b   : > { %v273_v25 = vsel %vm260_vm1, %v633_v24, 0.0 }
 0x17c   : > { %274 = vadd.xlane.f32.xlu1 %v273_v25 }
 0x17e   : > { %v635_v26 = vpop.eup %634 }
 0x17f   : > { %v276_v27 = vsel %vm260_vm1, %v635_v26, 0.0 }
 0x180   : > { %277 = vadd.xlane.f32.xlu1 %v276_v27 }
 0x205   : > { %v275_v31 = vpop.xlane.xlu1 %274 }
 0x206   : > { %636 = vrcp.f32 %v275_v31 }
 0x209   : > { %v278_v32 = vpop.xlane.xlu1 %277 }
 0x20a   : > { %638 = vrcp.f32 %v278_v32 }
 0x213   : > { %v637_v33 = vpop.eup %636 }
 0x214   : > { %v281_v34 = vmul.f32 %v637_v33, %v633_v24 }
 0x216   : > { %283 = vst.msk [vmem:[%s727_s24] sm:$0xff] %vm260_vm1, %v281_v34 }
 0x217   : > { %v639_v37 = vpop.eup %638 }
 0x218   : > { %v282_v38 = vmul.f32 %v639_v37, %v635_v26 }
 0x21a   : > { %284 = vst.msk [vmem:[%s727_s24 + $0x8] sm:$0xff] %vm260_vm1, %v282_v38  ;;  %v285_v40 = vpack.c.bf16 %v282_v38, %v281_v34 }
 0x21c   : > { %605 = vmatmul.mubr.msk.bf16.vlgmr.msra.gmra.mxu1 %vm260_vm1, %v285_v40 }
 0x21d   : > { %609 = vmatpush3.bf16.xpose.msra.mxu1 %v338_v39  ;;  %610 = vmatprep.mubr.msk.bf16.mxu1 %vm657_vm0, %v656_v0 }
 0x224   : > { %611 = vmatmul.mubr.bf16.vlgmr.msra.gmra.mxu1 %v335_v43 }
 0x2dc   : > { %v323_v44 = vpop.f32.mrf.mxu1 }
 0x2dd   : > { %331 = vst.msk [vmem:[%s744_s28] sm:$0xff] %vm330_vm2, %v323_v44 }
 0x2de   : > { %v606_v45 = vpop.f32.mrf.mxu1 }
 0x2e0   : > { %v326_v46 = vpop.f32.mrf.mxu1 }
 0x2e1   : > { %332 = vst.msk [vmem:[%s744_s28 + $0x8] sm:$0xff] %vm330_vm2, %v326_v46 }
 0x2e2   : > { %v607_v47 = vpop.f32.mrf.mxu1 }
 0x2e4   : > { %v376_v48 = vpop.f32.mrf.mxu1 }
 0x2e5   : > { %v383_v49 = vmul.f32 0.088388346, %v376_v48 }
 0x2e6   : > { %v612_v50 = vpop.f32.mrf.mxu1 }
 0x2e7   : > { %v385_v51 = vadd.f32 %v712_v8, %v383_v49 }
 0x2e8   : > { %v379_v52 = vpop.f32.mrf.mxu1 }
 0x2e9   : > { %v384_v53 = vmul.f32 0.088388346, %v379_v52  ;;  %v387_v54 = vsel %vm260_vm1, %v385_v51, -inf }
 0x2ea   : > { %388 = vmax.xlane.f32.xlu0 %v387_v54  ;;  %v613_v55 = vpop.f32.mrf.mxu1 }
 0x2eb   : > { %v386_v56 = vadd.f32 %v712_v8, %v384_v53 }
 0x2ed   : > { %v390_v57 = vsel %vm260_vm1, %v386_v56, -inf }
 0x2ee   : > { %391 = vmax.xlane.f32.xlu1 %v390_v57 }
 0x373   : > { %v389_v58 = vpop.xlane.xlu0 %388 }
 0x374   : > { %v393_v59 = vsub.f32 %v385_v51, %v389_v58 }
 0x376   : > { %v395_v60 = vmul.f32 1.442695, %v393_v59 }
 0x377   : > { %v392_v61 = vpop.xlane.xlu1 %391 }
 0x378   : > { %640 = vpow2.f32 %v395_v60  ;;  %v394_v62 = vsub.f32 %v386_v56, %v392_v61 }
 0x37a   : > { %v397_v63 = vmul.f32 1.442695, %v394_v62 }
 0x37c   : > { %642 = vpow2.f32 %v397_v63 }
 0x385   : > { %v641_v0 = vpop.eup %640 }
 0x386   : > { %v399_v1 = vsel %vm260_vm1, %v641_v0, 0.0 }
 0x387   : > { %400 = vadd.xlane.f32.xlu0 %v399_v1 }
 0x389   : > { %v643_v2 = vpop.eup %642 }
 0x38a   : > { %v402_v3 = vsel %vm260_vm1, %v643_v2, 0.0 }
 0x38b   : > { %403 = vadd.xlane.f32.xlu1 %v402_v3 }
 0x39d   : > { %414 = vrot.lane.b32.xlu0 %v208_v30, %s658_s29 }
 0x410   : > { %v401_v4 = vpop.xlane.xlu0 %400 }
 0x411   : > { %644 = vrcp.f32 %v401_v4 }
 0x414   : > { %v404_v5 = vpop.xlane.xlu1 %403  ;;  %v415_v6 = vpop.permute.xlu0 %414 }
 0x415   : > { %646 = vrcp.f32 %v404_v5  ;;  %615 = vmatpush3.bf16.msra.mxu0 %v415_v6 }
 0x41e   : > { %v645_v7 = vpop.eup %644 }
 0x41f   : > { %v407_v8 = vmul.f32 %v645_v7, %v641_v0 }
 0x421   : > { %581 = vst.msk [vmem:[%s727_s24 + $0x10] sm:$0xff] %vm260_vm1, %v407_v8 }
 0x422   : > { %v647_v9 = vpop.eup %646 }
 0x423   : > { %v408_v10 = vmul.f32 %v647_v9, %v643_v2 }
 0x425   : > { %582 = vst.msk [vmem:[%s727_s24 + $0x18] sm:$0xff] %vm260_vm1, %v408_v10  ;;  %v412_v11 = vpack.c.bf16 %v408_v10, %v407_v8 }
 0x427   : > { %617 = vmatmul.mubr.msk.bf16.vlgmr.msra.gmra.mxu0 %vm260_vm1, %v412_v11 }
 0x4e7   : > { %v454_v12 = vpop.f32.mrf.mxu0 }
 0x4e8   : > { %463 = vrot.lane.b32.xlu1 %v454_v12, %s658_s29 }
 0x4e9   : > { %v618_v13 = vpop.f32.mrf.mxu0 }
 0x4eb   : > { %v457_v14 = vpop.f32.mrf.mxu0 }
 0x4ec   : > { %465 = vrot.lane.b32.xlu1 %v457_v14, %s658_s29 }
 0x4ed   : > { %v619_v15 = vpop.f32.mrf.mxu0 }
 0x55a   : > { %v464_v16 = vpop.permute.xlu1 %463 }
 0x55b   : > { %470 = vst.msk [vmem:[%s744_s28] sm:$0xff] %vm469_vm3, %v464_v16 }
 0x55e   : > { %v466_v17 = vpop.permute.xlu1 %465 }
 0x55f   : > { %471 = vst.msk [vmem:[%s744_s28 + $0x8] sm:$0xff] %vm469_vm3, %v466_v17 }
 0x560 PF: > { %s14_s12 = sadd.s32 1, %s654_s12  }
 0x561   : > { %p11_p4 = scmp.ge.s32.totalorder %s14_s12, 4  }
 0x563   :  { %13 = sbr.rel (!%p11_p4) target bundleno = 1 (0x1), region = 74 }

// kernel: fastspeech2_forward.53
= control target key start
LH: loop header
LB: loop body
LE: loop exit
PB: predicated region body
PF: predicated region fallthrough
CT: control target
= control target key end

     0   :  { %v333_v14 = vmov 0   ;;  %vm161_vm0 = vcmask 261120   ;;  %s467_s1 = inlined_call_operand.vmem [shape: bf16[128,32], index: 1, kind: input, shape index: {}]   ;;  %s468_s0 = inlined_call_operand.vmem [shape: f32[32,128], index: 0, kind: input, shape index: {}]   ;;  %s469_s2 = inlined_call_operand.vmem [shape: f32[1,32], index: 2, kind: input, shape index: {}]   ;;  %s470_s3 = inlined_call_operand.vmem [shape: f32[32,32], index: 3, kind: input, shape index: {}]   ;;  %s471_s4 = inlined_call_operand.vmem [shape: f32[32,1], index: 4, kind: input, shape index: {}]   ;;  %s472_s5 = inlined_call_operand.vmem [shape: f32[1,32], index: 5, kind: input, shape index: {}]   ;;  %s473_s6 = inlined_call_operand.vmem [shape: f32[1,32], index: 6, kind: input, shape index: {}]   ;;  %s474_s7 = inlined_call_operand.vmem [shape: f32[32,32], index: 7, kind: output, shape index: {}]  }
   0x1   :  { %v317_v0 = vld [vmem:[%s467_s1 + $0x38] sm:$0xff]   ;;  %v318_v1 = vld [vmem:[%s467_s1 + $0x30] sm:$0xff]   ;;  %v319_v2 = vld [vmem:[%s467_s1 + $0x28] sm:$0xff]   ;;  %316 = vset.pattern.permute.xlu1 %v333_v14  ;;  %315 = vset.pattern.permute.xlu0 %v333_v14 }
   0x2   :  { %294 = vmatprep.subr.bf16.mxu0 %v317_v0  ;;  %v320_v3 = vld [vmem:[%s467_s1 + $0x20] sm:$0xff]   ;;  %v28_v5 = vld [vmem:[%s468_s0 + $0x8] sm:$0xff]  ;;  %v321_v7 = vld [vmem:[%s467_s1 + $0x18] sm:$0xff]  }
   0x3   :  { %295 = vmatpush3.bf16.msra.mxu0 %v317_v0  ;;  %v27_v4 = vld [vmem:[%s468_s0] sm:$0xff]  ;;  %v322_v8 = vld [vmem:[%s467_s1 + $0x10] sm:$0xff]   ;;  %v323_v9 = vld [vmem:[%s467_s1 + $0x8] sm:$0xff]  }
   0x4   :  { %296 = vmatprep.subr.bf16.mxu0 %v318_v1  ;;  %v31_v6 = vpack.c.bf16 %v28_v5, %v27_v4  ;;  %v324_v10 = vld [vmem:[%s467_s1] sm:$0xff]   ;;  %v29_v11 = vld [vmem:[%s468_s0 + $0x10] sm:$0xff]  ;;  %v30_v12 = vld [vmem:[%s468_s0 + $0x18] sm:$0xff] }
   0x5   :  { %v32_v13 = vpack.c.bf16 %v30_v12, %v29_v11  ;;  %v273_v15 = vld [vmem:[%s469_s2] ss:$0 sm:$0xff]  ;;  %v155_v17 = vld [vmem:[%s470_s3 + $0x10] sm:$0xff]  ;;  %v156_v24 = vld [vmem:[%s470_s3 + $0x18] sm:$0xff] }
   0x6   :  { %310 = vmatprep.mubr.bf16.mxu0 %v31_v6  ;;  %v153_v20 = vld [vmem:[%s470_s3] sm:$0xff]  ;;  %v154_v29 = vld [vmem:[%s470_s3 + $0x8] sm:$0xff]  ;;  %v239_v37 = vld [vmem:[%s471_s4 + $0x10] sm:$0xff] }
   0x7   :  { %297 = vmatpush3.bf16.msra.mxu0 %v318_v1  ;;  %v238_v36 = vld [vmem:[%s471_s4 + $0x8] sm:$0xff]  ;;  %v240_v58 = vld [vmem:[%s471_s4 + $0x18] sm:$0xff]  ;;  %v237_v59 = vld [vmem:[%s471_s4] sm:$0xff] }
   0x8   :  { %298 = vmatprep.subr.bf16.mxu0 %v319_v2  ;;  %v282_v11 = vld [vmem:[%s472_s5] ss:$0 sm:$0xff] }
   0xb   :  { %299 = vmatpush3.bf16.msra.mxu0 %v319_v2 }
   0xc   :  { %300 = vmatprep.subr.bf16.mxu0 %v320_v3 }
   0xf   :  { %301 = vmatpush3.bf16.msra.mxu0 %v320_v3 }
  0x10   :  { %302 = vmatprep.subr.bf16.mxu0 %v321_v7 }
  0x13   :  { %303 = vmatpush3.bf16.msra.mxu0 %v321_v7 }
  0x14   :  { %304 = vmatprep.subr.bf16.mxu0 %v322_v8 }
  0x17   :  { %305 = vmatpush3.bf16.msra.mxu0 %v322_v8 }
  0x18   :  { %306 = vmatprep.subr.bf16.mxu0 %v323_v9 }
  0x1b   :  { %307 = vmatpush3.bf16.msra.mxu0 %v323_v9 }
  0x1c   :  { %308 = vmatprep.subr.bf16.mxu0 %v324_v10 }
  0x1f   :  { %309 = vmatpush3.bf16.msra.mxu0 %v324_v10 }
  0x22   :  { %311 = vmatmul.mubr.bf16.vlgmr.msra.gmra.mxu0 %v32_v13  ;;  %v283_v13 = vld [vmem:[%s473_s6] ss:$0 sm:$0xff] }
  0xe2   :  { %v312_v16 = vpop.f32.mrf.mxu0 }
  0xe3   :  { %v147_v18 = vadd.f32 %v312_v16, %v273_v15 }
  0xe4   :  { %v138_v19 = vpop.f32.mrf.mxu0 }
  0xe5   :  { %v139_v21 = vadd.f32 %v273_v15, %v138_v19  ;;  %v159_v22 = vadd.f32 %v155_v17, %v147_v18 }
  0xe6   :  { %v313_v23 = vpop.f32.mrf.mxu0 }
  0xe7   :  { %v150_v25 = vadd.f32 %v313_v23, %v273_v15  ;;  %v168_v26 = vsel %vm161_vm0, %v159_v22, 0.0  ;;  %v157_v27 = vadd.f32 %v153_v20, %v139_v21 }
  0xe8   :  { %169 = vadd.xlane.f32.xlu1 %v168_v26  ;;  %v141_v28 = vpop.f32.mrf.mxu0 }
  0xe9   :  { %v142_v30 = vadd.f32 %v273_v15, %v141_v28  ;;  %v162_v31 = vsel %vm161_vm0, %v157_v27, 0.0  ;;  %v160_v32 = vadd.f32 %v156_v24, %v150_v25 }
  0xea   :  { %163 = vadd.xlane.f32.xlu0 %v162_v31 }
  0xeb   :  { %v171_v33 = vsel %vm161_vm0, %v160_v32, 0.0  ;;  %v158_v34 = vadd.f32 %v154_v29, %v142_v30 }
  0xec   :  { %172 = vadd.xlane.f32.xlu1 %v171_v33 }
  0xed   :  { %v165_v35 = vsel %vm161_vm0, %v158_v34, 0.0 }
  0xee   :  { %166 = vadd.xlane.f32.xlu0 %v165_v35 }
  0xfd   :  { %248 = vperm.xlu1 %316, %v238_v36  }
 0x101   :  { %253 = vperm.xlu1 %316, %v239_v37  }
 0x171   :  { %v170_v38 = vpop.xlane.xlu1 %169 }
 0x172   :  { %v177_v39 = vmul.f32 0.03125, %v170_v38 }
 0x173   :  { %v164_v40 = vpop.xlane.xlu0 %163 }
 0x174   :  { %v181_v41 = vsub.f32 %v159_v22, %v177_v39  ;;  %v175_v42 = vmul.f32 0.03125, %v164_v40 }
 0x175   :  { %v173_v43 = vpop.xlane.xlu1 %172 }
 0x176   :  { %v179_v44 = vsub.f32 %v157_v27, %v175_v42  ;;  %v178_v45 = vmul.f32 0.03125, %v173_v43  ;;  %v185_v46 = vmul.f32 %v181_v41, %v181_v41 }
 0x177   :  { %v167_v47 = vpop.xlane.xlu0 %166 }
 0x178   :  { %v182_v48 = vsub.f32 %v160_v32, %v178_v45  ;;  %v176_v49 = vmul.f32 0.03125, %v167_v47  ;;  %v193_v50 = vsel %vm161_vm0, %v185_v46, 0.0  ;;  %v183_v51 = vmul.f32 %v179_v44, %v179_v44 }
 0x179   :  { %194 = vadd.xlane.f32.xlu0 %v193_v50  ;;  %v249_v60 = vpop.permute.xlu1 %248 }
 0x17a   :  { %v180_v52 = vsub.f32 %v158_v34, %v176_v49  ;;  %v186_v53 = vmul.f32 %v182_v48, %v182_v48  ;;  %v187_v55 = vsel %vm161_vm0, %v183_v51, 0.0 }
 0x17c   :  { %v196_v54 = vsel %vm161_vm0, %v186_v53, 0.0  ;;  %v184_v56 = vmul.f32 %v180_v52, %v180_v52 }
 0x17d   :  { %197 = vadd.xlane.f32.xlu1 %v196_v54  ;;  %188 = vadd.xlane.f32.xlu0 %v187_v55  ;;  %v254_v61 = vpop.permute.xlu1 %253 }
 0x17e   :  { %v190_v57 = vsel %vm161_vm0, %v184_v56, 0.0 }
 0x181   :  { %191 = vadd.xlane.f32.xlu1 %v190_v57 }
 0x192   :  { %258 = vperm.xlu1 %316, %v240_v58  }
 0x193   :  { %243 = vperm.xlu0 %315, %v237_v59  }
 0x202   :  { %v195_v62 = vpop.xlane.xlu0 %194 }
 0x203   :  { %v201_v63 = vmul.f32 0.03125, %v195_v62 }
 0x205   :  { %v205_v0 = vadd.f32 1e-05, %v201_v63 }
 0x206   :  { %v198_v1 = vpop.xlane.xlu1 %197  ;;  %v189_v2 = vpop.xlane.xlu0 %188 }
 0x207   :  { %325 = vrsqrt.f32 %v205_v0  ;;  %v202_v3 = vmul.f32 0.03125, %v198_v1  ;;  %v199_v4 = vmul.f32 0.03125, %v189_v2 }
 0x209   :  { %v206_v5 = vadd.f32 1e-05, %v202_v3  ;;  %v203_v6 = vadd.f32 1e-05, %v199_v4 }
 0x20a   :  { %v192_v7 = vpop.xlane.xlu1 %191 }
 0x20b   :  { %327 = vrsqrt.f32 %v206_v5  ;;  %v200_v8 = vmul.f32 0.03125, %v192_v7 }
 0x20c   :  { %329 = vrsqrt.f32 %v203_v6 }
 0x20d   :  { %v204_v9 = vadd.f32 1e-05, %v200_v8 }
 0x20e   :  { %v244_v26 = vpop.permute.xlu0 %243  ;;  %v259_v27 = vpop.permute.xlu1 %258 }
 0x20f   :  { %331 = vrsqrt.f32 %v204_v9 }
 0x214   :  { %v326_v10 = vpop.eup %325 }
 0x215   :  { %v213_v12 = vmul.f32 %v326_v10, %v181_v41 }
 0x217   :  { %v224_v14 = vmul.f32 %v282_v11, %v213_v12 }
 0x218   :  { %v328_v15 = vpop.eup %327 }
 0x219   :  { %v330_v16 = vpop.eup %329  ;;  %v214_v17 = vmul.f32 %v328_v15, %v182_v48  ;;  %v235_v18 = vadd.f32 %v283_v13, %v224_v14 }
 0x21a   :  { %v211_v19 = vmul.f32 %v330_v16, %v179_v44 }
 0x21b   :  { %v225_v20 = vmul.f32 %v282_v11, %v214_v17  ;;  %v263_v21 = vmul.f32 %v254_v61, %v235_v18 }
 0x21c   :  { %v332_v22 = vpop.eup %331  ;;  %v222_v23 = vmul.f32 %v282_v11, %v211_v19 }
 0x21d   :  { %v212_v24 = vmul.f32 %v332_v22, %v180_v52  ;;  %v236_v25 = vadd.f32 %v283_v13, %v225_v20  ;;  %267 = vst.msk [vmem:[%s474_s7 + $0x10] sm:$0xff] %vm161_vm0, %v263_v21 }
 0x21e   :  { %v233_v28 = vadd.f32 %v283_v13, %v222_v23 }
 0x21f   :  { %v223_v29 = vmul.f32 %v282_v11, %v212_v24  ;;  %v264_v30 = vmul.f32 %v259_v27, %v236_v25 }
 0x220   :  { %v261_v31 = vmul.f32 %v244_v26, %v233_v28 }
 0x221   :  { %v234_v32 = vadd.f32 %v283_v13, %v223_v29  ;;  %268 = vst.msk [vmem:[%s474_s7 + $0x18] sm:$0xff] %vm161_vm0, %v264_v30 }
 0x222   :  { %265 = vst.msk [vmem:[%s474_s7] sm:$0xff] %vm161_vm0, %v261_v31 }
 0x223   :  { %v262_v33 = vmul.f32 %v249_v60, %v234_v32 }
 0x225   :  { %266 = vst.msk [vmem:[%s474_s7 + $0x8] sm:$0xff] %vm161_vm0, %v262_v33 }

// kernel: fastspeech2_forward.54
= control target key start
LH: loop header
LB: loop body
LE: loop exit
PB: predicated region body
PF: predicated region fallthrough
CT: control target
= control target key end

     0   :  { %s1074_s27 = smov 0   ;;  %s1201_s0 = inlined_call_operand.vmem [shape: f32[2,18,32], index: 0, kind: input, shape index: {}]   ;;  %s1202_s1 = inlined_call_operand.vmem [shape: bf16[3,32,32], index: 1, kind: input, shape index: {}]   ;;  %s1203_s2 = inlined_call_operand.vmem [shape: f32[1,32], index: 2, kind: input, shape index: {}]   ;;  %s1204_s3 = inlined_call_operand.vmem [shape: bf16[3,32,32], index: 3, kind: input, shape index: {}]   ;;  %s1205_s4 = inlined_call_operand.vmem [shape: f32[1,32], index: 4, kind: input, shape index: {}]   ;;  %s1206_s5 = inlined_call_operand.vmem [shape: f32[1,32], index: 5, kind: input, shape index: {}]   ;;  %s1207_s6 = inlined_call_operand.vmem [shape: f32[1,32], index: 6, kind: input, shape index: {}]   ;;  %s1208_s7 = inlined_call_operand.vmem [shape: f32[2,16,1], index: 7, kind: input, shape index: {}]   ;;  %s1209_s8 = inlined_call_operand.vmem [shape: f32[2,16,32], index: 8, kind: output, shape index: {}]  }
   0x1 LB: > { %s870_s28 = sadd.s32 4294967295, %s1024_s27   ;;  %p874_p0 = scmp.ge.s32.totalorder %s1024_s27, 1  ;;  %s1024_s27 = sphi %s1074_s27, %s18_s27  }
   0x2   : > { %p272_p1 = scmp.lt.s32.totalorder %s1024_s27, 3 }
   0x4   : > { %p273_p2 = pnand %p874_p0, %p272_p1 }
   0x5   : > { %p311_p3 = scmp.lt.s32.totalorder (!%p273_p2), %s870_s28, 1 }
   0x6   : > { %276 = sbr.rel (%p273_p2) target bundleno = 763 (0x2fb), region = 52 }
   0xb   : > { %v1002_v0 = vld [vmem:[%s1202_s1 + $0x18] sm:$0xff]   ;;  %v1026_v1 = vmov 0.0   ;;  %v1003_v2 = vld [vmem:[%s1202_s1 + $0x8] sm:$0xff]   ;;  %v1004_v3 = vld [vmem:[%s1202_s1 + $0x10] sm:$0xff]   ;;  %vm1027_vm0 = vmmov 0   ;;  %vm354_vm1 = vcmask 261120  }
   0xc   : > { %940 = vmatprep.subr.bf16.mxu0 %v1026_v1  ;;  %948 = vmatprep.subr.bf16.mxu1 %v1026_v1  ;;  %v1005_v4 = vld [vmem:[%s1202_s1] sm:$0xff]   ;;  %s1211_s28 = smov (!%p311_p3, %s870_s28), 1  ;;  %532 = vst.msk [vmem:[#allocation2] sm:$0xff] %vm354_vm1, %v1026_v1  ;;  %533 = vst.msk [vmem:[#allocation2 + $0x8] sm:$0xff] %vm354_vm1, %v1026_v1  ;;  %v1006_v5 = vld [vmem:[%s1202_s1 + $0x28] sm:$0xff]   ;;  %vm534_vm2 = vcmask 254976  }
   0xd   : > { %941 = vmatpush3.bf16.msra.mxu0 %v1002_v0  ;;  %944 = vmatprep.mubr.msk.bf16.mxu0 %vm1027_vm0, %v1026_v1  ;;  %s988_s15 = smul.u32 24, %s1211_s28  ;;  %v1007_v12 = vld [vmem:[%s1202_s1 + $0x20] sm:$0xff]   ;;  %535 = vst.msk [vmem:[#allocation2 + $0x10] sm:$0x3] %vm534_vm2, %v1026_v1  ;;  %v1008_v16 = vld [vmem:[%s1204_s3 + $0x18] sm:$0xff]   ;;  %v1009_v17 = vld [vmem:[%s1204_s3 + $0x8] sm:$0xff]  }
   0xe   : > { %949 = vmatpush3.bf16.msra.mxu1 %v1003_v2  ;;  %942 = vmatprep.subr.bf16.mxu0 %v1026_v1  ;;  %v1010_v18 = vld [vmem:[%s1204_s3 + $0x10] sm:$0xff]   ;;  %v1011_v19 = vld [vmem:[%s1204_s3] sm:$0xff]   ;;  %v1012_v42 = vld [vmem:[%s1204_s3 + $0x28] sm:$0xff]   ;;  %s920_s19 = sshll.u32 %s1211_s28, 4 }
   0xf   : > { %950 = vmatprep.subr.bf16.mxu1 %v1026_v1  ;;  %952 = vmatprep.mubr.msk.bf16.mxu1 %vm1027_vm0, %v1026_v1  ;;  %s315_s20 = scalar_lea.vmem %s1201_s0, %s988_s15  ;;  %v897_v30 = vld [vmem:[%s1203_s2] ss:$0 sm:$0xff]  ;;  %s320_s22 = scalar_lea.vmem %s1208_s7, %s920_s19 }
  0x10   : > { %v1117_v6 = vld [vmem:[%s315_s20 + $0x1] sm:$0xff]  ;;  %v1119_v7 = vld [vmem:[%s315_s20 + $0x9] sm:$0xff]  ;;  %v915_v62 = vld [vmem:[%s1205_s4] ss:$0 sm:$0xff]  ;;  %s325_s9 = scalar_lea.vmem %s1209_s8, %s920_s19 }
  0x11   : > { %943 = vmatpush3.bf16.msra.mxu0 %v1004_v3  ;;  %v329_v8 = vld [vmem:[%s315_s20] sm:$0xff]  ;;  %v336_v9 = vpack.c.bf16 %v1119_v7, %v1117_v6  ;;  %v330_v10 = vld [vmem:[%s315_s20 + $0x8] sm:$0xff] }
  0x12   : > { %951 = vmatpush3.bf16.msra.mxu1 %v1005_v4  ;;  %956 = vmatprep.subr.bf16.mxu0 %v1026_v1  ;;  %v331_v11 = vpack.c.bf16 %v330_v10, %v329_v8  ;;  %v455_v13 = vld [vmem:[%s315_s20 + $0x2] sm:$0xff]  ;;  %v456_v14 = vld [vmem:[%s315_s20 + $0xa] sm:$0xff] }
  0x13   : > { %964 = vmatprep.subr.bf16.mxu1 %v1026_v1  ;;  %v457_v15 = vpack.c.bf16 %v456_v14, %v455_v13  ;;  %v1013_v48 = vld [vmem:[%s1204_s3 + $0x20] sm:$0xff]   ;;  %v1028_v13 = vmov 0  }
  0x14   : > { %945 = vmatmul.mubr.msk.bf16.vlgmr.msra.gmra.mxu0 %vm354_vm1, %v336_v9  ;;  %1000 = vset.pattern.permute.xlu0 %v1028_v13 }
  0x15   : > { %953 = vmatmul.mubr.msk.bf16.vlgmr.msra.gmra.mxu1 %vm354_vm1, %v331_v11  ;;  %957 = vmatpush3.bf16.msra.mxu0 %v1006_v5 }
  0x16   : > { %958 = vmatprep.subr.bf16.mxu0 %v1026_v1  ;;  %960 = vmatprep.mubr.msk.bf16.mxu0 %vm1027_vm0, %v1026_v1 }
  0x17   : > { %968 = vmatprep.mubr.msk.bf16.mxu1 %vm1027_vm0, %v1026_v1  ;;  %965 = vmatpush3.bf16.msra.mxu1 %v1008_v16 }
  0x18   : > { %966 = vmatprep.subr.bf16.mxu1 %v1026_v1  ;;  %1001 = vset.pattern.permute.xlu1 %v1028_v13 }
  0x19   : > { %959 = vmatpush3.bf16.msra.mxu0 %v1007_v12 }
  0x1a   : > { %972 = vmatprep.subr.bf16.mxu0 %v1026_v1 }
  0x1b   : > { %967 = vmatpush3.bf16.msra.mxu1 %v1010_v18 }
  0x1c   : > { %961 = vmatmul.mubr.msk.bf16.vlgmr.msra.gmra.mxu0 %vm354_vm1, %v457_v15  ;;  %980 = vmatprep.subr.bf16.mxu1 %v1026_v1 }
  0x1d   : > { %976 = vmatprep.mubr.msk.bf16.mxu0 %vm1027_vm0, %v1026_v1  ;;  %973 = vmatpush3.bf16.msra.mxu0 %v1009_v17 }
  0x1e   : > { %974 = vmatprep.subr.bf16.mxu0 %v1026_v1 }
  0x21   : > { %975 = vmatpush3.bf16.msra.mxu0 %v1011_v19 }
  0xd4   : > { %v392_v20 = vpop.f32.mrf.mxu0 }
  0xd5   : > { %v448_v21 = vpop.f32.mrf.mxu1 }
  0xd6   : > { %v946_v22 = vpop.f32.mrf.mxu0  ;;  %v449_v27 = vadd.f32 %v448_v21, %v392_v20 }
  0xd7   : > { %v954_v23 = vpop.f32.mrf.mxu1 }
  0xd8   : > { %v395_v24 = vpop.f32.mrf.mxu0  ;;  %v788_v23 = vld [vmem:[%s320_s22 + $0x8] sm:$0xff] }
  0xd9   : > { %v451_v25 = vpop.f32.mrf.mxu1 }
  0xda   : > { %v947_v26 = vpop.f32.mrf.mxu0  ;;  %v452_v33 = vadd.f32 %v451_v25, %v395_v24 }
  0xdb   : > { %v955_v28 = vpop.f32.mrf.mxu1 }
  0xdc   : > { %v512_v29 = vpop.f32.mrf.mxu0 }
  0xdd   : > { %v519_v31 = vadd.f32 %v512_v29, %v449_v27 }
  0xde   : > { %v962_v32 = vpop.f32.mrf.mxu0 }
  0xdf   : > { %v528_v34 = vadd.f32 %v897_v30, %v519_v31  ;;  %v916_v31 = vld [vmem:[%s1206_s5] ss:$0 sm:$0xff] }
  0xe0   : > { %v515_v35 = vpop.f32.mrf.mxu0 }
  0xe1   : > { %v530_v36 = vmax.f32 %v528_v34, 0.0  ;;  %v520_v37 = vadd.f32 %v515_v35, %v452_v33  ;;  %v917_v33 = vld [vmem:[%s1207_s6] ss:$0 sm:$0xff] }
  0xe2   : > { %v963_v38 = vpop.f32.mrf.mxu0 }
  0xe3   : > { %536 = vst.msk [vmem:[#allocation2 + $0x1] sm:$0xff] %vm354_vm1, %v530_v36  ;;  %v529_v39 = vadd.f32 %v897_v30, %v520_v37 }
  0xe5   : > { %v531_v40 = vmax.f32 %v529_v39, 0.0 }
  0xe7   : > { %537 = vst.msk [vmem:[#allocation2 + $0x9] sm:$0xff] %vm354_vm1, %v531_v40 }
  0xea   : > { %v545_v41 = vld [vmem:[#allocation2 + $0x1] sm:$0xff] }
  0xeb   : > { %v538_v44 = vld [vmem:[#allocation2] sm:$0xff] }
  0xee   : > { %v546_v43 = vld [vmem:[#allocation2 + $0x9] sm:$0xff] }
  0xef   : > { %v539_v45 = vld [vmem:[#allocation2 + $0x8] sm:$0xff]  ;;  %v547_v46 = vpack.c.bf16 %v546_v43, %v545_v41 }
  0xf0   : > { %v540_v47 = vpack.c.bf16 %v539_v45, %v538_v44  ;;  %v665_v49 = vld [vmem:[#allocation2 + $0x2] sm:$0xff]  ;;  %v666_v50 = vld [vmem:[#allocation2 + $0xa] sm:$0xff] }
  0xf1   : > { %969 = vmatmul.mubr.msk.bf16.vlgmr.msra.gmra.mxu1 %vm354_vm1, %v547_v46  ;;  %v667_v51 = vpack.c.bf16 %v666_v50, %v665_v49 }
  0xf2   : > { %977 = vmatmul.mubr.msk.bf16.vlgmr.msra.gmra.mxu0 %vm354_vm1, %v540_v47  ;;  %981 = vmatpush3.bf16.msra.mxu1 %v1012_v42 }
  0xf3   : > { %984 = vmatprep.mubr.msk.bf16.mxu1 %vm1027_vm0, %v1026_v1  ;;  %982 = vmatprep.subr.bf16.mxu1 %v1026_v1 }
  0xf6   : > { %983 = vmatpush3.bf16.msra.mxu1 %v1013_v48 }
  0xf9   : > { %985 = vmatmul.mubr.msk.bf16.vlgmr.msra.gmra.mxu1 %vm354_vm1, %v667_v51 }
 0x1b1   : > { %v602_v52 = vpop.f32.mrf.mxu1 }
 0x1b2   : > { %v658_v53 = vpop.f32.mrf.mxu0 }
 0x1b3   : > { %v970_v54 = vpop.f32.mrf.mxu1  ;;  %v659_v60 = vadd.f32 %v658_v53, %v602_v52 }
 0x1b4   : > { %v978_v55 = vpop.f32.mrf.mxu0 }
 0x1b5   : > { %v605_v56 = vpop.f32.mrf.mxu1 }
 0x1b6   : > { %v661_v57 = vpop.f32.mrf.mxu0 }
 0x1b7   : > { %v971_v58 = vpop.f32.mrf.mxu1  ;;  %v662_v1 = vadd.f32 %v661_v57, %v605_v56 }
 0x1b8   : > { %v979_v59 = vpop.f32.mrf.mxu0 }
 0x1b9   : > { %v722_v61 = vpop.f32.mrf.mxu1 }
 0x1ba   : > { %v729_v63 = vadd.f32 %v722_v61, %v659_v60 }
 0x1bb   : > { %v986_v0 = vpop.f32.mrf.mxu1 }
 0x1bc   : > { %v738_v2 = vadd.f32 %v915_v62, %v729_v63 }
 0x1bd   : > { %v725_v3 = vpop.f32.mrf.mxu1 }
 0x1be   : > { %v730_v4 = vadd.f32 %v725_v3, %v662_v1  ;;  %v740_v5 = vadd.f32 %v738_v2, %v1117_v6  ;;  %v787_v6 = vld [vmem:[%s320_s22] sm:$0xff] }
 0x1bf   : > { %v987_v8 = vpop.f32.mrf.mxu1 }
 0x1c0   : > { %v739_v9 = vadd.f32 %v915_v62, %v730_v4  ;;  %v742_v10 = vsel %vm354_vm1, %v740_v5, 0.0 }
 0x1c1   : > { %743 = vadd.xlane.f32.xlu0 %v742_v10 }
 0x1c2   : > { %v741_v11 = vadd.f32 %v739_v9, %v1119_v7 }
 0x1c4   : > { %v745_v12 = vsel %vm354_vm1, %v741_v11, 0.0 }
 0x1c5   : > { %746 = vadd.xlane.f32.xlu0 %v745_v12 }
 0x1db   : > { %791 = vperm.xlu0 %1000, %v787_v6  }
 0x24a   : > { %v744_v14 = vpop.xlane.xlu0 %743 }
 0x24b   : > { %v749_v15 = vmul.f32 0.03125, %v744_v14 }
 0x24d   : > { %v751_v16 = vsub.f32 %v740_v5, %v749_v15 }
 0x24e   : > { %v747_v17 = vpop.xlane.xlu0 %746 }
 0x24f   : > { %v750_v18 = vmul.f32 0.03125, %v747_v17  ;;  %v753_v7 = vmul.f32 %v751_v16, %v751_v16 }
 0x251   : > { %v752_v19 = vsub.f32 %v741_v11, %v750_v18  ;;  %v755_v20 = vsel %vm354_vm1, %v753_v7, 0.0 }
 0x252   : > { %756 = vadd.xlane.f32.xlu1 %v755_v20 }
 0x253   : > { %v754_v21 = vmul.f32 %v752_v19, %v752_v19 }
 0x255   : > { %v758_v22 = vsel %vm354_vm1, %v754_v21, 0.0 }
 0x256   : > { %759 = vadd.xlane.f32.xlu1 %v758_v22  ;;  %v792_v36 = vpop.permute.xlu0 %791 }
 0x267   : > { %796 = vperm.xlu1 %1001, %v788_v23  }
 0x2db   : > { %v757_v24 = vpop.xlane.xlu1 %756 }
 0x2dc   : > { %v761_v25 = vmul.f32 0.03125, %v757_v24 }
 0x2de   : > { %v763_v26 = vadd.f32 1e-05, %v761_v25 }
 0x2df   : > { %v760_v27 = vpop.xlane.xlu1 %759 }
 0x2e0   : > { %1014 = vrsqrt.f32 %v763_v26  ;;  %v762_v28 = vmul.f32 0.03125, %v760_v27 }
 0x2e2   : > { %v764_v29 = vadd.f32 1e-05, %v762_v28 }
 0x2e3   : > { %v797_v41 = vpop.permute.xlu1 %796 }
 0x2e4   : > { %1016 = vrsqrt.f32 %v764_v29 }
 0x2ed   : > { %v1015_v30 = vpop.eup %1014 }
 0x2ee   : > { %v767_v32 = vmul.f32 %v1015_v30, %v751_v16 }
 0x2f0   : > { %v776_v34 = vmul.f32 %v916_v31, %v767_v32 }
 0x2f1   : > { %v1017_v35 = vpop.eup %1016 }
 0x2f2   : > { %v785_v37 = vadd.f32 %v917_v33, %v776_v34  ;;  %v768_v38 = vmul.f32 %v1017_v35, %v752_v19 }
 0x2f4   : > { %v799_v39 = vmul.f32 %v792_v36, %v785_v37  ;;  %v777_v40 = vmul.f32 %v916_v31, %v768_v38 }
 0x2f6   : > { %801 = vst.msk [vmem:[%s325_s9] sm:$0xff] %vm354_vm1, %v799_v39  ;;  %v786_v42 = vadd.f32 %v917_v33, %v777_v40 }
 0x2f8   : > { %v800_v43 = vmul.f32 %v797_v41, %v786_v42 }
 0x2fa   : > { %802 = vst.msk [vmem:[%s325_s9 + $0x8] sm:$0xff] %vm354_vm1, %v800_v43 }
 0x2fb PF: > { %s18_s27 = sadd.s32 1, %s1024_s27  }
 0x2fc   : > { %p15_p4 = scmp.ge.s32.totalorder %s18_s27, 4  }
 0x2fe   :  { %17 = sbr.rel (!%p15_p4) target bundleno = 1 (0x1), region = 89 }

// kernel: fastspeech2_forward.67
= control target key start
LH: loop header
LB: loop body
LE: loop exit
PB: predicated region body
PF: predicated region fallthrough
CT: control target
= control target key end

     0   :  { %vm44_vm0 = vcmask 261120   ;;  %vm100_vm1 = vcmask 130048   ;;  %s181_s1 = inlined_call_operand.vmem [shape: bf16[32,16], index: 1, kind: input, shape index: {}]   ;;  %s182_s0 = inlined_call_operand.vmem [shape: f32[32,32], index: 0, kind: input, shape index: {}]   ;;  %s183_s2 = inlined_call_operand.vmem [shape: f32[1,16], index: 2, kind: input, shape index: {}]   ;;  %s184_s3 = inlined_call_operand.vmem [shape: f32[32,16], index: 3, kind: output, shape index: {}]  }
   0x1   :  { %v126_v0 = vld [vmem:[%s181_s1 + $0x8] sm:$0xff]   ;;  %v127_v1 = vld [vmem:[%s181_s1] sm:$0xff]   ;;  %v17_v5 = vld [vmem:[%s182_s0 + $0x10] sm:$0xff] }
   0x2   :  { %118 = vmatprep.subr.bf16.mxu0 %v126_v0  ;;  %v15_v2 = vld [vmem:[%s182_s0] sm:$0xff]  ;;  %v16_v3 = vld [vmem:[%s182_s0 + $0x8] sm:$0xff]  ;;  %v18_v6 = vld [vmem:[%s182_s0 + $0x18] sm:$0xff] }
   0x3   :  { %119 = vmatpush3.bf16.msra.mxu0 %v126_v0  ;;  %v19_v4 = vpack.c.bf16 %v16_v3, %v15_v2  ;;  %v20_v7 = vpack.c.bf16 %v18_v6, %v17_v5  ;;  %v109_v8 = vld [vmem:[%s183_s2] ss:$0 sm:$0xff] }
   0x4   :  { %120 = vmatprep.subr.bf16.mxu0 %v127_v1 }
   0x5   :  { %122 = vmatprep.mubr.msk.bf16.mxu0 %vm44_vm0, %v19_v4 }
   0x7   :  { %121 = vmatpush3.bf16.msra.mxu0 %v127_v1 }
   0xa   :  { %123 = vmatmul.mubr.msk.bf16.vlgmr.msra.gmra.mxu0 %vm44_vm0, %v20_v7 }
  0xca   :  { %v124_v9 = vpop.f32.mrf.mxu0 }
  0xcb   :  { %v94_v10 = vadd.f32 %v124_v9, %v109_v8 }
  0xcc   :  { %v85_v11 = vpop.f32.mrf.mxu0 }
  0xcd   :  { %103 = vst.msk [vmem:[%s184_s3 + $0x10] sm:$0xff] %vm100_vm1, %v94_v10  ;;  %v86_v12 = vadd.f32 %v109_v8, %v85_v11 }
  0xce   :  { %v125_v13 = vpop.f32.mrf.mxu0 }
  0xcf   :  { %101 = vst.msk [vmem:[%s184_s3] sm:$0xff] %vm100_vm1, %v86_v12  ;;  %v97_v14 = vadd.f32 %v125_v13, %v109_v8 }
  0xd0   :  { %v88_v15 = vpop.f32.mrf.mxu0 }
  0xd1   :  { %104 = vst.msk [vmem:[%s184_s3 + $0x18] sm:$0xff] %vm100_vm1, %v97_v14  ;;  %v89_v16 = vadd.f32 %v109_v8, %v88_v15 }
  0xd3   :  { %102 = vst.msk [vmem:[%s184_s3 + $0x8] sm:$0xff] %vm100_vm1, %v89_v16 }

// kernel: fastspeech2_forward.50
= control target key start
LH: loop header
LB: loop body
LE: loop exit
PB: predicated region body
PF: predicated region fallthrough
CT: control target
= control target key end

     0   :  { %s2595_s21 = smov 0   ;;  %s2962_s0 = inlined_call_operand.vmem [shape: f32[2,10,32], index: 0, kind: input, shape index: {}]   ;;  %s2963_s1 = inlined_call_operand.vmem [shape: bf16[3,3,32,32], index: 1, kind: input, shape index: {}]   ;;  %s2964_s2 = inlined_call_operand.vmem [shape: f32[3,32], index: 2, kind: input, shape index: {}]   ;;  %s2965_s3 = inlined_call_operand.vmem [shape: f32[3,32], index: 3, kind: input, shape index: {}]   ;;  %s2966_s4 = inlined_call_operand.vmem [shape: f32[3,32], index: 4, kind: input, shape index: {}]   ;;  %s2967_s5 = inlined_call_operand.vmem [shape: bf16[3,3,32,32], index: 5, kind: input, shape index: {}]   ;;  %s2968_s6 = inlined_call_operand.vmem [shape: f32[3,32], index: 6, kind: input, shape index: {}]   ;;  %s2969_s7 = inlined_call_operand.vmem [shape: f32[3,32], index: 7, kind: input, shape index: {}]   ;;  %s2970_s8 = inlined_call_operand.vmem [shape: f32[3,32], index: 8, kind: input, shape index: {}]   ;;  %s2971_s9 = inlined_call_operand.vmem [shape: bf16[32,3], index: 9, kind: input, shape index: {}]   ;;  %s2972_s10 = inlined_call_operand.vmem [shape: f32[1,3], index: 10, kind: input, shape index: {}]   ;;  %s2973_s11 = inlined_call_operand.vmem [shape: f32[2,8,1], index: 11, kind: input, shape index: {}]   ;;  %s2974_s12 = inlined_call_operand.vmem [shape: f32[2,8,3], index: 12, kind: output, shape index: {}]  }
   0x1 LB: > { %s2056_s22 = sadd.s32 4294967295, %s2523_s21   ;;  %p2060_p0 = scmp.ge.s32.totalorder %s2523_s21, 1  ;;  %s2523_s21 = sphi %s2595_s21, %s22_s21  }
   0x2   : > { %p371_p1 = scmp.lt.s32.totalorder %s2523_s21, 3 }
   0x4   : > { %p372_p2 = pnand %p2060_p0, %p371_p1 }
   0x5   : > { %p416_p3 = scmp.lt.s32.totalorder (!%p372_p2), %s2056_s22, 1  ;;  %s2527_s19 = smov (!%p372_p2), 127  }
   0x6   : > { %375 = sbr.rel (%p372_p2) target bundleno = 3476 (0xd94), region = 68  ;;  %s2529_s30 = smov (!%p372_p2), 126  }
   0xb   : > { %v2463_v0 = vld [vmem:[%s2963_s1 + $0x18] sm:$0xff]   ;;  %v2525_v1 = vmov 0.0   ;;  %v2464_v2 = vld [vmem:[%s2963_s1 + $0x8] sm:$0xff]   ;;  %v2465_v3 = vld [vmem:[%s2963_s1 + $0x10] sm:$0xff]   ;;  %vm2526_vm0 = vmmov 0   ;;  %vm455_vm1 = vcmask 261120  }
   0xc   : > { %2280 = vmatprep.subr.bf16.mxu0 %v2525_v1  ;;  %2288 = vmatprep.subr.bf16.mxu1 %v2525_v1  ;;  %v2466_v4 = vld [vmem:[%s2963_s1] sm:$0xff]   ;;  %s2976_s22 = smov (!%p416_p3, %s2056_s22), 1  ;;  %650 = vst.msk [vmem:[#allocation2] sm:$0xff] %vm455_vm1, %v2525_v1  ;;  %v2467_v7 = vld [vmem:[%s2963_s1 + $0x28] sm:$0xff]   ;;  %vm651_vm2 = vcmask 254976   ;;  %v2469_v36 = vld [vmem:[%s2967_s5 + $0x18] sm:$0xff]  }
   0xd   : > { %2281 = vmatpush3.bf16.msra.mxu0 %v2463_v0  ;;  %2284 = vmatprep.mubr.msk.bf16.mxu0 %vm2526_vm0, %v2525_v1  ;;  %s2216_s13 = sshll.u32 %s2976_s22, 4  ;;  %v2468_v10 = vld [vmem:[%s2963_s1 + $0x20] sm:$0xff]   ;;  %652 = vst.msk [vmem:[#allocation2 + $0x8] sm:$0x3] %vm651_vm2, %v2525_v1  ;;  %v2470_v37 = vld [vmem:[%s2967_s5 + $0x8] sm:$0xff]   ;;  %v2471_v38 = vld [vmem:[%s2967_s5 + $0x10] sm:$0xff]  }
   0xe   : > { %2289 = vmatpush3.bf16.msra.mxu1 %v2464_v2  ;;  %2282 = vmatprep.subr.bf16.mxu0 %v2525_v1  ;;  %s420_s16 = scalar_lea.vmem %s2962_s0, %s2216_s13  ;;  %v2082_v23 = vld [vmem:[%s2964_s2] ss:$0 sm:$0xff]  ;;  %v2473_v49 = vld [vmem:[%s2967_s5 + $0x28] sm:$0xff]   ;;  %s2063_s15 = sshll.u32 %s2976_s22, 3  ;;  %vm1989_vm6 = vcmask 23552  }
   0xf   : > { %2290 = vmatprep.subr.bf16.mxu1 %v2525_v1  ;;  %2292 = vmatprep.mubr.msk.bf16.mxu1 %vm2526_vm0, %v2525_v1  ;;  %v436_v5 = vld [vmem:[%s420_s16 + $0x1] sm:$0xff]  ;;  %v2083_v44 = vld [vmem:[%s2965_s3] ss:$0 sm:$0xff]  ;;  %s424_s18 = scalar_lea.vmem %s2973_s11, %s2063_s15  ;;  %s428_s29 = scalar_lea.vmem %s2974_s12, %s2063_s15 }
  0x10   : > { %v430_v6 = vld [vmem:[%s420_s16] sm:$0xff]  ;;  %v2636_v8 = vpack.c.bf16 %v436_v5, %v436_v5 }
  0x11   : > { %2283 = vmatpush3.bf16.msra.mxu0 %v2465_v3  ;;  %v2638_v9 = vpack.c.bf16 %v430_v6, %v430_v6  ;;  %v554_v11 = vld [vmem:[%s420_s16 + $0x2] sm:$0xff]  ;;  %v2084_v46 = vld [vmem:[%s2966_s4] ss:$0 sm:$0xff] }
  0x12   : > { %2291 = vmatpush3.bf16.msra.mxu1 %v2466_v4  ;;  %2296 = vmatprep.subr.bf16.mxu0 %v2525_v1  ;;  %v2652_v12 = vpack.c.bf16 %v554_v11, %v554_v11  ;;  %v2472_v39 = vld [vmem:[%s2967_s5] sm:$0xff]  }
  0x13   : > { %2304 = vmatprep.subr.bf16.mxu1 %v2525_v1  ;;  %v2474_v55 = vld [vmem:[%s2967_s5 + $0x20] sm:$0xff]  }
  0x14   : > { %2285 = vmatmul.mubr.msk.bf16.vlgmr.msra.gmra.mxu0 %vm455_vm1, %v2636_v8  ;;  %v2102_v4 = vld [vmem:[%s2968_s6] ss:$0 sm:$0xff] }
  0x15   : > { %2293 = vmatmul.mubr.msk.bf16.vlgmr.msra.gmra.mxu1 %vm455_vm1, %v2638_v9  ;;  %2297 = vmatpush3.bf16.msra.mxu0 %v2467_v7 }
  0x16   : > { %2300 = vmatprep.mubr.msk.bf16.mxu0 %vm2526_vm0, %v2525_v1  ;;  %2298 = vmatprep.subr.bf16.mxu0 %v2525_v1 }
  0x17   : > { %2308 = vmatprep.mubr.msk.bf16.mxu1 %vm2526_vm0, %v2525_v1  ;;  %2305 = vmatpush3.bf16.msra.mxu1 %v2469_v36 }
  0x18   : > { %2306 = vmatprep.subr.bf16.mxu1 %v2525_v1 }
  0x19   : > { %2299 = vmatpush3.bf16.msra.mxu0 %v2468_v10 }
  0x1a   : > { %2312 = vmatprep.subr.bf16.mxu0 %v2525_v1 }
  0x1b   : > { %2307 = vmatpush3.bf16.msra.mxu1 %v2471_v38 }
  0x1c   : > { %2301 = vmatmul.mubr.msk.bf16.vlgmr.msra.gmra.mxu0 %vm455_vm1, %v2652_v12  ;;  %2320 = vmatprep.subr.bf16.mxu1 %v2525_v1 }
  0x1d   : > { %2316 = vmatprep.mubr.msk.bf16.mxu0 %vm2526_vm0, %v2525_v1  ;;  %2313 = vmatpush3.bf16.msra.mxu0 %v2470_v37  ;;  %v2482_v37 = vld [vmem:[%s2963_s1 + $0x30] sm:$0xff]  }
  0x1e   : > { %2314 = vmatprep.subr.bf16.mxu0 %v2525_v1 }
  0x21   : > { %2315 = vmatpush3.bf16.msra.mxu0 %v2472_v39 }
  0x22   : > { %2328 = vmatprep.subr.bf16.mxu0 %v2525_v1 }
  0xd4   : > { %v493_v13 = vpop.f32.mrf.mxu0 }
  0xd5   : > { %v548_v14 = vpop.f32.mrf.mxu1 }
  0xd6   : > { %v2286_v15 = vpop.f32.mrf.mxu0  ;;  %v549_v21 = vadd.f32 %v548_v14, %v493_v13 }
  0xd7   : > { %v2294_v16 = vpop.f32.mrf.mxu1 }
  0xd8   : > { %v496_v17 = vpop.f32.mrf.mxu0 }
  0xd9   : > { %v551_v18 = vpop.f32.mrf.mxu1 }
  0xda   : > { %v2287_v19 = vpop.f32.mrf.mxu0 }
  0xdb   : > { %v2295_v20 = vpop.f32.mrf.mxu1 }
  0xdc   : > { %v610_v22 = vpop.f32.mrf.mxu0  ;;  %v2475_v20 = vld [vmem:[%s2963_s1 + $0x48] sm:$0xff]  }
  0xdd   : > { %v616_v24 = vadd.f32 %v610_v22, %v549_v21  ;;  %v2476_v21 = vld [vmem:[%s2971_s9 + $0x8] sm:$0xff]   ;;  %v2477_v22 = vld [vmem:[%s2963_s1 + $0x40] sm:$0xff]  }
  0xde   : > { %v2302_v25 = vpop.f32.mrf.mxu0 }
  0xdf   : > { %v622_v26 = vadd.f32 %v2082_v23, %v616_v24  ;;  %v2478_v23 = vld [vmem:[%s2971_s9] sm:$0xff]   ;;  %v2479_v24 = vld [vmem:[%s2963_s1 + $0x58] sm:$0xff]   ;;  %v2481_v25 = vld [vmem:[%s2963_s1 + $0x50] sm:$0xff]  }
  0xe0   : > { %v613_v27 = vpop.f32.mrf.mxu0 }
  0xe1   : > { %v623_v28 = vmax.f32 %v622_v26, 0.0 }
  0xe2   : > { %v2303_v29 = vpop.f32.mrf.mxu0 }
  0xe3   : > { %v624_v30 = vsel %vm455_vm1, %v623_v28, 0.0 }
  0xe4   : > { %625 = vadd.xlane.f32.xlu0 %v624_v30  ;;  %v2103_v30 = vld [vmem:[%s2969_s7] ss:$0 sm:$0xff] }
 0x16d   : > { %v626_v31 = vpop.xlane.xlu0 %625 }
 0x16e   : > { %v628_v32 = vmul.f32 0.03125, %v626_v31 }
 0x170   : > { %v629_v33 = vsub.f32 %v623_v28, %v628_v32  ;;  %v2104_v32 = vld [vmem:[%s2970_s8] ss:$0 sm:$0xff] }
 0x172   : > { %v630_v34 = vmul.f32 %v629_v33, %v629_v33 }
 0x174   : > { %v631_v35 = vsel %vm455_vm1, %v630_v34, 0.0 }
 0x175   : > { %632 = vadd.xlane.f32.xlu0 %v631_v35  ;;  %v2480_v35 = vld [vmem:[%s2963_s1 + $0x38] sm:$0xff]  }
 0x1fe   : > { %v633_v40 = vpop.xlane.xlu0 %632 }
 0x1ff   : > { %v634_v41 = vmul.f32 0.03125, %v633_v40 }
 0x201   : > { %v635_v42 = vadd.f32 1e-05, %v634_v41 }
 0x203   : > { %2505 = vrsqrt.f32 %v635_v42 }
 0x210   : > { %v2506_v43 = vpop.eup %2505 }
 0x211   : > { %v637_v45 = vmul.f32 %v2506_v43, %v629_v33 }
 0x213   : > { %v643_v47 = vmul.f32 %v2083_v44, %v637_v45 }
 0x215   : > { %v649_v48 = vadd.f32 %v2084_v46, %v643_v47 }
 0x217   : > { %653 = vst.msk [vmem:[#allocation2 + $0x1] sm:$0xff] %vm455_vm1, %v649_v48 }
 0x21e   : > { %v660_v50 = vld [vmem:[#allocation2 + $0x1] sm:$0xff] }
 0x21f   : > { %v654_v51 = vld [vmem:[#allocation2] sm:$0xff]  ;;  %v661_v53 = vpack.c.bf16 %v660_v50, %v660_v50 }
 0x220   : > { %v777_v52 = vld [vmem:[#allocation2 + $0x2] sm:$0xff]  ;;  %v655_v54 = vpack.c.bf16 %v654_v51, %v654_v51 }
 0x221   : > { %1163 = vst.msk [vmem:[#allocation2] sm:$0xff] %vm455_vm1, %v2525_v1  ;;  %2309 = vmatmul.mubr.msk.bf16.vlgmr.msra.gmra.mxu1 %vm455_vm1, %v661_v53  ;;  %v778_v56 = vpack.c.bf16 %v777_v52, %v777_v52  ;;  %v2130_v53 = vld [vmem:[%s2964_s2 + $0x1] ss:$0 sm:$0xff] }
 0x222   : > { %1164 = vst.msk [vmem:[#allocation2 + $0x8] sm:$0x3] %vm651_vm2, %v2525_v1  ;;  %2317 = vmatmul.mubr.msk.bf16.vlgmr.msra.gmra.mxu0 %vm455_vm1, %v655_v54  ;;  %2321 = vmatpush3.bf16.msra.mxu1 %v2473_v49 }
 0x223   : > { %2324 = vmatprep.mubr.msk.bf16.mxu1 %vm2526_vm0, %v2525_v1  ;;  %2322 = vmatprep.subr.bf16.mxu1 %v2525_v1 }
 0x224   : > { %2332 = vmatprep.mubr.msk.bf16.mxu0 %vm2526_vm0, %v2525_v1  ;;  %2329 = vmatpush3.bf16.msra.mxu0 %v2476_v21 }
 0x225   : > { %2330 = vmatprep.subr.bf16.mxu0 %v2525_v1 }
 0x226   : > { %2323 = vmatpush3.bf16.msra.mxu1 %v2474_v55 }
 0x227   : > { %2336 = vmatprep.subr.bf16.mxu1 %v2525_v1 }
 0x228   : > { %2331 = vmatpush3.bf16.msra.mxu0 %v2478_v23 }
 0x229   : > { %2325 = vmatmul.mubr.msk.bf16.vlgmr.msra.gmra.mxu1 %vm455_vm1, %v778_v56  ;;  %2344 = vmatprep.subr.bf16.mxu0 %v2525_v1 }
 0x22a   : > { %2340 = vmatprep.mubr.msk.bf16.mxu1 %vm2526_vm0, %v2525_v1  ;;  %2337 = vmatpush3.bf16.msra.mxu1 %v2475_v20 }
 0x22b   : > { %2338 = vmatprep.subr.bf16.mxu1 %v2525_v1 }
 0x22e   : > { %2339 = vmatpush3.bf16.msra.mxu1 %v2477_v22 }
 0x22f   : > { %2352 = vmatprep.subr.bf16.mxu1 %v2525_v1 }
 0x231   : > { %2341 = vmatmul.mubr.msk.bf16.vlgmr.msra.gmra.mxu1 %vm455_vm1, %v2636_v8 }
 0x232   : > { %2353 = vmatpush3.bf16.msra.mxu1 %v2479_v24  ;;  %2356 = vmatprep.mubr.msk.bf16.mxu1 %vm2526_vm0, %v2525_v1  ;;  %v2488_v24 = vld [vmem:[%s2967_s5 + $0x50] sm:$0xff]  }
 0x233   : > { %2354 = vmatprep.subr.bf16.mxu1 %v2525_v1 }
 0x236   : > { %2355 = vmatpush3.bf16.msra.mxu1 %v2481_v25 }
 0x237   : > { %2368 = vmatprep.subr.bf16.mxu1 %v2525_v1 }
 0x239   : > { %2357 = vmatmul.mubr.msk.bf16.vlgmr.msra.gmra.mxu1 %vm455_vm1, %v2652_v12 }
 0x23a   : > { %2372 = vmatprep.mubr.msk.bf16.mxu1 %vm2526_vm0, %v2525_v1 }
 0x2e1   : > { %v716_v57 = vpop.f32.mrf.mxu1 }
 0x2e2   : > { %v771_v58 = vpop.f32.mrf.mxu0 }
 0x2e3   : > { %v2310_v59 = vpop.f32.mrf.mxu1  ;;  %v772_v2 = vadd.f32 %v771_v58, %v716_v57 }
 0x2e4   : > { %v2318_v60 = vpop.f32.mrf.mxu0 }
 0x2e5   : > { %v719_v61 = vpop.f32.mrf.mxu1 }
 0x2e6   : > { %v774_v62 = vpop.f32.mrf.mxu0 }
 0x2e7   : > { %v2311_v63 = vpop.f32.mrf.mxu1 }
 0x2e8   : > { %v2319_v0 = vpop.f32.mrf.mxu0 }
 0x2e9   : > { %v833_v3 = vpop.f32.mrf.mxu1 }
 0x2ea   : > { %v839_v5 = vadd.f32 %v833_v3, %v772_v2  ;;  %v2483_v2 = vld [vmem:[%s2967_s5 + $0x48] sm:$0xff]   ;;  %v2484_v3 = vld [vmem:[%s2967_s5 + $0x38] sm:$0xff]  }
 0x2eb   : > { %v2326_v6 = vpop.f32.mrf.mxu1  ;;  %2369 = vmatpush3.bf16.msra.mxu1 %v2484_v3 }
 0x2ec   : > { %v845_v7 = vadd.f32 %v2102_v4, %v839_v5  ;;  %v2485_v4 = vld [vmem:[%s2967_s5 + $0x40] sm:$0xff]   ;;  %v2486_v5 = vld [vmem:[%s2967_s5 + $0x30] sm:$0xff]   ;;  %2370 = vmatprep.subr.bf16.mxu1 %v2525_v1 }
 0x2ed   : > { %v836_v10 = vpop.f32.mrf.mxu1 }
 0x2ee   : > { %v846_v11 = vmax.f32 %v845_v7, 0.0 }
 0x2ef   : > { %v2327_v13 = vpop.f32.mrf.mxu1  ;;  %2371 = vmatpush3.bf16.msra.mxu1 %v2486_v5 }
 0x2f0   : > { %v847_v14 = vsel %vm455_vm1, %v846_v11, 0.0  ;;  %2384 = vmatprep.subr.bf16.mxu1 %v2525_v1  ;;  %v2131_v13 = vld [vmem:[%s2965_s3 + $0x1] ss:$0 sm:$0xff] }
 0x2f1   : > { %848 = vadd.xlane.f32.xlu1 %v847_v14  ;;  %v1007_v38 = vpop.f32.mrf.mxu1 }
 0x2f3   : > { %v2342_v39 = vpop.f32.mrf.mxu1 }
 0x2f5   : > { %v1010_v40 = vpop.f32.mrf.mxu1 }
 0x2f7   : > { %v2343_v41 = vpop.f32.mrf.mxu1 }
 0x2f9   : > { %v1124_v42 = vpop.f32.mrf.mxu1 }
 0x2fb   : > { %v2358_v43 = vpop.f32.mrf.mxu1 }
 0x2fd   : > { %v1127_v44 = vpop.f32.mrf.mxu1 }
 0x2fe   : > { %v2489_v44 = vld [vmem:[%s2971_s9 + $0x8] sm:$0xff]  }
 0x2ff   : > { %v2359_v45 = vpop.f32.mrf.mxu1 }
 0x37a   : > { %v849_v15 = vpop.xlane.xlu1 %848 }
 0x37b   : > { %v850_v16 = vmul.f32 0.03125, %v849_v15  ;;  %v2132_v15 = vld [vmem:[%s2966_s4 + $0x1] ss:$0 sm:$0xff] }
 0x37d   : > { %v851_v17 = vsub.f32 %v846_v11, %v850_v16 }
 0x37f   : > { %v852_v18 = vmul.f32 %v851_v17, %v851_v17 }
 0x381   : > { %v853_v19 = vsel %vm455_vm1, %v852_v18, 0.0  ;;  %v2487_v18 = vld [vmem:[%s2967_s5 + $0x58] sm:$0xff]  }
 0x382   : > { %854 = vadd.xlane.f32.xlu1 %v853_v19 }
 0x40b   : > { %v855_v26 = vpop.xlane.xlu1 %854 }
 0x40c   : > { %v856_v27 = vmul.f32 0.03125, %v855_v26 }
 0x40e   : > { %v857_v28 = vadd.f32 1e-05, %v856_v27 }
 0x410   : > { %2507 = vrsqrt.f32 %v857_v28 }
 0x41d   : > { %v2508_v29 = vpop.eup %2507 }
 0x41e   : > { %v859_v31 = vmul.f32 %v2508_v29, %v851_v17 }
 0x420   : > { %v865_v33 = vmul.f32 %v2103_v30, %v859_v31 }
 0x422   : > { %v871_v34 = vadd.f32 %v2104_v32, %v865_v33 }
 0x424   : > { %v872_v36 = vpack.c.bf16 %v871_v34, %v871_v34 }
 0x426   : > { %2333 = vmatmul.mubr.msk.bf16.vlgmr.msra.gmra.mxu0 %vm455_vm1, %v872_v36  ;;  %v2154_v36 = vld [vmem:[%s2968_s6 + $0x1] ss:$0 sm:$0xff] }
 0x427   : > { %2345 = vmatpush3.bf16.msra.mxu0 %v2480_v35  ;;  %2348 = vmatprep.mubr.msk.bf16.mxu0 %vm2526_vm0, %v2525_v1 }
 0x428   : > { %2346 = vmatprep.subr.bf16.mxu0 %v2525_v1 }
 0x42b   : > { %2347 = vmatpush3.bf16.msra.mxu0 %v2482_v37 }
 0x42c   : > { %2360 = vmatprep.subr.bf16.mxu0 %v2525_v1 }
 0x42e   : > { %2349 = vmatmul.mubr.msk.bf16.vlgmr.msra.gmra.mxu0 %vm455_vm1, %v2638_v9 }
 0x42f   : > { %2364 = vmatprep.mubr.msk.bf16.mxu0 %vm2526_vm0, %v2525_v1  ;;  %2361 = vmatpush3.bf16.msra.mxu0 %v2483_v2  ;;  %v2494_v2 = vld [vmem:[%s2963_s1 + $0x68] sm:$0xff]  }
 0x430   : > { %2362 = vmatprep.subr.bf16.mxu0 %v2525_v1 }
 0x433   : > { %2363 = vmatpush3.bf16.msra.mxu0 %v2485_v4  ;;  %v2496_v4 = vld [vmem:[%s2963_s1 + $0x60] sm:$0xff]  }
 0x434   : > { %2376 = vmatprep.subr.bf16.mxu0 %v2525_v1 }
 0x4e6   : > { %v2768_v46 = vpop.f32.mrf.mxu0 }
 0x4e8   : > { %v2334_v47 = vpop.f32.mrf.mxu0 }
 0x4ea   : > { %v929_v48 = vpop.f32.mrf.mxu0 }
 0x4ec   : > { %v2335_v49 = vpop.f32.mrf.mxu0 }
 0x4ee   : > { %v1062_v50 = vpop.f32.mrf.mxu0 }
 0x4ef   : > { %v1063_v51 = vadd.f32 %v1062_v50, %v1007_v38 }
 0x4f0   : > { %v2350_v52 = vpop.f32.mrf.mxu0 }
 0x4f1   : > { %v1130_v54 = vadd.f32 %v1124_v42, %v1063_v51  ;;  %v2490_v51 = vld [vmem:[%s2971_s9] sm:$0xff]   ;;  %v2491_v52 = vld [vmem:[%s2963_s1 + $0x78] sm:$0xff]  }
 0x4f2   : > { %v1065_v55 = vpop.f32.mrf.mxu0 }
 0x4f3   : > { %v1136_v56 = vadd.f32 %v2130_v53, %v1130_v54  ;;  %v2492_v53 = vld [vmem:[%s2963_s1 + $0x70] sm:$0xff]   ;;  %v2493_v55 = vld [vmem:[%s2963_s1 + $0x88] sm:$0xff]  }
 0x4f4   : > { %v2351_v57 = vpop.f32.mrf.mxu0 }
 0x4f5   : > { %v1137_v58 = vmax.f32 %v1136_v56, 0.0  ;;  %v2495_v56 = vld [vmem:[%s2963_s1 + $0x80] sm:$0xff]  }
 0x4f7   : > { %v1138_v59 = vsel %vm455_vm1, %v1137_v58, 0.0 }
 0x4f8   : > { %1139 = vadd.xlane.f32.xlu0 %v1138_v59 }
 0x581   : > { %v1140_v60 = vpop.xlane.xlu0 %1139 }
 0x582   : > { %v1141_v61 = vmul.f32 0.03125, %v1140_v60 }
 0x584   : > { %v1142_v62 = vsub.f32 %v1137_v58, %v1141_v61  ;;  %v2155_v61 = vld [vmem:[%s2969_s7 + $0x1] ss:$0 sm:$0xff] }
 0x586   : > { %v1143_v63 = vmul.f32 %v1142_v62, %v1142_v62 }
 0x588   : > { %v1144_v0 = vsel %vm455_vm1, %v1143_v63, 0.0 }
 0x589   : > { %1145 = vadd.xlane.f32.xlu1 %v1144_v0 }
 0x612   : > { %v1146_v6 = vpop.xlane.xlu1 %1145 }
 0x613   : > { %v1147_v7 = vmul.f32 0.03125, %v1146_v6 }
 0x615   : > { %v1148_v10 = vadd.f32 1e-05, %v1147_v7 }
 0x617   : > { %2509 = vrsqrt.f32 %v1148_v10 }
 0x624   : > { %v2510_v11 = vpop.eup %2509 }
 0x625   : > { %v1150_v14 = vmul.f32 %v2510_v11, %v1142_v62 }
 0x627   : > { %v1156_v16 = vmul.f32 %v2131_v13, %v1150_v14 }
 0x629   : > { %v1162_v17 = vadd.f32 %v2132_v15, %v1156_v16 }
 0x62b   : > { %1165 = vst.msk [vmem:[#allocation2 + $0x1] sm:$0xff] %vm455_vm1, %v1162_v17 }
 0x632   : > { %v1173_v19 = vld [vmem:[#allocation2 + $0x1] sm:$0xff] }
 0x633   : > { %v1166_v20 = vld [vmem:[#allocation2] sm:$0xff]  ;;  %v1174_v22 = vpack.c.bf16 %v1173_v19, %v1173_v19 }
 0x634   : > { %v1290_v21 = vld [vmem:[#allocation2 + $0x2] sm:$0xff]  ;;  %v1167_v23 = vpack.c.bf16 %v1166_v20, %v1166_v20 }
 0x635   : > { %1678 = vst.msk [vmem:[#allocation2] sm:$0xff] %vm455_vm1, %v2525_v1  ;;  %2365 = vmatmul.mubr.msk.bf16.vlgmr.msra.gmra.mxu0 %vm455_vm1, %v1174_v22  ;;  %v1291_v25 = vpack.c.bf16 %v1290_v21, %v1290_v21 }
 0x636   : > { %1679 = vst.msk [vmem:[#allocation2 + $0x8] sm:$0x3] %vm651_vm2, %v2525_v1  ;;  %2373 = vmatmul.mubr.msk.bf16.vlgmr.msra.gmra.mxu1 %vm455_vm1, %v1167_v23  ;;  %2377 = vmatpush3.bf16.msra.mxu0 %v2487_v18 }
 0x637   : > { %2380 = vmatprep.mubr.msk.bf16.mxu0 %vm2526_vm0, %v2525_v1  ;;  %2378 = vmatprep.subr.bf16.mxu0 %v2525_v1 }
 0x638   : > { %2388 = vmatprep.mubr.msk.bf16.mxu1 %vm2526_vm0, %v2525_v1 }
 0x63a   : > { %2379 = vmatpush3.bf16.msra.mxu0 %v2488_v24 }
 0x63b   : > { %2392 = vmatprep.subr.bf16.mxu0 %v2525_v1 }
 0x63d   : > { %2381 = vmatmul.mubr.msk.bf16.vlgmr.msra.gmra.mxu0 %vm455_vm1, %v1291_v25 }
 0x63e   : > { %2396 = vmatprep.mubr.msk.bf16.mxu0 %vm2526_vm0, %v2525_v1  ;;  %2393 = vmatpush3.bf16.msra.mxu0 %v2491_v52 }
 0x63f   : > { %2394 = vmatprep.subr.bf16.mxu0 %v2525_v1 }
 0x642   : > { %2395 = vmatpush3.bf16.msra.mxu0 %v2492_v53  ;;  %v2502_v53 = vld [vmem:[%s2967_s5 + $0x80] sm:$0xff]  }
 0x643   : > { %2408 = vmatprep.subr.bf16.mxu0 %v2525_v1 }
 0x645   : > { %2397 = vmatmul.mubr.msk.bf16.vlgmr.msra.gmra.mxu0 %vm455_vm1, %v2636_v8 }
 0x646   : > { %2409 = vmatpush3.bf16.msra.mxu0 %v2493_v55  ;;  %2412 = vmatprep.mubr.msk.bf16.mxu0 %vm2526_vm0, %v2525_v1 }
 0x647   : > { %2410 = vmatprep.subr.bf16.mxu0 %v2525_v1 }
 0x64a   : > { %2411 = vmatpush3.bf16.msra.mxu0 %v2495_v56 }
 0x64b   : > { %2424 = vmatprep.subr.bf16.mxu0 %v2525_v1 }
 0x64d   : > { %2413 = vmatmul.mubr.msk.bf16.vlgmr.msra.gmra.mxu0 %vm455_vm1, %v2652_v12  ;;  %v2156_v12 = vld [vmem:[%s2970_s8 + $0x1] ss:$0 sm:$0xff] }
 0x64e   : > { %2428 = vmatprep.mubr.msk.bf16.mxu0 %vm2526_vm0, %v2525_v1 }
 0x6f5   : > { %v1229_v26 = vpop.f32.mrf.mxu0 }
 0x6f6   : > { %v1284_v27 = vpop.f32.mrf.mxu1 }
 0x6f7   : > { %v2366_v28 = vpop.f32.mrf.mxu0  ;;  %v1285_v34 = vadd.f32 %v1284_v27, %v1229_v26 }
 0x6f8   : > { %v2374_v29 = vpop.f32.mrf.mxu1 }
 0x6f9   : > { %v1232_v30 = vpop.f32.mrf.mxu0 }
 0x6fa   : > { %v1287_v31 = vpop.f32.mrf.mxu1 }
 0x6fb   : > { %v2367_v32 = vpop.f32.mrf.mxu0 }
 0x6fc   : > { %v2375_v33 = vpop.f32.mrf.mxu1 }
 0x6fd   : > { %v1346_v35 = vpop.f32.mrf.mxu0 }
 0x6fe   : > { %v1352_v37 = vadd.f32 %v1346_v35, %v1285_v34  ;;  %v2497_v34 = vld [vmem:[%s2967_s5 + $0x78] sm:$0xff]   ;;  %v2498_v35 = vld [vmem:[%s2967_s5 + $0x68] sm:$0xff]  }
 0x6ff   : > { %v2382_v38 = vpop.f32.mrf.mxu0  ;;  %2425 = vmatpush3.bf16.msra.mxu0 %v2498_v35  ;;  %v932_v35 = vlaneseq }
 0x700   : > { %v1358_v39 = vadd.f32 %v2154_v36, %v1352_v37  ;;  %v2499_v36 = vld [vmem:[%s2967_s5 + $0x70] sm:$0xff]   ;;  %v2500_v37 = vld [vmem:[%s2967_s5 + $0x60] sm:$0xff]   ;;  %2426 = vmatprep.subr.bf16.mxu0 %v2525_v1 }
 0x701   : > { %v1349_v40 = vpop.f32.mrf.mxu0 }
 0x702   : > { %v1359_v41 = vmax.f32 %v1358_v39, 0.0 }
 0x703   : > { %v2383_v42 = vpop.f32.mrf.mxu0  ;;  %2427 = vmatpush3.bf16.msra.mxu0 %v2500_v37  ;;  %v933_v37 = vand.u32 127, %v932_v35 }
 0x704   : > { %v1360_v43 = vsel %vm455_vm1, %v1359_v41, 0.0  ;;  %2440 = vmatprep.subr.bf16.mxu0 %v2525_v1  ;;  %v2183_v42 = vld [vmem:[%s2965_s3 + $0x2] ss:$0 sm:$0xff] }
 0x705   : > { %1361 = vadd.xlane.f32.xlu0 %v1360_v43  ;;  %v1522_v5 = vpop.f32.mrf.mxu0  ;;  %vm1449_vm3 = vcmp.eq.s32.totalorder %v933_v37, 1  ;;  %vm934_vm4 = vcmp.eq.s32.totalorder %v933_v37, 0  ;;  %vm1964_vm5 = vcmp.eq.s32.totalorder %v933_v37, 2 }
 0x707   : > { %v2398_v6 = vpop.f32.mrf.mxu0 }
 0x709   : > { %v1525_v7 = vpop.f32.mrf.mxu0 }
 0x70b   : > { %v2399_v10 = vpop.f32.mrf.mxu0 }
 0x70d   : > { %v1639_v11 = vpop.f32.mrf.mxu0 }
 0x70f   : > { %v2414_v13 = vpop.f32.mrf.mxu0 }
 0x710   : > { %v2504_v13 = vld [vmem:[%s2971_s9 + $0x8] sm:$0xff]  }
 0x711   : > { %v1642_v14 = vpop.f32.mrf.mxu0 }
 0x713   : > { %v2415_v15 = vpop.f32.mrf.mxu0 }
 0x71b   : > { %1402 = vrot.lane.b32.xlu0 %v2489_v44, %s2527_s19  ;;  %v2184_v44 = vld [vmem:[%s2966_s4 + $0x2] ss:$0 sm:$0xff] }
 0x78e   : > { %v1362_v45 = vpop.xlane.xlu0 %1361 }
 0x78f   : > { %v1363_v47 = vmul.f32 0.03125, %v1362_v45 }
 0x791   : > { %v1364_v48 = vsub.f32 %v1359_v41, %v1363_v47 }
 0x792   : > { %v1403_v54 = vpop.permute.xlu0 %1402 }
 0x793   : > { %v1365_v49 = vmul.f32 %v1364_v48, %v1364_v48  ;;  %2385 = vmatpush3.bf16.msra.mxu1 %v1403_v54 }
 0x794   : > { %2386 = vmatprep.subr.bf16.mxu1 %v2525_v1 }
 0x795   : > { %v1366_v50 = vsel %vm455_vm1, %v1365_v49, 0.0 }
 0x796   : > { %1367 = vadd.xlane.f32.xlu1 %v1366_v50  ;;  %v2501_v50 = vld [vmem:[%s2967_s5 + $0x88] sm:$0xff]  }
 0x7a7   : > { %1400 = vrot.lane.b32.xlu1 %v2490_v51, %s2527_s19 }
 0x81f   : > { %v1368_v8 = vpop.xlane.xlu1 %1367 }
 0x820   : > { %v1369_v57 = vmul.f32 0.03125, %v1368_v8 }
 0x822   : > { %v1370_v58 = vadd.f32 1e-05, %v1369_v57 }
 0x823   : > { %v1401_v59 = vpop.permute.xlu1 %1400 }
 0x824   : > { %2511 = vrsqrt.f32 %v1370_v58  ;;  %2387 = vmatpush3.bf16.msra.mxu1 %v1401_v59 }
 0x825   : > { %2400 = vmatprep.subr.bf16.mxu1 %v2525_v1 }
 0x831   : > { %v2512_v60 = vpop.eup %2511 }
 0x832   : > { %v1372_v62 = vmul.f32 %v2512_v60, %v1364_v48 }
 0x834   : > { %v1378_v63 = vmul.f32 %v2155_v61, %v1372_v62 }
 0x836   : > { %v1384_v0 = vadd.f32 %v2156_v12, %v1378_v63 }
 0x838   : > { %v1385_v3 = vpack.c.bf16 %v1384_v0, %v1384_v0  ;;  %v2206_v0 = vld [vmem:[%s2968_s6 + $0x2] ss:$0 sm:$0xff] }
 0x83a   : > { %2389 = vmatmul.mubr.msk.bf16.vlgmr.msra.gmra.mxu1 %vm455_vm1, %v1385_v3 }
 0x83b   : > { %2401 = vmatpush3.bf16.msra.mxu1 %v2494_v2  ;;  %2404 = vmatprep.mubr.msk.bf16.mxu1 %vm2526_vm0, %v2525_v1 }
 0x83c   : > { %2402 = vmatprep.subr.bf16.mxu1 %v2525_v1 }
 0x83f   : > { %2403 = vmatpush3.bf16.msra.mxu1 %v2496_v4 }
 0x840   : > { %2416 = vmatprep.subr.bf16.mxu1 %v2525_v1 }
 0x842   : > { %2405 = vmatmul.mubr.msk.bf16.vlgmr.msra.gmra.mxu1 %vm455_vm1, %v2638_v9  ;;  %v2182_v9 = vld [vmem:[%s2964_s2 + $0x2] ss:$0 sm:$0xff] }
 0x843   : > { %2420 = vmatprep.mubr.msk.bf16.mxu1 %vm2526_vm0, %v2525_v1  ;;  %2417 = vmatpush3.bf16.msra.mxu1 %v2497_v34 }
 0x844   : > { %2418 = vmatprep.subr.bf16.mxu1 %v2525_v1 }
 0x847   : > { %2419 = vmatpush3.bf16.msra.mxu1 %v2499_v36 }
 0x848   : > { %2432 = vmatprep.subr.bf16.mxu1 %v2525_v1 }
 0x8fa   : > { %v2877_v16 = vpop.f32.mrf.mxu1 }
 0x8fc   : > { %v2390_v17 = vpop.f32.mrf.mxu1 }
 0x8fe   : > { %v1446_v18 = vpop.f32.mrf.mxu1 }
 0x900   : > { %v2391_v19 = vpop.f32.mrf.mxu1 }
 0x902   : > { %v1577_v20 = vpop.f32.mrf.mxu1 }
 0x903   : > { %v1578_v21 = vadd.f32 %v1577_v20, %v1522_v5  ;;  %v2503_v20 = vld [vmem:[%s2971_s9] sm:$0xff]  }
 0x904   : > { %v2406_v22 = vpop.f32.mrf.mxu1 }
 0x905   : > { %v1645_v23 = vadd.f32 %v1639_v11, %v1578_v21  ;;  %v2528_v11 = vmov 0   ;;  %v1982_v22 = vld [vmem:[%s424_s18] sm:$0xff] }
 0x906   : > { %v1580_v24 = vpop.f32.mrf.mxu1  ;;  %2461 = vset.pattern.permute.xlu1 %v2528_v11  ;;  %2462 = vset.pattern.permute.xlu0 %v2528_v11 }
 0x907   : > { %v1651_v25 = vadd.f32 %v2182_v9, %v1645_v23 }
 0x908   : > { %v2407_v26 = vpop.f32.mrf.mxu1 }
 0x909   : > { %v1652_v27 = vmax.f32 %v1651_v25, 0.0 }
 0x90b   : > { %v1653_v28 = vsel %vm455_vm1, %v1652_v27, 0.0 }
 0x90c   : > { %1654 = vadd.xlane.f32.xlu1 %v1653_v28 }
 0x995   : > { %v1655_v29 = vpop.xlane.xlu1 %1654 }
 0x996   : > { %v1656_v30 = vmul.f32 0.03125, %v1655_v29 }
 0x998   : > { %v1657_v31 = vsub.f32 %v1652_v27, %v1656_v30  ;;  %v2208_v27 = vld [vmem:[%s2970_s8 + $0x2] ss:$0 sm:$0xff] }
 0x99a   : > { %v1658_v32 = vmul.f32 %v1657_v31, %v1657_v31 }
 0x99c   : > { %v1659_v33 = vsel %vm455_vm1, %v1658_v32, 0.0 }
 0x99d   : > { %1660 = vadd.xlane.f32.xlu0 %v1659_v33 }
 0xa26   : > { %v1661_v38 = vpop.xlane.xlu0 %1660 }
 0xa27   : > { %v1662_v39 = vmul.f32 0.03125, %v1661_v38  ;;  %v2160_v38 = vsel %vm1449_vm3, 1.0, %v2525_v1 }
 0xa29   : > { %v1663_v40 = vadd.f32 1e-05, %v1662_v39 }
 0xa2b   : > { %2513 = vrsqrt.f32 %v1663_v40  ;;  %v2108_v40 = vsel %vm934_vm4, 1.0, %v2525_v1 }
 0xa38   : > { %v2514_v41 = vpop.eup %2513 }
 0xa39   : > { %v1665_v43 = vmul.f32 %v2514_v41, %v1657_v31 }
 0xa3b   : > { %v1671_v45 = vmul.f32 %v2183_v42, %v1665_v43  ;;  %v2212_v42 = vsel %vm1964_vm5, 1.0, %v2525_v1 }
 0xa3d   : > { %v1677_v47 = vadd.f32 %v2184_v44, %v1671_v45 }
 0xa3f   : > { %1680 = vst.msk [vmem:[#allocation2 + $0x1] sm:$0xff] %vm455_vm1, %v1677_v47 }
 0xa46   : > { %v1688_v48 = vld [vmem:[#allocation2 + $0x1] sm:$0xff] }
 0xa47   : > { %v1681_v49 = vld [vmem:[#allocation2] sm:$0xff]  ;;  %v1689_v51 = vpack.c.bf16 %v1688_v48, %v1688_v48 }
 0xa48   : > { %v1682_v52 = vpack.c.bf16 %v1681_v49, %v1681_v49  ;;  %v1805_v54 = vld [vmem:[#allocation2 + $0x2] sm:$0xff]  ;;  %v2213_v48 = vld [vmem:[%s2972_s10] ss:$0 sm:$0xff] }
 0xa49   : > { %2421 = vmatmul.mubr.msk.bf16.vlgmr.msra.gmra.mxu1 %vm455_vm1, %v1689_v51  ;;  %v1806_v55 = vpack.c.bf16 %v1805_v54, %v1805_v54 }
 0xa4a   : > { %2429 = vmatmul.mubr.msk.bf16.vlgmr.msra.gmra.mxu0 %vm455_vm1, %v1682_v52  ;;  %2433 = vmatpush3.bf16.msra.mxu1 %v2501_v50 }
 0xa4b   : > { %2436 = vmatprep.mubr.msk.bf16.mxu1 %vm2526_vm0, %v2525_v1  ;;  %2434 = vmatprep.subr.bf16.mxu1 %v2525_v1 }
 0xa4c   : > { %2444 = vmatprep.mubr.msk.bf16.mxu0 %vm2526_vm0, %v2525_v1 }
 0xa4e   : > { %2435 = vmatpush3.bf16.msra.mxu1 %v2502_v53 }
 0xa51   : > { %2437 = vmatmul.mubr.msk.bf16.vlgmr.msra.gmra.mxu1 %vm455_vm1, %v1806_v55 }
 0xb09   : > { %v1744_v56 = vpop.f32.mrf.mxu1 }
 0xb0a   : > { %v1799_v8 = vpop.f32.mrf.mxu0 }
 0xb0b   : > { %v2422_v57 = vpop.f32.mrf.mxu1  ;;  %v1800_v12 = vadd.f32 %v1799_v8, %v1744_v56 }
 0xb0c   : > { %v2430_v58 = vpop.f32.mrf.mxu0 }
 0xb0d   : > { %v1747_v59 = vpop.f32.mrf.mxu1 }
 0xb0e   : > { %v1802_v60 = vpop.f32.mrf.mxu0 }
 0xb0f   : > { %v2423_v61 = vpop.f32.mrf.mxu1 }
 0xb10   : > { %v2431_v62 = vpop.f32.mrf.mxu0 }
 0xb11   : > { %v1861_v63 = vpop.f32.mrf.mxu1 }
 0xb12   : > { %v1867_v2 = vadd.f32 %v1861_v63, %v1800_v12 }
 0xb13   : > { %v2438_v3 = vpop.f32.mrf.mxu1 }
 0xb14   : > { %v1873_v4 = vadd.f32 %v2206_v0, %v1867_v2 }
 0xb15   : > { %v1864_v5 = vpop.f32.mrf.mxu1 }
 0xb16   : > { %v1874_v6 = vmax.f32 %v1873_v4, 0.0 }
 0xb17   : > { %v2439_v7 = vpop.f32.mrf.mxu1 }
 0xb18   : > { %v1875_v10 = vsel %vm455_vm1, %v1874_v6, 0.0 }
 0xb19   : > { %1876 = vadd.xlane.f32.xlu0 %v1875_v10 }
 0xb2f   : > { %1917 = vrot.lane.b32.xlu0 %v2504_v13, %s2529_s30 }
 0xba2   : > { %v1877_v14 = vpop.xlane.xlu0 %1876 }
 0xba3   : > { %v1878_v15 = vmul.f32 0.03125, %v1877_v14 }
 0xba5   : > { %v1879_v17 = vsub.f32 %v1874_v6, %v1878_v15 }
 0xba6   : > { %v1918_v21 = vpop.permute.xlu0 %1917 }
 0xba7   : > { %v1880_v18 = vmul.f32 %v1879_v17, %v1879_v17  ;;  %2441 = vmatpush3.bf16.msra.mxu0 %v1918_v21 }
 0xba8   : > { %2442 = vmatprep.subr.bf16.mxu0 %v2525_v1 }
 0xba9   : > { %v1881_v19 = vsel %vm455_vm1, %v1880_v18, 0.0 }
 0xbaa   : > { %1882 = vadd.xlane.f32.xlu1 %v1881_v19 }
 0xbbb   : > { %1915 = vrot.lane.b32.xlu1 %v2503_v20, %s2529_s30 }
 0xbbf   : > { %939 = vperm.xlu1 %2461, %v2768_v46  }
 0xbc3   : > { %1454 = vperm.xlu1 %2461, %v2877_v16   ;;  %v2207_v16 = vld [vmem:[%s2969_s7 + $0x2] ss:$0 sm:$0xff] }
 0xbc7   : > { %1985 = vperm.xlu1 %2461, %v1982_v22  }
 0xc33   : > { %v1883_v9 = vpop.xlane.xlu1 %1882 }
 0xc34   : > { %v1884_v23 = vmul.f32 0.03125, %v1883_v9 }
 0xc36   : > { %v1885_v24 = vadd.f32 1e-05, %v1884_v23 }
 0xc37   : > { %v1916_v25 = vpop.permute.xlu1 %1915 }
 0xc38   : > { %2515 = vrsqrt.f32 %v1885_v24  ;;  %2443 = vmatpush3.bf16.msra.mxu0 %v1916_v25 }
 0xc3b   : > { %v940_v36 = vpop.permute.xlu1 %939 }
 0xc3c   : > { %v942_v43 = vmul.f32 %v2108_v40, %v940_v36 }
 0xc3f   : > { %v1455_v39 = vpop.permute.xlu1 %1454 }
 0xc40   : > { %v1457_v41 = vmul.f32 %v2160_v38, %v1455_v39 }
 0xc42   : > { %v1458_v45 = vadd.f32 %v1457_v41, %v942_v43 }
 0xc43   : > { %v1986_v51 = vpop.permute.xlu1 %1985 }
 0xc45   : > { %v2516_v46 = vpop.eup %2515 }
 0xc46   : > { %v1887_v26 = vmul.f32 %v2516_v46, %v1879_v17 }
 0xc48   : > { %v1893_v28 = vmul.f32 %v2207_v16, %v1887_v26 }
 0xc4a   : > { %v1899_v29 = vadd.f32 %v2208_v27, %v1893_v28 }
 0xc4c   : > { %v1900_v30 = vpack.c.bf16 %v1899_v29, %v1899_v29 }
 0xc4e   : > { %2445 = vmatmul.mubr.msk.bf16.vlgmr.msra.gmra.mxu0 %vm455_vm1, %v1900_v30 }
 0xd0e   : > { %v1958_v31 = vpop.f32.mrf.mxu0 }
 0xd0f   : > { %1969 = vperm.xlu0 %2462, %v1958_v31  }
 0xd10   : > { %v2446_v32 = vpop.f32.mrf.mxu0 }
 0xd12   : > { %v1961_v33 = vpop.f32.mrf.mxu0 }
 0xd14   : > { %v2447_v34 = vpop.f32.mrf.mxu0 }
 0xd8a   : > { %v1970_v44 = vpop.permute.xlu0 %1969 }
 0xd8b   : > { %v1972_v47 = vmul.f32 %v2212_v42, %v1970_v44 }
 0xd8d   : > { %v1973_v49 = vadd.f32 %v1972_v47, %v1458_v45 }
 0xd8f   : > { %v1981_v50 = vadd.f32 %v2213_v48, %v1973_v49 }
 0xd91   : > { %v1988_v52 = vmul.f32 %v1986_v51, %v1981_v50 }
 0xd93   : > { %1990 = vst.msk [vmem:[%s428_s29] sm:$0xff] %vm1989_vm6, %v1988_v52 }
 0xd94 PF: > { %s22_s21 = sadd.s32 1, %s2523_s21  }
 0xd95   : > { %p19_p4 = scmp.ge.s32.totalorder %s22_s21, 4  }
 0xd97   :  { %21 = sbr.rel (!%p19_p4) target bundleno = 1 (0x1), region = 117 }

</bundles_post_ra>
